<compile_context>
chip_gen: v5e
topology: v5e:2x2
jax: 0.10.0
libtpu: 0.0.40
codegen_flags: <defaults>
</compile_context>

<pallas_src>
import functools

import jax
import jax.numpy as jnp
from jax import lax
from jax.experimental import pallas as pl
from jax.experimental.pallas import tpu as pltpu


def _recal_kernel(feat_ref, featp_ref, mask_ref, tapm_ref,
                  w1_ref, b1_ref, w2_ref, b2_ref, w3_ref,
                  o_ref, slab_ref, *, W, NHW, M, CIN1):
    # feat_ref : (C, NHW)      pixels-last, N images concatenated on lanes
    # featp_ref: (CIN1, NHW)   feat zero-padded to CIN1 sublanes (conv1 source)
    # mask_ref : (C, NHW)      recalibration mask
    # tapm_ref : (9*M, NHW)    border-validity masks, rows [t*M,(t+1)*M) = tap t
    # w1_ref   : (M, 9*CIN1)   conv1 weight, BN1 scale folded in, Cin padded
    # w2_ref   : (M, 9*M)      conv2 weight, BN2 scale folded in
    # w3_ref   : (C, 9*M)      conv3 weight
    # b1/b2    : (M, 1)        folded BN biases
    # o_ref    : (C, NHW)
    # slab_ref : (9*M, NHW)    shared im2col scratch (conv1 uses rows [0,9*CIN1))
    taps = [(dy, dx) for dy in (-1, 0, 1) for dx in (-1, 0, 1)]

    def build_slab(x, cin):
        # Write the 9 shifted taps of x (cin, NHW) into slab rows
        # [t*cin, (t+1)*cin).  Shifts are lane rotations (XLU); SAME-padding
        # zeros and cross-image wrap are handled by the precomputed tap masks.
        for t, (dy, dx) in enumerate(taps):
            d = dy * W + dx
            if d == 0:
                patch = x                                           # center tap
            else:
                patch = pltpu.roll(x, shift=(-d) % NHW, axis=1)     # [p] = x[p+d]
                patch = patch * tapm_ref[pl.ds(t * M, cin), :]
            slab_ref[pl.ds(t * cin, cin), :] = patch

    # conv1 (BN1 scale folded into w1) -> bias + ReLU
    build_slab(featp_ref[...], CIN1)
    h = jnp.dot(w1_ref[...], slab_ref[pl.ds(0, 9 * CIN1), :],
                preferred_element_type=jnp.float32)
    h = jnp.maximum(h + b1_ref[...], 0.0)

    # conv2 (BN2 scale folded into w2) -> bias + ReLU
    build_slab(h, M)
    h = jnp.dot(w2_ref[...], slab_ref[...], preferred_element_type=jnp.float32)
    h = jnp.maximum(h + b2_ref[...], 0.0)

    # conv3
    build_slab(h, M)
    rec = jnp.dot(w3_ref[...], slab_ref[...], preferred_element_type=jnp.float32)

    # residual with the recalibration mask
    o_ref[...] = feat_ref[...] + rec * (1.0 - mask_ref[...])


def _tap_mask_slab(H, W, N, M):
    """(9*M, N*H*W) f32: rows [t*M,(t+1)*M) = 1 where tap t's neighbour is
    in-bounds for that image (also kills cross-image roll wrap)."""
    ys = jnp.repeat(jnp.arange(H), W)
    xs = jnp.tile(jnp.arange(W), H)
    rows = []
    for dy in (-1, 0, 1):
        for dx in (-1, 0, 1):
            valid = ((ys + dy >= 0) & (ys + dy < H) &
                     (xs + dx >= 0) & (xs + dx < W))
            rows.append(valid.astype(jnp.float32))
    tm = jnp.stack(rows, axis=0)            # (9, H*W)
    tm = jnp.tile(tm, (1, N))               # (9, N*H*W)   per-image tiling
    return jnp.repeat(tm, M, axis=0)        # (9*M, N*H*W) broadcast to sublanes


def _pack_conv_weight(w_hwio, scale=None, pad_cin_to=None):
    """HWIO (3,3,Cin,Cout) -> lane-dense (Cout, 9*Cin'), column = t*Cin' + cin
    with t = ky*3 + kx; optional BN-scale fold on the Cout axis and Cin pad."""
    kh, kw, cin, cout = w_hwio.shape
    w = jnp.transpose(w_hwio, (3, 0, 1, 2))                 # (Cout, 3, 3, Cin)
    if pad_cin_to is not None and pad_cin_to > cin:
        w = jnp.pad(w, ((0, 0), (0, 0), (0, 0), (0, pad_cin_to - cin)))
        cin = pad_cin_to
    w = w.reshape(cout, kh * kw * cin)
    if scale is not None:
        w = w * scale[:, None]
    return w


def prepare_params(raw, *, C, H, W, N, M):
    """One-time (init) repack: im2col weights, BN-scale fold, tap-mask slab."""
    CIN1 = ((max(C, 8) + 7) // 8) * 8       # conv1 taps padded to sublane tile
    assert CIN1 <= M and M % 8 == 0
    return dict(
        w1=_pack_conv_weight(raw["w1"], scale=raw["s1"], pad_cin_to=CIN1),
        b1=raw["b1"].reshape(M, 1),
        w2=_pack_conv_weight(raw["w2"], scale=raw["s2"]),
        b2=raw["b2"].reshape(M, 1),
        w3=_pack_conv_weight(raw["w3"]),
        tapm=_tap_mask_slab(H, W, N, M),
        cin1=CIN1,
    )


def recalibration_forward(nr_feat_nchw, mask_nchw, prep):
    N, C, H, W = nr_feat_nchw.shape
    NHW = N * H * W
    M = prep["w2"].shape[0]
    CIN1 = prep["w1"].shape[1] // 9

    # pixels-last, images merged on the lane axis: (C, N*H*W)
    feat = jnp.transpose(nr_feat_nchw.reshape(N, C, H * W), (1, 0, 2)).reshape(C, NHW)
    mask = jnp.transpose(mask_nchw.reshape(N, C, H * W), (1, 0, 2)).reshape(C, NHW)
    feat_pad = jnp.pad(feat, ((0, CIN1 - C), (0, 0)))        # conv1 sublane pad

    kernel = functools.partial(_recal_kernel, W=W, NHW=NHW, M=M, CIN1=CIN1)
    out = pl.pallas_call(
        kernel,
        out_shape=jax.ShapeDtypeStruct((C, NHW), jnp.float32),
        scratch_shapes=[pltpu.VMEM((9 * M, NHW), jnp.float32)],   # im2col slab
    )(feat, feat_pad, mask, prep["tapm"],
      prep["w1"], prep["b1"], prep["w2"], prep["b2"], prep["w3"])

    return jnp.transpose(out.reshape(C, N, H, W), (1, 0, 2, 3))


def init_params(key, C, M):
    """Deterministic synthetic parameters (HWIO weights, folded inference BN)."""
    k = jax.random.split(key, 5)
    w1 = jax.random.normal(k[0], (3, 3, C, M), jnp.float32) / jnp.sqrt(9.0 * C)
    w2 = jax.random.normal(k[1], (3, 3, M, M), jnp.float32) / jnp.sqrt(9.0 * M)
    w3 = jax.random.normal(k[2], (3, 3, M, C), jnp.float32) / jnp.sqrt(9.0 * M)
    eps = 1e-5
    g1 = 1.0 + 0.1 * jax.random.normal(k[3], (M,), jnp.float32)
    b1 = 0.1 * jax.random.normal(k[4], (M,), jnp.float32)
    m1 = jnp.zeros((M,), jnp.float32)
    v1 = jnp.ones((M,), jnp.float32)
    g2, b2, m2, v2 = g1[::-1], b1[::-1], m1, v1
    s1 = g1 / jnp.sqrt(v1 + eps)
    bias1 = b1 - m1 * s1
    s2 = g2 / jnp.sqrt(v2 + eps)
    bias2 = b2 - m2 * s2
    return dict(w1=w1, w2=w2, w3=w3, s1=s1, b1=bias1, s2=s2, b2=bias2)


def _reference_forward(nr_feat_nchw, mask_nchw, p):
    # Pure-JAX reference (NHWC convs via lax.conv_general_dilated).
    x = jnp.transpose(nr_feat_nchw, (0, 2, 3, 1))
    mask = jnp.transpose(mask_nchw, (0, 2, 3, 1))

    def conv(v, w):
        return lax.conv_general_dilated(
            v, w, window_strides=(1, 1), padding="SAME",
            dimension_numbers=("NHWC", "HWIO", "NHWC"))

    h = jnp.maximum(conv(x, p["w1"]) * p["s1"] + p["b1"], 0.0)
    h = jnp.maximum(conv(h, p["w2"]) * p["s2"] + p["b2"], 0.0)
    rec = conv(h, p["w3"])
    out = x + rec * (1.0 - mask)
    return jnp.transpose(out, (0, 3, 1, 2))


if __name__ == "__main__":
    N, C, H, W = 2, 4, 16, 16
    M = 32  # num_channel

    key = jax.random.PRNGKey(0)
    k_feat, k_mask, k_param = jax.random.split(key, 3)
    nr_feat = jax.random.normal(k_feat, (N, C, H, W), jnp.float32)
    mask = (jax.random.uniform(k_mask, (N, C, H, W)) > 0.5).astype(jnp.float32)

    raw = init_params(k_param, C, M)
    prep = prepare_params(raw, C=C, H=H, W=W, N=N, M=M)   # one-time, outside jit
    prep.pop("cin1")                                       # keep pytree all-array

    fwd = jax.jit(recalibration_forward)
    out = jax.block_until_ready(fwd(nr_feat, mask, prep))

    ref = jax.block_until_ready(_reference_forward(nr_feat, mask, raw))
    assert out.shape == (N, C, H, W)
    assert jnp.allclose(out, ref, atol=1e-3, rtol=1e-3), "mismatch vs reference"

    print("KERNEL_OK")
</pallas_src>

<mosaic_0001>
module attributes {stable_mosaic.version = 11 : i64} {
  func.func @_recal_kernel(%arg0: memref<4x512xf32, #tpu.memory_space<vmem>>, %arg1: memref<8x512xf32, #tpu.memory_space<vmem>>, %arg2: memref<4x512xf32, #tpu.memory_space<vmem>>, %arg3: memref<288x512xf32, #tpu.memory_space<vmem>>, %arg4: memref<32x72xf32, #tpu.memory_space<vmem>>, %arg5: memref<32x1xf32, #tpu.memory_space<vmem>>, %arg6: memref<32x288xf32, #tpu.memory_space<vmem>>, %arg7: memref<32x1xf32, #tpu.memory_space<vmem>>, %arg8: memref<4x288xf32, #tpu.memory_space<vmem>>, %arg9: memref<4x512xf32, #tpu.memory_space<vmem>>, %arg10: memref<288x512xf32, #tpu.memory_space<vmem>>) attributes {dimension_semantics = [], scalar_prefetch = 0 : i64, scratch_operands = 1 : i64, tpu.core_type = #tpu.core_type<tc>} {
    %c0 = arith.constant 0 : index
    %c0_0 = arith.constant 0 : index
    %0 = vector.load %arg1[%c0, %c0_0] : memref<8x512xf32, #tpu.memory_space<vmem>>, vector<8x512xf32>
    %c17_i32 = arith.constant 17 : i32
    %1 = tpu.dynamic_rotate %0 by %c17_i32 dim 1 : vector<8x512xf32>, i32 -> vector<8x512xf32>
    %c0_1 = arith.constant 0 : index
    %c0_2 = arith.constant 0 : index
    %2 = vector.load %arg3[%c0_1, %c0_2] : memref<288x512xf32, #tpu.memory_space<vmem>>, vector<8x512xf32>
    %3 = arith.mulf %1, %2 : vector<8x512xf32>
    %c0_3 = arith.constant 0 : index
    %c0_4 = arith.constant 0 : index
    %4 = vector.load %arg10[%c0_3, %c0_4] : memref<288x512xf32, #tpu.memory_space<vmem>>, vector<8x512xf32>
    tpu.vector_store %arg10[%c0_3, %c0_4], %3 {strides = array<i32>} : memref<288x512xf32, #tpu.memory_space<vmem>>, vector<8x512xf32>,
    %c16_i32 = arith.constant 16 : i32
    %5 = tpu.dynamic_rotate %0 by %c16_i32 dim 1 : vector<8x512xf32>, i32 -> vector<8x512xf32>
    %c32 = arith.constant 32 : index
    %c0_5 = arith.constant 0 : index
    %6 = vector.load %arg3[%c32, %c0_5] : memref<288x512xf32, #tpu.memory_space<vmem>>, vector<8x512xf32>
    %7 = arith.mulf %5, %6 : vector<8x512xf32>
    %c8 = arith.constant 8 : index
    %c0_6 = arith.constant 0 : index
    %8 = vector.load %arg10[%c8, %c0_6] : memref<288x512xf32, #tpu.memory_space<vmem>>, vector<8x512xf32>
    tpu.vector_store %arg10[%c8, %c0_6], %7 {strides = array<i32>} : memref<288x512xf32, #tpu.memory_space<vmem>>, vector<8x512xf32>,
    %c15_i32 = arith.constant 15 : i32
    %9 = tpu.dynamic_rotate %0 by %c15_i32 dim 1 : vector<8x512xf32>, i32 -> vector<8x512xf32>
    %c64 = arith.constant 64 : index
    %c0_7 = arith.constant 0 : index
    %10 = vector.load %arg3[%c64, %c0_7] : memref<288x512xf32, #tpu.memory_space<vmem>>, vector<8x512xf32>
    %11 = arith.mulf %9, %10 : vector<8x512xf32>
    %c16 = arith.constant 16 : index
    %c0_8 = arith.constant 0 : index
    %12 = vector.load %arg10[%c16, %c0_8] : memref<288x512xf32, #tpu.memory_space<vmem>>, vector<8x512xf32>
    tpu.vector_store %arg10[%c16, %c0_8], %11 {strides = array<i32>} : memref<288x512xf32, #tpu.memory_space<vmem>>, vector<8x512xf32>,
    %c1_i32 = arith.constant 1 : i32
    %13 = tpu.dynamic_rotate %0 by %c1_i32 dim 1 : vector<8x512xf32>, i32 -> vector<8x512xf32>
    %c96 = arith.constant 96 : index
    %c0_9 = arith.constant 0 : index
    %14 = vector.load %arg3[%c96, %c0_9] : memref<288x512xf32, #tpu.memory_space<vmem>>, vector<8x512xf32>
    %15 = arith.mulf %13, %14 : vector<8x512xf32>
    %c24 = arith.constant 24 : index
    %c0_10 = arith.constant 0 : index
    %16 = vector.load %arg10[%c24, %c0_10] : memref<288x512xf32, #tpu.memory_space<vmem>>, vector<8x512xf32>
    tpu.vector_store %arg10[%c24, %c0_10], %15 {strides = array<i32>} : memref<288x512xf32, #tpu.memory_space<vmem>>, vector<8x512xf32>,
    %c32_11 = arith.constant 32 : index
    %c0_12 = arith.constant 0 : index
    %17 = vector.load %arg10[%c32_11, %c0_12] : memref<288x512xf32, #tpu.memory_space<vmem>>, vector<8x512xf32>
    tpu.vector_store %arg10[%c32_11, %c0_12], %0 {strides = array<i32>} : memref<288x512xf32, #tpu.memory_space<vmem>>, vector<8x512xf32>,
    %c511_i32 = arith.constant 511 : i32
    %18 = tpu.dynamic_rotate %0 by %c511_i32 dim 1 : vector<8x512xf32>, i32 -> vector<8x512xf32>
    %c160 = arith.constant 160 : index
    %c0_13 = arith.constant 0 : index
    %19 = vector.load %arg3[%c160, %c0_13] : memref<288x512xf32, #tpu.memory_space<vmem>>, vector<8x512xf32>
    %20 = arith.mulf %18, %19 : vector<8x512xf32>
    %c40 = arith.constant 40 : index
    %c0_14 = arith.constant 0 : index
    %21 = vector.load %arg10[%c40, %c0_14] : memref<288x512xf32, #tpu.memory_space<vmem>>, vector<8x512xf32>
    tpu.vector_store %arg10[%c40, %c0_14], %20 {strides = array<i32>} : memref<288x512xf32, #tpu.memory_space<vmem>>, vector<8x512xf32>,
    %c497_i32 = arith.constant 497 : i32
    %22 = tpu.dynamic_rotate %0 by %c497_i32 dim 1 : vector<8x512xf32>, i32 -> vector<8x512xf32>
    %c192 = arith.constant 192 : index
    %c0_15 = arith.constant 0 : index
    %23 = vector.load %arg3[%c192, %c0_15] : memref<288x512xf32, #tpu.memory_space<vmem>>, vector<8x512xf32>
    %24 = arith.mulf %22, %23 : vector<8x512xf32>
    %c48 = arith.constant 48 : index
    %c0_16 = arith.constant 0 : index
    %25 = vector.load %arg10[%c48, %c0_16] : memref<288x512xf32, #tpu.memory_space<vmem>>, vector<8x512xf32>
    tpu.vector_store %arg10[%c48, %c0_16], %24 {strides = array<i32>} : memref<288x512xf32, #tpu.memory_space<vmem>>, vector<8x512xf32>,
    %c496_i32 = arith.constant 496 : i32
    %26 = tpu.dynamic_rotate %0 by %c496_i32 dim 1 : vector<8x512xf32>, i32 -> vector<8x512xf32>
    %c224 = arith.constant 224 : index
    %c0_17 = arith.constant 0 : index
    %27 = vector.load %arg3[%c224, %c0_17] : memref<288x512xf32, #tpu.memory_space<vmem>>, vector<8x512xf32>
    %28 = arith.mulf %26, %27 : vector<8x512xf32>
    %c56 = arith.constant 56 : index
    %c0_18 = arith.constant 0 : index
    %29 = vector.load %arg10[%c56, %c0_18] : memref<288x512xf32, #tpu.memory_space<vmem>>, vector<8x512xf32>
    tpu.vector_store %arg10[%c56, %c0_18], %28 {strides = array<i32>} : memref<288x512xf32, #tpu.memory_space<vmem>>, vector<8x512xf32>,
    %c495_i32 = arith.constant 495 : i32
    %30 = tpu.dynamic_rotate %0 by %c495_i32 dim 1 : vector<8x512xf32>, i32 -> vector<8x512xf32>
    %c256 = arith.constant 256 : index
    %c0_19 = arith.constant 0 : index
    %31 = vector.load %arg3[%c256, %c0_19] : memref<288x512xf32, #tpu.memory_space<vmem>>, vector<8x512xf32>
    %32 = arith.mulf %30, %31 : vector<8x512xf32>
    %c64_20 = arith.constant 64 : index
    %c0_21 = arith.constant 0 : index
    %33 = vector.load %arg10[%c64_20, %c0_21] : memref<288x512xf32, #tpu.memory_space<vmem>>, vector<8x512xf32>
    tpu.vector_store %arg10[%c64_20, %c0_21], %32 {strides = array<i32>} : memref<288x512xf32, #tpu.memory_space<vmem>>, vector<8x512xf32>,
    %c0_22 = arith.constant 0 : index
    %c0_23 = arith.constant 0 : index
    %34 = vector.load %arg4[%c0_22, %c0_23] : memref<32x72xf32, #tpu.memory_space<vmem>>, vector<32x72xf32>
    %c0_24 = arith.constant 0 : index
    %c0_25 = arith.constant 0 : index
    %35 = vector.load %arg10[%c0_24, %c0_25] : memref<288x512xf32, #tpu.memory_space<vmem>>, vector<72x512xf32>
    %cst = arith.constant dense<0.000000e+00> : vector<32x512xf32>
    %36 = tpu.matmul %34, %35, %cst {dimension_numbers = #tpu.dot_dimension_numbers<[1], [0], [0], [1], [0, 0, 1, 1], [], []>} : vector<32x72xf32>, vector<72x512xf32>, vector<32x512xf32> -> vector<32x512xf32>
    %c0_26 = arith.constant 0 : index
    %c0_27 = arith.constant 0 : index
    %37 = vector.load %arg5[%c0_26, %c0_27] : memref<32x1xf32, #tpu.memory_space<vmem>>, vector<32x1xf32>
    %38 = vector.broadcast %37 : vector<32x1xf32> to vector<32x512xf32>
    %39 = arith.addf %36, %38 : vector<32x512xf32>
    %cst_28 = arith.constant 0.000000e+00 : f32
    %40 = vector.broadcast %cst_28 : f32 to vector<32x512xf32>
    %41 = arith.maximumf %39, %40 : vector<32x512xf32>
    %c17_i32_29 = arith.constant 17 : i32
    %42 = tpu.dynamic_rotate %41 by %c17_i32_29 dim 1 : vector<32x512xf32>, i32 -> vector<32x512xf32>
    %c0_30 = arith.constant 0 : index
    %c0_31 = arith.constant 0 : index
    %43 = vector.load %arg3[%c0_30, %c0_31] : memref<288x512xf32, #tpu.memory_space<vmem>>, vector<32x512xf32>
    %44 = arith.mulf %42, %43 : vector<32x512xf32>
    %c0_32 = arith.constant 0 : index
    %c0_33 = arith.constant 0 : index
    %45 = vector.load %arg10[%c0_32, %c0_33] : memref<288x512xf32, #tpu.memory_space<vmem>>, vector<32x512xf32>
    tpu.vector_store %arg10[%c0_32, %c0_33], %44 {strides = array<i32>} : memref<288x512xf32, #tpu.memory_space<vmem>>, vector<32x512xf32>,
    %c16_i32_34 = arith.constant 16 : i32
    %46 = tpu.dynamic_rotate %41 by %c16_i32_34 dim 1 : vector<32x512xf32>, i32 -> vector<32x512xf32>
    %c32_35 = arith.constant 32 : index
    %c0_36 = arith.constant 0 : index
    %47 = vector.load %arg3[%c32_35, %c0_36] : memref<288x512xf32, #tpu.memory_space<vmem>>, vector<32x512xf32>
    %48 = arith.mulf %46, %47 : vector<32x512xf32>
    %c32_37 = arith.constant 32 : index
    %c0_38 = arith.constant 0 : index
    %49 = vector.load %arg10[%c32_37, %c0_38] : memref<288x512xf32, #tpu.memory_space<vmem>>, vector<32x512xf32>
    tpu.vector_store %arg10[%c32_37, %c0_38], %48 {strides = array<i32>} : memref<288x512xf32, #tpu.memory_space<vmem>>, vector<32x512xf32>,
    %c15_i32_39 = arith.constant 15 : i32
    %50 = tpu.dynamic_rotate %41 by %c15_i32_39 dim 1 : vector<32x512xf32>, i32 -> vector<32x512xf32>
    %c64_40 = arith.constant 64 : index
    %c0_41 = arith.constant 0 : index
    %51 = vector.load %arg3[%c64_40, %c0_41] : memref<288x512xf32, #tpu.memory_space<vmem>>, vector<32x512xf32>
    %52 = arith.mulf %50, %51 : vector<32x512xf32>
    %c64_42 = arith.constant 64 : index
    %c0_43 = arith.constant 0 : index
    %53 = vector.load %arg10[%c64_42, %c0_43] : memref<288x512xf32, #tpu.memory_space<vmem>>, vector<32x512xf32>
    tpu.vector_store %arg10[%c64_42, %c0_43], %52 {strides = array<i32>} : memref<288x512xf32, #tpu.memory_space<vmem>>, vector<32x512xf32>,
    %c1_i32_44 = arith.constant 1 : i32
    %54 = tpu.dynamic_rotate %41 by %c1_i32_44 dim 1 : vector<32x512xf32>, i32 -> vector<32x512xf32>
    %c96_45 = arith.constant 96 : index
    %c0_46 = arith.constant 0 : index
    %55 = vector.load %arg3[%c96_45, %c0_46] : memref<288x512xf32, #tpu.memory_space<vmem>>, vector<32x512xf32>
    %56 = arith.mulf %54, %55 : vector<32x512xf32>
    %c96_47 = arith.constant 96 : index
    %c0_48 = arith.constant 0 : index
    %57 = vector.load %arg10[%c96_47, %c0_48] : memref<288x512xf32, #tpu.memory_space<vmem>>, vector<32x512xf32>
    tpu.vector_store %arg10[%c96_47, %c0_48], %56 {strides = array<i32>} : memref<288x512xf32, #tpu.memory_space<vmem>>, vector<32x512xf32>,
    %c128 = arith.constant 128 : index
    %c0_49 = arith.constant 0 : index
    %58 = vector.load %arg10[%c128, %c0_49] : memref<288x512xf32, #tpu.memory_space<vmem>>, vector<32x512xf32>
    tpu.vector_store %arg10[%c128, %c0_49], %41 {strides = array<i32>} : memref<288x512xf32, #tpu.memory_space<vmem>>, vector<32x512xf32>,
    %c511_i32_50 = arith.constant 511 : i32
    %59 = tpu.dynamic_rotate %41 by %c511_i32_50 dim 1 : vector<32x512xf32>, i32 -> vector<32x512xf32>
    %c160_51 = arith.constant 160 : index
    %c0_52 = arith.constant 0 : index
    %60 = vector.load %arg3[%c160_51, %c0_52] : memref<288x512xf32, #tpu.memory_space<vmem>>, vector<32x512xf32>
    %61 = arith.mulf %59, %60 : vector<32x512xf32>
    %c160_53 = arith.constant 160 : index
    %c0_54 = arith.constant 0 : index
    %62 = vector.load %arg10[%c160_53, %c0_54] : memref<288x512xf32, #tpu.memory_space<vmem>>, vector<32x512xf32>
    tpu.vector_store %arg10[%c160_53, %c0_54], %61 {strides = array<i32>} : memref<288x512xf32, #tpu.memory_space<vmem>>, vector<32x512xf32>,
    %c497_i32_55 = arith.constant 497 : i32
    %63 = tpu.dynamic_rotate %41 by %c497_i32_55 dim 1 : vector<32x512xf32>, i32 -> vector<32x512xf32>
    %c192_56 = arith.constant 192 : index
    %c0_57 = arith.constant 0 : index
    %64 = vector.load %arg3[%c192_56, %c0_57] : memref<288x512xf32, #tpu.memory_space<vmem>>, vector<32x512xf32>
    %65 = arith.mulf %63, %64 : vector<32x512xf32>
    %c192_58 = arith.constant 192 : index
    %c0_59 = arith.constant 0 : index
    %66 = vector.load %arg10[%c192_58, %c0_59] : memref<288x512xf32, #tpu.memory_space<vmem>>, vector<32x512xf32>
    tpu.vector_store %arg10[%c192_58, %c0_59], %65 {strides = array<i32>} : memref<288x512xf32, #tpu.memory_space<vmem>>, vector<32x512xf32>,
    %c496_i32_60 = arith.constant 496 : i32
    %67 = tpu.dynamic_rotate %41 by %c496_i32_60 dim 1 : vector<32x512xf32>, i32 -> vector<32x512xf32>
    %c224_61 = arith.constant 224 : index
    %c0_62 = arith.constant 0 : index
    %68 = vector.load %arg3[%c224_61, %c0_62] : memref<288x512xf32, #tpu.memory_space<vmem>>, vector<32x512xf32>
    %69 = arith.mulf %67, %68 : vector<32x512xf32>
    %c224_63 = arith.constant 224 : index
    %c0_64 = arith.constant 0 : index
    %70 = vector.load %arg10[%c224_63, %c0_64] : memref<288x512xf32, #tpu.memory_space<vmem>>, vector<32x512xf32>
    tpu.vector_store %arg10[%c224_63, %c0_64], %69 {strides = array<i32>} : memref<288x512xf32, #tpu.memory_space<vmem>>, vector<32x512xf32>,
    %c495_i32_65 = arith.constant 495 : i32
    %71 = tpu.dynamic_rotate %41 by %c495_i32_65 dim 1 : vector<32x512xf32>, i32 -> vector<32x512xf32>
    %c256_66 = arith.constant 256 : index
    %c0_67 = arith.constant 0 : index
    %72 = vector.load %arg3[%c256_66, %c0_67] : memref<288x512xf32, #tpu.memory_space<vmem>>, vector<32x512xf32>
    %73 = arith.mulf %71, %72 : vector<32x512xf32>
    %c256_68 = arith.constant 256 : index
    %c0_69 = arith.constant 0 : index
    %74 = vector.load %arg10[%c256_68, %c0_69] : memref<288x512xf32, #tpu.memory_space<vmem>>, vector<32x512xf32>
    tpu.vector_store %arg10[%c256_68, %c0_69], %73 {strides = array<i32>} : memref<288x512xf32, #tpu.memory_space<vmem>>, vector<32x512xf32>,
    %c0_70 = arith.constant 0 : index
    %c0_71 = arith.constant 0 : index
    %75 = vector.load %arg6[%c0_70, %c0_71] : memref<32x288xf32, #tpu.memory_space<vmem>>, vector<32x288xf32>
    %c0_72 = arith.constant 0 : index
    %c0_73 = arith.constant 0 : index
    %76 = vector.load %arg10[%c0_72, %c0_73] : memref<288x512xf32, #tpu.memory_space<vmem>>, vector<288x512xf32>
    %cst_74 = arith.constant dense<0.000000e+00> : vector<32x512xf32>
    %77 = tpu.matmul %75, %76, %cst_74 {dimension_numbers = #tpu.dot_dimension_numbers<[1], [0], [0], [1], [0, 0, 1, 1], [], []>} : vector<32x288xf32>, vector<288x512xf32>, vector<32x512xf32> -> vector<32x512xf32>
    %c0_75 = arith.constant 0 : index
    %c0_76 = arith.constant 0 : index
    %78 = vector.load %arg7[%c0_75, %c0_76] : memref<32x1xf32, #tpu.memory_space<vmem>>, vector<32x1xf32>
    %79 = vector.broadcast %78 : vector<32x1xf32> to vector<32x512xf32>
    %80 = arith.addf %77, %79 : vector<32x512xf32>
    %cst_77 = arith.constant 0.000000e+00 : f32
    %81 = vector.broadcast %cst_77 : f32 to vector<32x512xf32>
    %82 = arith.maximumf %80, %81 : vector<32x512xf32>
    %c17_i32_78 = arith.constant 17 : i32
    %83 = tpu.dynamic_rotate %82 by %c17_i32_78 dim 1 : vector<32x512xf32>, i32 -> vector<32x512xf32>
    %c0_79 = arith.constant 0 : index
    %c0_80 = arith.constant 0 : index
    %84 = vector.load %arg3[%c0_79, %c0_80] : memref<288x512xf32, #tpu.memory_space<vmem>>, vector<32x512xf32>
    %85 = arith.mulf %83, %84 : vector<32x512xf32>
    %c0_81 = arith.constant 0 : index
    %c0_82 = arith.constant 0 : index
    %86 = vector.load %arg10[%c0_81, %c0_82] : memref<288x512xf32, #tpu.memory_space<vmem>>, vector<32x512xf32>
    tpu.vector_store %arg10[%c0_81, %c0_82], %85 {strides = array<i32>} : memref<288x512xf32, #tpu.memory_space<vmem>>, vector<32x512xf32>,
    %c16_i32_83 = arith.constant 16 : i32
    %87 = tpu.dynamic_rotate %82 by %c16_i32_83 dim 1 : vector<32x512xf32>, i32 -> vector<32x512xf32>
    %c32_84 = arith.constant 32 : index
    %c0_85 = arith.constant 0 : index
    %88 = vector.load %arg3[%c32_84, %c0_85] : memref<288x512xf32, #tpu.memory_space<vmem>>, vector<32x512xf32>
    %89 = arith.mulf %87, %88 : vector<32x512xf32>
    %c32_86 = arith.constant 32 : index
    %c0_87 = arith.constant 0 : index
    %90 = vector.load %arg10[%c32_86, %c0_87] : memref<288x512xf32, #tpu.memory_space<vmem>>, vector<32x512xf32>
    tpu.vector_store %arg10[%c32_86, %c0_87], %89 {strides = array<i32>} : memref<288x512xf32, #tpu.memory_space<vmem>>, vector<32x512xf32>,
    %c15_i32_88 = arith.constant 15 : i32
    %91 = tpu.dynamic_rotate %82 by %c15_i32_88 dim 1 : vector<32x512xf32>, i32 -> vector<32x512xf32>
    %c64_89 = arith.constant 64 : index
    %c0_90 = arith.constant 0 : index
    %92 = vector.load %arg3[%c64_89, %c0_90] : memref<288x512xf32, #tpu.memory_space<vmem>>, vector<32x512xf32>
    %93 = arith.mulf %91, %92 : vector<32x512xf32>
    %c64_91 = arith.constant 64 : index
    %c0_92 = arith.constant 0 : index
    %94 = vector.load %arg10[%c64_91, %c0_92] : memref<288x512xf32, #tpu.memory_space<vmem>>, vector<32x512xf32>
    tpu.vector_store %arg10[%c64_91, %c0_92], %93 {strides = array<i32>} : memref<288x512xf32, #tpu.memory_space<vmem>>, vector<32x512xf32>,
    %c1_i32_93 = arith.constant 1 : i32
    %95 = tpu.dynamic_rotate %82 by %c1_i32_93 dim 1 : vector<32x512xf32>, i32 -> vector<32x512xf32>
    %c96_94 = arith.constant 96 : index
    %c0_95 = arith.constant 0 : index
    %96 = vector.load %arg3[%c96_94, %c0_95] : memref<288x512xf32, #tpu.memory_space<vmem>>, vector<32x512xf32>
    %97 = arith.mulf %95, %96 : vector<32x512xf32>
    %c96_96 = arith.constant 96 : index
    %c0_97 = arith.constant 0 : index
    %98 = vector.load %arg10[%c96_96, %c0_97] : memref<288x512xf32, #tpu.memory_space<vmem>>, vector<32x512xf32>
    tpu.vector_store %arg10[%c96_96, %c0_97], %97 {strides = array<i32>} : memref<288x512xf32, #tpu.memory_space<vmem>>, vector<32x512xf32>,
    %c128_98 = arith.constant 128 : index
    %c0_99 = arith.constant 0 : index
    %99 = vector.load %arg10[%c128_98, %c0_99] : memref<288x512xf32, #tpu.memory_space<vmem>>, vector<32x512xf32>
    tpu.vector_store %arg10[%c128_98, %c0_99], %82 {strides = array<i32>} : memref<288x512xf32, #tpu.memory_space<vmem>>, vector<32x512xf32>,
    %c511_i32_100 = arith.constant 511 : i32
    %100 = tpu.dynamic_rotate %82 by %c511_i32_100 dim 1 : vector<32x512xf32>, i32 -> vector<32x512xf32>
    %c160_101 = arith.constant 160 : index
    %c0_102 = arith.constant 0 : index
    %101 = vector.load %arg3[%c160_101, %c0_102] : memref<288x512xf32, #tpu.memory_space<vmem>>, vector<32x512xf32>
    %102 = arith.mulf %100, %101 : vector<32x512xf32>
    %c160_103 = arith.constant 160 : index
    %c0_104 = arith.constant 0 : index
    %103 = vector.load %arg10[%c160_103, %c0_104] : memref<288x512xf32, #tpu.memory_space<vmem>>, vector<32x512xf32>
    tpu.vector_store %arg10[%c160_103, %c0_104], %102 {strides = array<i32>} : memref<288x512xf32, #tpu.memory_space<vmem>>, vector<32x512xf32>,
    %c497_i32_105 = arith.constant 497 : i32
    %104 = tpu.dynamic_rotate %82 by %c497_i32_105 dim 1 : vector<32x512xf32>, i32 -> vector<32x512xf32>
    %c192_106 = arith.constant 192 : index
    %c0_107 = arith.constant 0 : index
    %105 = vector.load %arg3[%c192_106, %c0_107] : memref<288x512xf32, #tpu.memory_space<vmem>>, vector<32x512xf32>
    %106 = arith.mulf %104, %105 : vector<32x512xf32>
    %c192_108 = arith.constant 192 : index
    %c0_109 = arith.constant 0 : index
    %107 = vector.load %arg10[%c192_108, %c0_109] : memref<288x512xf32, #tpu.memory_space<vmem>>, vector<32x512xf32>
    tpu.vector_store %arg10[%c192_108, %c0_109], %106 {strides = array<i32>} : memref<288x512xf32, #tpu.memory_space<vmem>>, vector<32x512xf32>,
    %c496_i32_110 = arith.constant 496 : i32
    %108 = tpu.dynamic_rotate %82 by %c496_i32_110 dim 1 : vector<32x512xf32>, i32 -> vector<32x512xf32>
    %c224_111 = arith.constant 224 : index
    %c0_112 = arith.constant 0 : index
    %109 = vector.load %arg3[%c224_111, %c0_112] : memref<288x512xf32, #tpu.memory_space<vmem>>, vector<32x512xf32>
    %110 = arith.mulf %108, %109 : vector<32x512xf32>
    %c224_113 = arith.constant 224 : index
    %c0_114 = arith.constant 0 : index
    %111 = vector.load %arg10[%c224_113, %c0_114] : memref<288x512xf32, #tpu.memory_space<vmem>>, vector<32x512xf32>
    tpu.vector_store %arg10[%c224_113, %c0_114], %110 {strides = array<i32>} : memref<288x512xf32, #tpu.memory_space<vmem>>, vector<32x512xf32>,
    %c495_i32_115 = arith.constant 495 : i32
    %112 = tpu.dynamic_rotate %82 by %c495_i32_115 dim 1 : vector<32x512xf32>, i32 -> vector<32x512xf32>
    %c256_116 = arith.constant 256 : index
    %c0_117 = arith.constant 0 : index
    %113 = vector.load %arg3[%c256_116, %c0_117] : memref<288x512xf32, #tpu.memory_space<vmem>>, vector<32x512xf32>
    %114 = arith.mulf %112, %113 : vector<32x512xf32>
    %c256_118 = arith.constant 256 : index
    %c0_119 = arith.constant 0 : index
    %115 = vector.load %arg10[%c256_118, %c0_119] : memref<288x512xf32, #tpu.memory_space<vmem>>, vector<32x512xf32>
    tpu.vector_store %arg10[%c256_118, %c0_119], %114 {strides = array<i32>} : memref<288x512xf32, #tpu.memory_space<vmem>>, vector<32x512xf32>,
    %c0_120 = arith.constant 0 : index
    %c0_121 = arith.constant 0 : index
    %116 = vector.load %arg8[%c0_120, %c0_121] : memref<4x288xf32, #tpu.memory_space<vmem>>, vector<4x288xf32>
    %c0_122 = arith.constant 0 : index
    %c0_123 = arith.constant 0 : index
    %117 = vector.load %arg10[%c0_122, %c0_123] : memref<288x512xf32, #tpu.memory_space<vmem>>, vector<288x512xf32>
    %cst_124 = arith.constant dense<0.000000e+00> : vector<4x512xf32>
    %118 = tpu.matmul %116, %117, %cst_124 {dimension_numbers = #tpu.dot_dimension_numbers<[1], [0], [0], [1], [0, 0, 1, 1], [], []>} : vector<4x288xf32>, vector<288x512xf32>, vector<4x512xf32> -> vector<4x512xf32>
    %c0_125 = arith.constant 0 : index
    %c0_126 = arith.constant 0 : index
    %119 = vector.load %arg0[%c0_125, %c0_126] : memref<4x512xf32, #tpu.memory_space<vmem>>, vector<4x512xf32>
    %c0_127 = arith.constant 0 : index
    %c0_128 = arith.constant 0 : index
    %120 = vector.load %arg2[%c0_127, %c0_128] : memref<4x512xf32, #tpu.memory_space<vmem>>, vector<4x512xf32>
    %cst_129 = arith.constant 1.000000e+00 : f32
    %121 = vector.broadcast %cst_129 : f32 to vector<4x512xf32>
    %122 = arith.subf %121, %120 : vector<4x512xf32>
    %123 = arith.mulf %118, %122 : vector<4x512xf32>
    %124 = arith.addf %119, %123 : vector<4x512xf32>
    %c0_130 = arith.constant 0 : index
    %c0_131 = arith.constant 0 : index
    %125 = vector.load %arg9[%c0_130, %c0_131] : memref<4x512xf32, #tpu.memory_space<vmem>>, vector<4x512xf32>
    tpu.vector_store %arg9[%c0_130, %c0_131], %124 {strides = array<i32>} : memref<4x512xf32, #tpu.memory_space<vmem>>, vector<4x512xf32>,
    return
  }
}

</mosaic_0001>

<bundles_post_ra>
// kernel: recalibration_forward.1
= control target key start
LH: loop header
LB: loop body
LE: loop exit
PB: predicated region body
PF: predicated region fallthrough
CT: control target
= control target key end

     0   :  { %14 = vsyncpa [#allocation4], 0  ;;  %s3120_s12 = smov [#allocation3]   ;;  %s3121_s14 = smov 512   ;;  %s5835_s0 = inlined_call_operand.vmem [shape: f32[4,512], index: 0, kind: input, shape index: {}]   ;;  %s5836_s1 = inlined_call_operand.vmem [shape: f32[8,512], index: 1, kind: input, shape index: {}]   ;;  %s5837_s2 = inlined_call_operand.vmem [shape: f32[4,512], index: 2, kind: input, shape index: {}]   ;;  %s5838_s3 = inlined_call_operand.hbm [shape: f32[288,512], index: 3, kind: input, shape index: {}]   ;;  %s5839_s4 = inlined_call_operand.vmem [shape: f32[32,72], index: 4, kind: input, shape index: {}]   ;;  %s5840_s5 = inlined_call_operand.vmem [shape: f32[32,1], index: 5, kind: input, shape index: {}]   ;;  %s5841_s6 = inlined_call_operand.vmem [shape: f32[32,288], index: 6, kind: input, shape index: {}]   ;;  %s5842_s7 = inlined_call_operand.vmem [shape: f32[32,1], index: 7, kind: input, shape index: {}]   ;;  %s5843_s8 = inlined_call_operand.vmem [shape: f32[4,288], index: 8, kind: input, shape index: {}]   ;;  %s5844_s9 = inlined_call_operand.vmem [shape: f32[4,512], index: 9, kind: output, shape index: {}]  }
   0x1   :  { %s25_s11 = sshll.u32 %s5838_s3, 4  ;;  %s27_s13 = sshll.u32 %s3120_s12, 4  ;;  %s26_s11 = int_to_ptr.hbm [resolvable:$true] %s25_s11  ;;  %s28_s13 = int_to_ptr.vmem [resolvable:$true] %s27_s13 }
   0x2   :  { %s3122_s15 = smov 32  }
   0x3   :  { %33 = dma.hbm_to_vmem [thread:$0]  %s26_s11, 18432, %s28_s13, [#allocation4], %s3121_s14, %s3121_s14, %s3122_s15  }
   0x4   :  { %3118 = dma.done.wait [#allocation4], 18432  }
   0x5   :  { %3119 = vsyncadd [#allocation4], 4294948864  ;;  %v3188_v0 = vld [vmem:[%s5836_s1 + $0x10] sm:$0xff]  ;;  %v3193_v1 = vld [vmem:[%s5836_s1] sm:$0xff]  ;;  %s3123_s3 = smov 17   ;;  %s3124_s20 = smov 16   ;;  %v60_v31 = vlaneseq }
   0x6   :  { %56 = vrot.lane.b32.xlu1 %v3188_v0, %s3123_s3  ;;  %52 = vrot.lane.b32.xlu0 %v3193_v1, %s3123_s3  ;;  %v3204_v2 = vld [vmem:[%s5836_s1 + $0x18] sm:$0xff]  ;;  %v3209_v3 = vld [vmem:[%s5836_s1 + $0x8] sm:$0xff]  ;;  %s3125_s25 = smov 15   ;;  %s3126_s1 = smov 1   ;;  %v247_v47 = vld [vmem:[#allocation3 + $0x408] sm:$0xff]  ;;  %vm322_vm8 = vcmask 588800  }
   0x7   :  { %79 = vrot.lane.b32.xlu2 %v3193_v1, %s3124_s20  ;;  %s3127_s26 = smov 127   ;;  %s3128_s27 = smov 113   ;;  %v3313_v32 = vand.u32 127, %v60_v31  ;;  %v246_v34 = vld [vmem:[#allocation3 + $0x400] sm:$0xff]  ;;  %v248_v48 = vld [vmem:[#allocation3 + $0x410] sm:$0xff]  ;;  %v249_v49 = vld [vmem:[#allocation3 + $0x418] sm:$0xff] }
   0x8   :  { %s3129_s28 = smov 112   ;;  %s3130_s29 = smov 111   ;;  %v221_v39 = vld [vmem:[#allocation3 + $0x380] sm:$0xff]  ;;  %v222_v61 = vld [vmem:[#allocation3 + $0x388] sm:$0xff]  ;;  %vm1431_vm9 = vcmask 261120   ;;  %vm3019_vm10 = vcmask 1043456  }
   0x9   :  { %vm241_vm0 = vcmp.lt.s32.totalorder %v3313_v32, 111  ;;  %vm216_vm1 = vcmp.lt.s32.totalorder %v3313_v32, 112  ;;  %vm191_vm2 = vcmp.lt.s32.totalorder %v3313_v32, 113  ;;  %vm166_vm3 = vcmp.lt.s32.totalorder %v3313_v32, 127  ;;  %v196_v42 = vld [vmem:[#allocation3 + $0x300] sm:$0xff] }
   0xa   :  { %v171_v45 = vld [vmem:[#allocation3 + $0x280] sm:$0xff]  ;;  %vm112_vm4 = vcmp.lt.s32.totalorder %v3313_v32, 15  ;;  %vm137_vm5 = vcmp.lt.s32.totalorder %v3313_v32, 1  ;;  %vm87_vm6 = vcmp.lt.s32.totalorder %v3313_v32, 16  ;;  %vm62_vm7 = vcmp.lt.s32.totalorder %v3313_v32, 17 }
   0xb   :  { %v117_v56 = vld [vmem:[#allocation3 + $0x100] sm:$0xff] }
   0xc   :  { %v3348_v60 = vld [vmem:[#allocation3 + $0x180] sm:$0xff] }
   0xe   :  { %58 = vrot.lane.b32.xlu1 %v3204_v2, %s3123_s3  ;;  %54 = vrot.lane.b32.xlu0 %v3209_v3, %s3123_s3 }
   0xf   :  { %81 = vrot.lane.b32.xlu2 %v3209_v3, %s3124_s20 }
  0x16   :  { %85 = vrot.lane.b32.xlu1 %v3204_v2, %s3124_s20  ;;  %83 = vrot.lane.b32.xlu0 %v3188_v0, %s3124_s20 }
  0x17   :  { %104 = vrot.lane.b32.xlu2 %v3193_v1, %s3125_s25 }
  0x1e   :  { %108 = vrot.lane.b32.xlu1 %v3188_v0, %s3125_s25  ;;  %106 = vrot.lane.b32.xlu0 %v3209_v3, %s3125_s25 }
  0x1f   :  { %110 = vrot.lane.b32.xlu2 %v3204_v2, %s3125_s25 }
  0x26   :  { %131 = vrot.lane.b32.xlu1 %v3209_v3, %s3126_s1  ;;  %129 = vrot.lane.b32.xlu0 %v3193_v1, %s3126_s1 }
  0x27   :  { %133 = vrot.lane.b32.xlu2 %v3188_v0, %s3126_s1 }
  0x2e   :  { %158 = vrot.lane.b32.xlu1 %v3193_v1, %s3127_s26  ;;  %135 = vrot.lane.b32.xlu0 %v3204_v2, %s3126_s1 }
  0x2f   :  { %160 = vrot.lane.b32.xlu2 %v3209_v3, %s3127_s26 }
  0x36   :  { %164 = vrot.lane.b32.xlu1 %v3204_v2, %s3127_s26  ;;  %162 = vrot.lane.b32.xlu0 %v3188_v0, %s3127_s26 }
  0x37   :  { %183 = vrot.lane.b32.xlu2 %v3193_v1, %s3128_s27 }
  0x3e   :  { %187 = vrot.lane.b32.xlu1 %v3188_v0, %s3128_s27  ;;  %185 = vrot.lane.b32.xlu0 %v3209_v3, %s3128_s27 }
  0x3f   :  { %189 = vrot.lane.b32.xlu2 %v3204_v2, %s3128_s27 }
  0x46   :  { %210 = vrot.lane.b32.xlu1 %v3209_v3, %s3129_s28  ;;  %208 = vrot.lane.b32.xlu0 %v3193_v1, %s3129_s28 }
  0x47   :  { %212 = vrot.lane.b32.xlu2 %v3188_v0, %s3129_s28 }
  0x4e   :  { %233 = vrot.lane.b32.xlu1 %v3193_v1, %s3130_s29  ;;  %214 = vrot.lane.b32.xlu0 %v3204_v2, %s3129_s28 }
  0x4f   :  { %235 = vrot.lane.b32.xlu2 %v3209_v3, %s3130_s29 }
  0x56   :  { %239 = vrot.lane.b32.xlu1 %v3204_v2, %s3130_s29  ;;  %237 = vrot.lane.b32.xlu0 %v3188_v0, %s3130_s29 }
  0x61   :  { %v3269_v4 = vpop.permute.xlu2 %79 }
  0x69   :  { %v3271_v5 = vpop.permute.xlu2 %81 }
  0x71   :  { %v3277_v8 = vpop.permute.xlu2 %104 }
  0x78   :  { %v3273_v6 = vpop.permute.xlu1 %56  ;;  %v3275_v7 = vpop.permute.xlu0 %52 }
  0x79   :  { %v3283_v11 = vpop.permute.xlu2 %110 }
  0x7a   :  { %v116_v55 = vsel %vm112_vm4, %v3283_v11, %v3277_v8 }
  0x80   :  { %v3279_v9 = vpop.permute.xlu1 %58  ;;  %v3281_v10 = vpop.permute.xlu0 %54 }
  0x81   :  { %v3289_v14 = vpop.permute.xlu2 %133 }
  0x88   :  { %v3285_v12 = vpop.permute.xlu1 %85  ;;  %v3287_v13 = vpop.permute.xlu0 %83 }
  0x89   :  { %v3295_v17 = vpop.permute.xlu2 %160 }
  0x90   :  { %v3291_v15 = vpop.permute.xlu1 %108  ;;  %v3293_v16 = vpop.permute.xlu0 %106 }
  0x91   :  { %v184_v22 = vpop.permute.xlu2 %183 }
  0x98   :  { %v3297_v18 = vpop.permute.xlu1 %131  ;;  %v3299_v19 = vpop.permute.xlu0 %129 }
  0x99   :  { %v3309_v25 = vpop.permute.xlu2 %189 }
  0xa0   :  { %v3301_v20 = vpop.permute.xlu1 %158  ;;  %v3303_v21 = vpop.permute.xlu0 %135 }
  0xa1   :  { %v213_v28 = vpop.permute.xlu2 %212  ;;  %v169_v44 = vsel %vm166_vm3, %v3301_v20, %v3295_v17  ;;  %v141_v53 = vsel %vm137_vm5, %v3303_v21, %v3299_v19 }
  0xa2   :  { %v175_v52 = vmul.f32 %v171_v45, %v169_v44  ;;  %v92_v44 = vld [vmem:[#allocation3 + $0x80] sm:$0xff]  ;;  %v172_v45 = vld [vmem:[#allocation3 + $0x288] sm:$0xff] }
  0xa8   :  { %v3305_v23 = vpop.permute.xlu1 %164  ;;  %v3307_v24 = vpop.permute.xlu0 %162 }
  0xa9   :  { %v236_v33 = vpop.permute.xlu2 %235 }
  0xb0   :  { %v3311_v26 = vpop.permute.xlu1 %187  ;;  %v186_v27 = vpop.permute.xlu0 %185 }
  0xb1   :  { %v194_v41 = vsel %vm191_vm2, %v184_v22, %v186_v27 }
  0xb2   :  { %v200_v46 = vmul.f32 %v196_v42, %v194_v41  ;;  %v198_v41 = vld [vmem:[#allocation3 + $0x310] sm:$0xff]  ;;  %v199_v42 = vld [vmem:[#allocation3 + $0x318] sm:$0xff] }
  0xb8   :  { %v211_v29 = vpop.permute.xlu1 %210  ;;  %v209_v30 = vpop.permute.xlu0 %208 }
  0xb9   :  { %v219_v38 = vsel %vm216_vm1, %v209_v30, %v211_v29  ;;  %v218_v54 = vsel %vm216_vm1, %v211_v29, %v213_v28 }
  0xba   :  { %v225_v43 = vmul.f32 %v221_v39, %v219_v38  ;;  %v121_v38 = vmul.f32 %v117_v56, %v116_v55  ;;  %v197_v39 = vld [vmem:[#allocation3 + $0x308] sm:$0xff]  ;;  %v139_v56 = vsel %vm137_vm5, %v3297_v18, %v3289_v14 }
  0xc0   :  { %v234_v35 = vpop.permute.xlu1 %233  ;;  %v215_v36 = vpop.permute.xlu0 %214 }
  0xc1   :  { %v244_v37 = vsel %vm241_vm0, %v234_v35, %v236_v33  ;;  %v217_v62 = vsel %vm216_vm1, %v213_v28, %v215_v36  ;;  %v91_v28 = vsel %vm87_vm6, %v3285_v12, %v3269_v4 }
  0xc2   :  { %v250_v40 = vmul.f32 %v246_v34, %v244_v37  ;;  %v223_v34 = vld [vmem:[#allocation3 + $0x390] sm:$0xff]  ;;  %v224_v37 = vld [vmem:[#allocation3 + $0x398] sm:$0xff] }
  0xc4   :  { %342 = vmatpush.msra.mxu0 %v250_v40  ;;  %v195_v40 = vsel %vm191_vm2, %v3309_v25, %v184_v22  ;;  %v227_v22 = vmul.f32 %v223_v34, %v217_v62  ;;  %v119_v62 = vld [vmem:[#allocation3 + $0x110] sm:$0xff]  ;;  %v3426_v34 = vld [vmem:[#allocation3 + $0x88] sm:$0xff] }
  0xc6   :  { %343 = vmatpush.msra.mxu0 %v225_v43 }
  0xc8   :  { %v240_v50 = vpop.permute.xlu1 %239  ;;  %344 = vmatpush.msra.mxu0 %v200_v46  ;;  %v238_v51 = vpop.permute.xlu0 %237 }
  0xc9   :  { %v243_v57 = vsel %vm241_vm0, %v236_v33, %v238_v51  ;;  %v242_v58 = vsel %vm241_vm0, %v238_v51, %v240_v50  ;;  %v245_v59 = vsel %vm241_vm0, %v240_v50, %v234_v35  ;;  %v220_v33 = vsel %vm216_vm1, %v215_v36, %v209_v30  ;;  %v67_v51 = vld [vmem:[#allocation3] sm:$0xff] }
  0xca   :  { %345 = vmatpush.msra.mxu0 %v175_v52  ;;  %v251_v63 = vmul.f32 %v247_v47, %v243_v57  ;;  %v252_v29 = vmul.f32 %v248_v48, %v242_v58  ;;  %v253_v31 = vmul.f32 %v249_v49, %v245_v59  ;;  %v193_v35 = vsel %vm191_vm2, %v186_v27, %v3311_v26  ;;  %v174_v48 = vld [vmem:[#allocation3 + $0x298] sm:$0xff]  ;;  %v144_v57 = vld [vmem:[#allocation3 + $0x190] sm:$0xff] }
  0xcb   :  { %v146_v30 = vmul.f32 %v3348_v60, %v141_v53  ;;  %v226_v36 = vmul.f32 %v222_v61, %v218_v54  ;;  %v192_v27 = vsel %vm191_vm2, %v3311_v26, %v3309_v25  ;;  %v228_v43 = vmul.f32 %v224_v37, %v220_v33  ;;  %v173_v26 = vld [vmem:[#allocation3 + $0x290] sm:$0xff]  ;;  %v145_v59 = vld [vmem:[#allocation3 + $0x198] sm:$0xff] }
  0xcc   :  { %346 = vmatpush.msra.mxu0 %v3193_v1  ;;  %371 = vmatpush.msra.mxu1 %v251_v63  ;;  %v168_v1 = vsel %vm166_vm3, %v3295_v17, %v3307_v24  ;;  %v201_v46 = vmul.f32 %v197_v39, %v193_v35  ;;  %v167_v25 = vsel %vm166_vm3, %v3307_v24, %v3305_v23  ;;  %v70_v39 = vld [vmem:[#allocation3 + $0x18] sm:$0xff] }
  0xcd   :  { %400 = vmatpush.msra.mxu2 %v252_v29  ;;  %429 = vmatpush.msra.mxu3 %v253_v31  ;;  %v170_v47 = vsel %vm166_vm3, %v3305_v23, %v3301_v20  ;;  %v202_v49 = vmul.f32 %v198_v41, %v192_v27  ;;  %v203_v17 = vmul.f32 %v199_v42, %v195_v40  ;;  %v3391_v23 = vld [vmem:[#allocation3 + $0x188] sm:$0xff]  ;;  %v120_v29 = vld [vmem:[#allocation3 + $0x118] sm:$0xff]  ;;  %v3131_v40 = vmov 0   ;;  %v259_v41 = vld [vmem:[%s5839_s4 + $0x8] sm:$0xff] }
  0xce   :  { %347 = vmatpush.msra.mxu0 %v146_v30  ;;  %372 = vmatpush.msra.mxu1 %v226_v36  ;;  %v66_v50 = vsel %vm62_vm7, %v3279_v9, %v3275_v7  ;;  %v96_v24 = vmul.f32 %v92_v44, %v91_v28  ;;  %v176_v52 = vmul.f32 %v172_v45, %v168_v1  ;;  %v301_v42 = vld [vmem:[%s5840_s5 + $0x18] sm:$0xff] }
  0xcf   :  { %401 = vmatpush.msra.mxu2 %v227_v22  ;;  %430 = vmatpush.msra.mxu3 %v228_v43  ;;  %v177_v53 = vmul.f32 %v173_v26, %v167_v25  ;;  %v178_v54 = vmul.f32 %v174_v48, %v170_v47  ;;  %v140_v20 = vsel %vm137_vm5, %v3299_v19, %v3297_v18  ;;  %v258_v19 = vld [vmem:[%s5839_s4] sm:$0xff]  ;;  %v3408_v18 = vld [vmem:[#allocation3 + $0x108] sm:$0xff]  ;;  %v261_v43 = vld [vmem:[%s5839_s4 + $0x18] sm:$0xff] }
  0xd0   :  { %348 = vmatpush.msra.mxu0 %v121_v38  ;;  %373 = vmatpush.msra.mxu1 %v201_v46  ;;  %v71_v55 = vmul.f32 %v67_v51, %v66_v50  ;;  %v138_v58 = vsel %vm137_vm5, %v3289_v14, %v3303_v21  ;;  %v115_v61 = vsel %vm112_vm4, %v3277_v8, %v3293_v16  ;;  %v3442_v38 = vld [vmem:[#allocation3 + $0x8] sm:$0xff] }
  0xd1   :  { %402 = vmatpush.msra.mxu2 %v202_v49  ;;  %431 = vmatpush.msra.mxu3 %v203_v17  ;;  %v147_v14 = vmul.f32 %v3391_v23, %v140_v20  ;;  %v114_v21 = vsel %vm112_vm4, %v3293_v16, %v3291_v15  ;;  %v113_v63 = vsel %vm112_vm4, %v3291_v15, %v3283_v11  ;;  %v95_v15 = vld [vmem:[#allocation3 + $0x98] sm:$0xff]  ;;  %v260_v22 = vld [vmem:[%s5839_s4 + $0x10] sm:$0xff] }
  0xd2   :  { %349 = vmatpush.msra.mxu0 %v96_v24  ;;  %374 = vmatpush.msra.mxu1 %v176_v52  ;;  %v148_v8 = vmul.f32 %v144_v57, %v139_v56  ;;  %v90_v31 = vsel %vm87_vm6, %v3269_v4, %v3271_v5  ;;  %v122_v16 = vmul.f32 %v3408_v18, %v115_v61 }
  0xd3   :  { %403 = vmatpush.msra.mxu2 %v177_v53  ;;  %432 = vmatpush.msra.mxu3 %v178_v54  ;;  %v88_v11 = vsel %vm87_vm6, %v3287_v13, %v3285_v12  ;;  %v123_v4 = vmul.f32 %v119_v62, %v114_v21  ;;  %v124_v33 = vmul.f32 %v120_v29, %v113_v63 }
  0xd4   :  { %350 = vmatpush.msra.mxu0 %v71_v55  ;;  %375 = vmatpush.msra.mxu1 %v3209_v3  ;;  %v149_v3 = vmul.f32 %v145_v59, %v138_v58  ;;  %v65_v37 = vsel %vm62_vm7, %v3275_v7, %v3281_v10  ;;  %v97_v35 = vmul.f32 %v3426_v34, %v90_v31 }
  0xd5   :  { %404 = vmatpush.msra.mxu2 %v3188_v0  ;;  %433 = vmatpush.msra.mxu3 %v3204_v2  ;;  %v89_v0 = vsel %vm87_vm6, %v3271_v5, %v3287_v13  ;;  %v94_v2 = vld [vmem:[#allocation3 + $0x90] sm:$0xff]  ;;  %v298_v5 = vld [vmem:[%s5840_s5] sm:$0xff]  ;;  %v64_v12 = vsel %vm62_vm7, %v3281_v10, %v3273_v6  ;;  %v63_v7 = vsel %vm62_vm7, %v3273_v6, %v3279_v9  ;;  %v299_v6 = vld [vmem:[%s5840_s5 + $0x8] sm:$0xff] }
  0xd6   :  { %3033 = vmatmul.msk.f32.vlgmr.msra.gmra.mxu0 %vm322_vm8, %v258_v19  ;;  %376 = vmatpush.msra.mxu1 %v147_v14  ;;  %v69_v13 = vld [vmem:[#allocation3 + $0x10] sm:$0xff]  ;;  %v98_v28 = vmul.f32 %v94_v2, %v89_v0  ;;  %v99_v30 = vmul.f32 %v95_v15, %v88_v11  ;;  %v72_v36 = vmul.f32 %v3442_v38, %v65_v37  ;;  %v300_v9 = vld [vmem:[%s5840_s5 + $0x10] sm:$0xff] }
  0xd7   :  { %405 = vmatpush.msra.mxu2 %v148_v8  ;;  %434 = vmatpush.msra.mxu3 %v149_v3  ;;  %v73_v10 = vmul.f32 %v69_v13, %v64_v12  ;;  %v74_v27 = vmul.f32 %v70_v39, %v63_v7 }
  0xd8   :  { %377 = vmatpush.msra.mxu1 %v122_v16  ;;  %3081 = vset.pattern.permute.xlu2 %v3131_v40 }
  0xd9   :  { %406 = vmatpush.msra.mxu2 %v123_v4  ;;  %435 = vmatpush.msra.mxu3 %v124_v33 }
  0xda   :  { %378 = vmatpush.msra.mxu1 %v97_v35  ;;  %304 = vperm.xlu2 %3081, %v298_v5  }
  0xdb   :  { %407 = vmatpush.msra.mxu2 %v98_v28  ;;  %436 = vmatpush.msra.mxu3 %v99_v30 }
  0xdc   :  { %379 = vmatpush.msra.mxu1 %v72_v36  ;;  %3082 = vset.pattern.permute.xlu0 %v3131_v40 }
  0xdd   :  { %408 = vmatpush.msra.mxu2 %v73_v10  ;;  %437 = vmatpush.msra.mxu3 %v74_v27 }
  0xde   :  { %3034 = vmatmul.msk.f32.gmra.mxu0 %vm322_vm8, %v259_v41  ;;  %3037 = vmatmul.msk.f32.vlgmr.msra.gmra.mxu1 %vm322_vm8, %v258_v19 }
  0xdf   :  { %3041 = vmatmul.msk.f32.vlgmr.msra.gmra.mxu2 %vm322_vm8, %v258_v19  ;;  %3045 = vmatmul.msk.f32.vlgmr.msra.gmra.mxu3 %vm322_vm8, %v258_v19 }
  0xe0   :  { %309 = vperm.xlu0 %3082, %v299_v6   ;;  %3083 = vset.pattern.permute.xlu1 %v3131_v40 }
  0xe1   :  { %314 = vperm.xlu1 %3083, %v300_v9  }
  0xe2   :  { %319 = vperm.xlu2 %3081, %v301_v42  }
  0xe6   :  { %3035 = vmatmul.msk.f32.gmra.mxu0 %vm322_vm8, %v260_v22  ;;  %3038 = vmatmul.msk.f32.gmra.mxu1 %vm322_vm8, %v259_v41 }
  0xe7   :  { %3042 = vmatmul.msk.f32.gmra.mxu2 %vm322_vm8, %v259_v41  ;;  %3046 = vmatmul.msk.f32.gmra.mxu3 %vm322_vm8, %v259_v41 }
  0xee   :  { %3036 = vmatmul.msk.f32.gmra.mxu0 %vm322_vm8, %v261_v43  ;;  %3039 = vmatmul.msk.f32.gmra.mxu1 %vm322_vm8, %v260_v22 }
  0xef   :  { %3043 = vmatmul.msk.f32.gmra.mxu2 %vm322_vm8, %v260_v22  ;;  %3047 = vmatmul.msk.f32.gmra.mxu3 %vm322_vm8, %v260_v22 }
  0xf6   :  { %3040 = vmatmul.msk.f32.gmra.mxu1 %vm322_vm8, %v261_v43 }
  0xf7   :  { %3044 = vmatmul.msk.f32.gmra.mxu2 %vm322_vm8, %v261_v43  ;;  %3048 = vmatmul.msk.f32.gmra.mxu3 %vm322_vm8, %v261_v43 }
 0x134   :  { %v305_v44 = vpop.permute.xlu2 %304 }
 0x13c   :  { %v3574_v62 = vpop.permute.xlu2 %319 }
 0x152   :  { %v310_v52 = vpop.permute.xlu0 %309 }
 0x153   :  { %v352_v1 = vpop.f32.mrf.mxu0  ;;  %v315_v63 = vpop.permute.xlu1 %314 }
 0x154   :  { %v353_v45 = vadd.f32 %v352_v1, %v305_v44 }
 0x156   :  { %v3490_v46 = vmax.f32 %v353_v45, 0.0 }
 0x158   :  { %5980 = vst [vmem:[#allocation6_spill] sm:$0xff] %v3490_v46  ;;  %467 = vrot.lane.b32.xlu1 %v3490_v46, %s3123_s3 }
 0x15b   :  { %v381_v25 = vpop.f32.mrf.mxu1  ;;  %v355_v55 = vpop.f32.mrf.mxu0 }
 0x15c   :  { %v382_v26 = vadd.f32 %v381_v25, %v305_v44  ;;  %v356_v56 = vadd.f32 %v355_v55, %v310_v52 }
 0x15e   :  { %v3494_v47 = vmax.f32 %v382_v26, 0.0  ;;  %v3544_v57 = vmax.f32 %v356_v56, 0.0 }
 0x160   :  { %5981 = vst [vmem:[#allocation7_spill] sm:$0xff] %v3494_v47  ;;  %667 = vrot.lane.b32.xlu1 %v3494_v47, %s3125_s25  ;;  %571 = vrot.lane.b32.xlu0 %v3494_v47, %s3124_s20 }
 0x161   :  { %475 = vrot.lane.b32.xlu2 %v3494_v47, %s3123_s3  ;;  %5985 = vst [vmem:[#allocation11_spill] sm:$0xff] %v3544_v57 }
 0x162   :  { %v439_v48 = vpop.f32.mrf.mxu3  ;;  %v410_v50 = vpop.f32.mrf.mxu2 }
 0x163   :  { %v440_v49 = vadd.f32 %v439_v48, %v305_v44  ;;  %v411_v51 = vadd.f32 %v410_v50, %v305_v44  ;;  %v384_v53 = vpop.f32.mrf.mxu1  ;;  %v358_v29 = vpop.f32.mrf.mxu0 }
 0x164   :  { %v385_v54 = vadd.f32 %v384_v53, %v310_v52  ;;  %v359_v3 = vadd.f32 %v358_v29, %v315_v63 }
 0x165   :  { %v3508_v17 = vmax.f32 %v440_v49, 0.0  ;;  %v3516_v24 = vmax.f32 %v411_v51, 0.0 }
 0x166   :  { %v3536_v20 = vmax.f32 %v385_v54, 0.0  ;;  %v3584_v0 = vmax.f32 %v359_v3, 0.0 }
 0x167   :  { %5982 = vst [vmem:[#allocation8_spill] sm:$0xff] %v3508_v17 }
 0x168   :  { %755 = vrot.lane.b32.xlu1 %v3490_v46, %s3126_s1  ;;  %659 = vrot.lane.b32.xlu0 %v3490_v46, %s3125_s25  ;;  %5983 = vst [vmem:[#allocation9_spill] sm:$0xff] %v3516_v24 }
 0x169   :  { %563 = vrot.lane.b32.xlu2 %v3490_v46, %s3124_s20  ;;  %5984 = vst [vmem:[#allocation10_spill] sm:$0xff] %v3536_v20 }
 0x16a   :  { %v413_v58 = vpop.f32.mrf.mxu2  ;;  %v442_v61 = vpop.f32.mrf.mxu3  ;;  %5988 = vst [vmem:[#allocation14_spill] sm:$0xff] %v3584_v0 }
 0x16b   :  { %v414_v59 = vadd.f32 %v413_v58, %v310_v52  ;;  %v443_v14 = vadd.f32 %v442_v61, %v310_v52  ;;  %v387_v8 = vpop.f32.mrf.mxu1  ;;  %v361_v6 = vpop.f32.mrf.mxu0 }
 0x16c   :  { %v388_v31 = vadd.f32 %v387_v8, %v315_v63  ;;  %v362_v9 = vadd.f32 %v361_v6, %v3574_v62 }
 0x16d   :  { %v3558_v19 = vmax.f32 %v414_v59, 0.0  ;;  %v3566_v21 = vmax.f32 %v443_v14, 0.0 }
 0x16e   :  { %v3586_v2 = vmax.f32 %v388_v31, 0.0  ;;  %v3659_v44 = vmax.f32 %v362_v9, 0.0 }
 0x16f   :  { %5986 = vst [vmem:[#allocation12_spill] sm:$0xff] %v3558_v19 }
 0x170   :  { %491 = vrot.lane.b32.xlu1 %v3508_v17, %s3123_s3  ;;  %875 = vrot.lane.b32.xlu0 %v3494_v47, %s3127_s26  ;;  %5987 = vst [vmem:[#allocation13_spill] sm:$0xff] %v3566_v21 }
 0x171   :  { %763 = vrot.lane.b32.xlu2 %v3494_v47, %s3126_s1  ;;  %5989 = vst [vmem:[#allocation15_spill] sm:$0xff] %v3586_v2 }
 0x172   :  { %v445_v33 = vpop.f32.mrf.mxu3  ;;  %v416_v7 = vpop.f32.mrf.mxu2  ;;  %6002 = vst [vmem:[#allocation28_spill] sm:$0xff] %v3659_v44 }
 0x173   :  { %v446_v37 = vadd.f32 %v445_v33, %v315_v63  ;;  %v417_v39 = vadd.f32 %v416_v7, %v315_v63  ;;  %v390_v1 = vpop.f32.mrf.mxu1 }
 0x174   :  { %v391_v45 = vadd.f32 %v390_v1, %v3574_v62 }
 0x175   :  { %v3618_v13 = vmax.f32 %v446_v37, 0.0  ;;  %v3632_v36 = vmax.f32 %v417_v39, 0.0 }
 0x176   :  { %v3674_v49 = vmax.f32 %v391_v45, 0.0 }
 0x177   :  { %5993 = vst [vmem:[#allocation19_spill] sm:$0xff] %v3618_v13 }
 0x178   :  { %579 = vrot.lane.b32.xlu1 %v3516_v24, %s3124_s20  ;;  %483 = vrot.lane.b32.xlu0 %v3516_v24, %s3123_s3  ;;  %5995 = vst [vmem:[#allocation21_spill] sm:$0xff] %v3632_v36 }
 0x179   :  { %867 = vrot.lane.b32.xlu2 %v3490_v46, %s3127_s26  ;;  %6005 = vst [vmem:[#allocation31_spill] sm:$0xff] %v3674_v49 }
 0x17a   :  { %v448_v53 = vpop.f32.mrf.mxu3  ;;  %v419_v61 = vpop.f32.mrf.mxu2 }
 0x17b   :  { %v449_v54 = vadd.f32 %v448_v53, %v3574_v62  ;;  %v420_v14 = vadd.f32 %v419_v61, %v3574_v62 }
 0x17d   :  { %v3701_v59 = vmax.f32 %v449_v54, 0.0  ;;  %v3716_v3 = vmax.f32 %v420_v14, 0.0 }
 0x17f   :  { %6008 = vst [vmem:[#allocation34_spill] sm:$0xff] %v3701_v59 }
 0x180   :  { %779 = vrot.lane.b32.xlu1 %v3508_v17, %s3126_s1  ;;  %683 = vrot.lane.b32.xlu0 %v3508_v17, %s3125_s25  ;;  %6010 = vst [vmem:[#allocation36_spill] sm:$0xff] %v3716_v3 }
 0x181   :  { %587 = vrot.lane.b32.xlu2 %v3508_v17, %s3124_s20 }
 0x188   :  { %883 = vrot.lane.b32.xlu1 %v3516_v24, %s3127_s26  ;;  %771 = vrot.lane.b32.xlu0 %v3516_v24, %s3126_s1 }
 0x189   :  { %675 = vrot.lane.b32.xlu2 %v3516_v24, %s3125_s25 }
 0x190   :  { %573 = vrot.lane.b32.xlu1 %v3536_v20, %s3124_s20  ;;  %477 = vrot.lane.b32.xlu0 %v3536_v20, %s3123_s3 }
 0x191   :  { %891 = vrot.lane.b32.xlu2 %v3508_v17, %s3127_s26 }
 0x198   :  { %661 = vrot.lane.b32.xlu1 %v3544_v57, %s3125_s25  ;;  %565 = vrot.lane.b32.xlu0 %v3544_v57, %s3124_s20 }
 0x199   :  { %469 = vrot.lane.b32.xlu2 %v3544_v57, %s3123_s3 }
 0x1a0   :  { %877 = vrot.lane.b32.xlu1 %v3536_v20, %s3127_s26  ;;  %765 = vrot.lane.b32.xlu0 %v3536_v20, %s3126_s1 }
 0x1a1   :  { %669 = vrot.lane.b32.xlu2 %v3536_v20, %s3125_s25 }
 0x1a8   :  { %485 = vrot.lane.b32.xlu1 %v3558_v19, %s3123_s3  ;;  %869 = vrot.lane.b32.xlu0 %v3544_v57, %s3127_s26 }
 0x1a9   :  { %757 = vrot.lane.b32.xlu2 %v3544_v57, %s3126_s1 }
 0x1b0   :  { %685 = vrot.lane.b32.xlu1 %v3566_v21, %s3125_s25  ;;  %589 = vrot.lane.b32.xlu0 %v3566_v21, %s3124_s20 }
 0x1b1   :  { %493 = vrot.lane.b32.xlu2 %v3566_v21, %s3123_s3 }
 0x1b8   :  { %773 = vrot.lane.b32.xlu1 %v3558_v19, %s3126_s1  ;;  %677 = vrot.lane.b32.xlu0 %v3558_v19, %s3125_s25 }
 0x1b9   :  { %581 = vrot.lane.b32.xlu2 %v3558_v19, %s3124_s20 }
 0x1bb   :  { %v3582_v16 = vpop.permute.xlu2 %475 }
 0x1c0   :  { %479 = vrot.lane.b32.xlu1 %v3586_v2, %s3123_s3  ;;  %471 = vrot.lane.b32.xlu0 %v3584_v0, %s3123_s3 }
 0x1c1   :  { %781 = vrot.lane.b32.xlu2 %v3566_v21, %s3126_s1 }
 0x1c3   :  { %v3594_v11 = vpop.permute.xlu2 %563 }
 0x1c8   :  { %567 = vrot.lane.b32.xlu1 %v3584_v0, %s3124_s20  ;;  %671 = vrot.lane.b32.xlu0 %v3586_v2, %s3125_s25 }
 0x1c9   :  { %885 = vrot.lane.b32.xlu2 %v3558_v19, %s3127_s26 }
 0x1ca   :  { %v3602_v15 = vpop.permute.xlu1 %467 }
 0x1cb   :  { %v3604_v4 = vpop.permute.xlu2 %763 }
 0x1cc   :  { %5990 = vst [vmem:[#allocation16_spill] sm:$0xff] %v3604_v4 }
 0x1d0   :  { %767 = vrot.lane.b32.xlu1 %v3586_v2, %s3126_s1  ;;  %759 = vrot.lane.b32.xlu0 %v3584_v0, %s3126_s1 }
 0x1d1   :  { %575 = vrot.lane.b32.xlu2 %v3586_v2, %s3124_s20 }
 0x1d2   :  { %v3612_v5 = vpop.permute.xlu1 %667  ;;  %v3614_v35 = vpop.permute.xlu0 %571 }
 0x1d3   :  { %5991 = vst [vmem:[#allocation17_spill] sm:$0xff] %v3614_v35  ;;  %v3616_v12 = vpop.permute.xlu2 %867 }
 0x1d4   :  { %5992 = vst [vmem:[#allocation18_spill] sm:$0xff] %v3616_v12 }
 0x1d8   :  { %871 = vrot.lane.b32.xlu1 %v3584_v0, %s3127_s26  ;;  %495 = vrot.lane.b32.xlu0 %v3618_v13, %s3123_s3 }
 0x1d9   :  { %663 = vrot.lane.b32.xlu2 %v3584_v0, %s3125_s25 }
 0x1da   :  { %v3626_v40 = vpop.permute.xlu1 %755  ;;  %v3628_v28 = vpop.permute.xlu0 %659 }
 0x1db   :  { %v3630_v30 = vpop.permute.xlu2 %587 }
 0x1dc   :  { %5994 = vst [vmem:[#allocation20_spill] sm:$0xff] %v3630_v30 }
 0x1e0   :  { %591 = vrot.lane.b32.xlu1 %v3618_v13, %s3124_s20  ;;  %583 = vrot.lane.b32.xlu0 %v3632_v36, %s3124_s20 }
 0x1e1   :  { %879 = vrot.lane.b32.xlu2 %v3586_v2, %s3127_s26 }
 0x1e2   :  { %v3640_v10 = vpop.permute.xlu1 %491  ;;  %v3642_v27 = vpop.permute.xlu0 %875 }
 0x1e3   :  { %5996 = vst [vmem:[#allocation22_spill] sm:$0xff] %v3640_v10  ;;  %v3644_v41 = vpop.permute.xlu2 %675  ;;  %v812_v10 = vld [vmem:[#allocation3 + $0x1c8] sm:$0xff] }
 0x1e4   :  { %5997 = vst [vmem:[#allocation23_spill] sm:$0xff] %v3642_v27 }
 0x1e5   :  { %5998 = vst [vmem:[#allocation24_spill] sm:$0xff] %v3644_v41 }
 0x1e8   :  { %679 = vrot.lane.b32.xlu1 %v3632_v36, %s3125_s25  ;;  %783 = vrot.lane.b32.xlu0 %v3618_v13, %s3126_s1 }
 0x1e9   :  { %487 = vrot.lane.b32.xlu2 %v3632_v36, %s3123_s3 }
 0x1ea   :  { %v3653_v42 = vpop.permute.xlu1 %579  ;;  %v3655_v22 = vpop.permute.xlu0 %483 }
 0x1eb   :  { %5999 = vst [vmem:[#allocation25_spill] sm:$0xff] %v3653_v42  ;;  %v3657_v43 = vpop.permute.xlu2 %891 }
 0x1ec   :  { %6000 = vst [vmem:[#allocation26_spill] sm:$0xff] %v3655_v22 }
 0x1ed   :  { %6001 = vst [vmem:[#allocation27_spill] sm:$0xff] %v3657_v43 }
 0x1f0   :  { %473 = vrot.lane.b32.xlu1 %v3659_v44, %s3123_s3  ;;  %887 = vrot.lane.b32.xlu0 %v3632_v36, %s3127_s26 }
 0x1f1   :  { %687 = vrot.lane.b32.xlu2 %v3618_v13, %s3125_s25 }
 0x1f2   :  { %v3668_v25 = vpop.permute.xlu1 %779  ;;  %v3670_v26 = vpop.permute.xlu0 %683 }
 0x1f3   :  { %6003 = vst [vmem:[#allocation29_spill] sm:$0xff] %v3668_v25  ;;  %v3672_v48 = vpop.permute.xlu2 %469 }
 0x1f4   :  { %6004 = vst [vmem:[#allocation30_spill] sm:$0xff] %v3670_v26 }
 0x1f8   :  { %673 = vrot.lane.b32.xlu1 %v3674_v49, %s3125_s25  ;;  %577 = vrot.lane.b32.xlu0 %v3674_v49, %s3124_s20 }
 0x1f9   :  { %775 = vrot.lane.b32.xlu2 %v3632_v36, %s3126_s1 }
 0x1fa   :  { %v3682_v50 = vpop.permute.xlu1 %883  ;;  %v3684_v51 = vpop.permute.xlu0 %771 }
 0x1fb   :  { %6006 = vst [vmem:[#allocation32_spill] sm:$0xff] %v3682_v50  ;;  %v3686_v52 = vpop.permute.xlu2 %669 }
 0x1fc   :  { %6007 = vst [vmem:[#allocation33_spill] sm:$0xff] %v3684_v51 }
 0x200   :  { %761 = vrot.lane.b32.xlu1 %v3659_v44, %s3126_s1  ;;  %665 = vrot.lane.b32.xlu0 %v3659_v44, %s3125_s25 }
 0x201   :  { %481 = vrot.lane.b32.xlu2 %v3674_v49, %s3123_s3 }
 0x202   :  { %v3695_v55 = vpop.permute.xlu1 %573  ;;  %v3697_v56 = vpop.permute.xlu0 %477 }
 0x203   :  { %v3699_v58 = vpop.permute.xlu2 %757 }
 0x208   :  { %497 = vrot.lane.b32.xlu1 %v3701_v59, %s3123_s3  ;;  %881 = vrot.lane.b32.xlu0 %v3674_v49, %s3127_s26 }
 0x209   :  { %569 = vrot.lane.b32.xlu2 %v3659_v44, %s3124_s20 }
 0x20a   :  { %v3710_v63 = vpop.permute.xlu1 %661  ;;  %v3712_v29 = vpop.permute.xlu0 %565 }
 0x20b   :  { %v3714_v8 = vpop.permute.xlu2 %493 }
 0x20c   :  { %6009 = vst [vmem:[#allocation35_spill] sm:$0xff] %v3714_v8  ;;  %v808_v8 = vld [vmem:[#allocation3 + $0x1a8] sm:$0xff] }
 0x210   :  { %585 = vrot.lane.b32.xlu1 %v3716_v3, %s3124_s20  ;;  %489 = vrot.lane.b32.xlu0 %v3716_v3, %s3123_s3 }
 0x211   :  { %769 = vrot.lane.b32.xlu2 %v3674_v49, %s3126_s1 }
 0x212   :  { %v3724_v31 = vpop.permute.xlu1 %877  ;;  %v3726_v62 = vpop.permute.xlu0 %765 }
 0x213   :  { %6011 = vst [vmem:[#allocation37_spill] sm:$0xff] %v3724_v31  ;;  %v3728_v33 = vpop.permute.xlu2 %581 }
 0x214   :  { %6012 = vst [vmem:[#allocation38_spill] sm:$0xff] %v3726_v62 }
 0x215   :  { %6013 = vst [vmem:[#allocation39_spill] sm:$0xff] %v3728_v33 }
 0x218   :  { %785 = vrot.lane.b32.xlu1 %v3701_v59, %s3126_s1  ;;  %689 = vrot.lane.b32.xlu0 %v3701_v59, %s3125_s25 }
 0x219   :  { %873 = vrot.lane.b32.xlu2 %v3659_v44, %s3127_s26 }
 0x21a   :  { %v3736_v37 = vpop.permute.xlu1 %485  ;;  %v3738_v7 = vpop.permute.xlu0 %869 }
 0x21b   :  { %6014 = vst [vmem:[#allocation40_spill] sm:$0xff] %v3736_v37  ;;  %v3740_v39 = vpop.permute.xlu2 %781 }
 0x21c   :  { %6015 = vst [vmem:[#allocation41_spill] sm:$0xff] %v3738_v7 }
 0x21d   :  { %6016 = vst [vmem:[#allocation42_spill] sm:$0xff] %v3740_v39 }
 0x220   :  { %889 = vrot.lane.b32.xlu1 %v3716_v3, %s3127_s26  ;;  %777 = vrot.lane.b32.xlu0 %v3716_v3, %s3126_s1 }
 0x221   :  { %593 = vrot.lane.b32.xlu2 %v3701_v59, %s3124_s20 }
 0x222   :  { %v3748_v6 = vpop.permute.xlu1 %685  ;;  %v3750_v9 = vpop.permute.xlu0 %589 }
 0x223   :  { %6017 = vst [vmem:[#allocation43_spill] sm:$0xff] %v3748_v6  ;;  %v3752_v1 = vpop.permute.xlu2 %885 }
 0x224   :  { %6018 = vst [vmem:[#allocation44_spill] sm:$0xff] %v3750_v9 }
 0x225   :  { %6019 = vst [vmem:[#allocation45_spill] sm:$0xff] %v3752_v1 }
 0x228   :  { %895 = vrot.lane.b32.xlu1 %v3618_v13, %s3127_s26  ;;  %893 = vrot.lane.b32.xlu0 %v3566_v21, %s3127_s26 }
 0x229   :  { %681 = vrot.lane.b32.xlu2 %v3716_v3, %s3125_s25 }
 0x22a   :  { %v3760_v45 = vpop.permute.xlu1 %773  ;;  %v3762_v53 = vpop.permute.xlu0 %677 }
 0x22b   :  { %6020 = vst [vmem:[#allocation46_spill] sm:$0xff] %v3760_v45  ;;  %v3764_v54 = vpop.permute.xlu2 %575 }
 0x22c   :  { %6021 = vst [vmem:[#allocation47_spill] sm:$0xff] %v3762_v53 }
 0x230   :  { %965 = vrot.lane.b32.xlu1 %v3544_v57, %s3128_s27  ;;  %963 = vrot.lane.b32.xlu0 %v3490_v46, %s3128_s27 }
 0x231   :  { %897 = vrot.lane.b32.xlu2 %v3701_v59, %s3127_s26 }
 0x232   :  { %v3772_v61 = vpop.permute.xlu1 %479  ;;  %v3774_v14 = vpop.permute.xlu0 %471 }
 0x233   :  { %v3776_v43 = vpop.permute.xlu2 %663 }
 0x238   :  { %971 = vrot.lane.b32.xlu1 %v3494_v47, %s3128_s27  ;;  %969 = vrot.lane.b32.xlu0 %v3659_v44, %s3128_s27 }
 0x239   :  { %967 = vrot.lane.b32.xlu2 %v3584_v0, %s3128_s27 }
 0x23a   :  { %v3784_v1 = vpop.permute.xlu1 %567  ;;  %v3786_v50 = vpop.permute.xlu0 %671 }
 0x23b   :  { %v3788_v22 = vpop.permute.xlu2 %879 }
 0x23c   :  { %6022 = vst [vmem:[#allocation48_spill] sm:$0xff] %v3788_v22 }
 0x240   :  { %1063 = vrot.lane.b32.xlu1 %v3584_v0, %s3129_s28  ;;  %1073 = vrot.lane.b32.xlu0 %v3674_v49, %s3129_s28 }
 0x241   :  { %1065 = vrot.lane.b32.xlu2 %v3659_v44, %s3129_s28 }
 0x242   :  { %v3796_v37 = vpop.permute.xlu1 %767  ;;  %v3798_v42 = vpop.permute.xlu0 %759 }
 0x243   :  { %6023 = vst [vmem:[#allocation49_spill] sm:$0xff] %v3796_v37  ;;  %v3800_v33 = vpop.permute.xlu2 %487  ;;  %v797_v22 = vsel %vm137_vm5, %v3798_v42, %v3796_v37 }
 0x244   :  { %6024 = vst [vmem:[#allocation50_spill] sm:$0xff] %v3800_v33 }
 0x248   :  { %1069 = vrot.lane.b32.xlu1 %v3536_v20, %s3129_s28  ;;  %1061 = vrot.lane.b32.xlu0 %v3544_v57, %s3129_s28 }
 0x249   :  { %1071 = vrot.lane.b32.xlu2 %v3586_v2, %s3129_s28 }
 0x24a   :  { %v3808_v41 = vpop.permute.xlu1 %871  ;;  %v3810_v53 = vpop.permute.xlu0 %495 }
 0x24b   :  { %6025 = vst [vmem:[#allocation51_spill] sm:$0xff] %v3808_v41  ;;  %v3812_v51 = vpop.permute.xlu2 %687 }
 0x24c   :  { %6026 = vst [vmem:[#allocation52_spill] sm:$0xff] %v3810_v53 }
 0x24d   :  { %6027 = vst [vmem:[#allocation53_spill] sm:$0xff] %v3812_v51 }
 0x250   :  { %977 = vrot.lane.b32.xlu1 %v3674_v49, %s3128_s27  ;;  %1067 = vrot.lane.b32.xlu0 %v3494_v47, %s3129_s28 }
 0x251   :  { %1059 = vrot.lane.b32.xlu2 %v3490_v46, %s3129_s28 }
 0x252   :  { %v3820_v33 = vpop.permute.xlu1 %591  ;;  %v3822_v45 = vpop.permute.xlu0 %583 }
 0x253   :  { %6028 = vst [vmem:[#allocation54_spill] sm:$0xff] %v3820_v33  ;;  %v3824_v12 = vpop.permute.xlu2 %775 }
 0x254   :  { %6029 = vst [vmem:[#allocation55_spill] sm:$0xff] %v3822_v45 }
 0x255   :  { %6030 = vst [vmem:[#allocation56_spill] sm:$0xff] %v3824_v12 }
 0x258   :  { %1161 = vrot.lane.b32.xlu1 %v3659_v44, %s3130_s29  ;;  %973 = vrot.lane.b32.xlu0 %v3536_v20, %s3128_s27 }
 0x259   :  { %975 = vrot.lane.b32.xlu2 %v3586_v2, %s3128_s27 }
 0x25a   :  { %v3832_v27 = vpop.permute.xlu1 %679  ;;  %v3834_v7 = vpop.permute.xlu0 %783 }
 0x25b   :  { %6031 = vst [vmem:[#allocation57_spill] sm:$0xff] %v3832_v27  ;;  %v3836_v31 = vpop.permute.xlu2 %481 }
 0x25c   :  { %6032 = vst [vmem:[#allocation58_spill] sm:$0xff] %v3834_v7 }
 0x25d   :  { %6033 = vst [vmem:[#allocation59_spill] sm:$0xff] %v3836_v31 }
 0x260   :  { %1167 = vrot.lane.b32.xlu1 %v3586_v2, %s3130_s29  ;;  %1159 = vrot.lane.b32.xlu0 %v3584_v0, %s3130_s29 }
 0x261   :  { %1169 = vrot.lane.b32.xlu2 %v3674_v49, %s3130_s29 }
 0x262   :  { %v3844_v45 = vpop.permute.xlu1 %473  ;;  %v3846_v12 = vpop.permute.xlu0 %887 }
 0x263   :  { %6034 = vst [vmem:[#allocation60_spill] sm:$0xff] %v3846_v12  ;;  %v3848_v44 = vpop.permute.xlu2 %569  ;;  %v816_v12 = vld [vmem:[#allocation3 + $0x1e8] sm:$0xff] }
 0x268   :  { %1155 = vrot.lane.b32.xlu1 %v3490_v46, %s3130_s29  ;;  %1165 = vrot.lane.b32.xlu0 %v3536_v20, %s3130_s29 }
 0x269   :  { %1157 = vrot.lane.b32.xlu2 %v3544_v57, %s3130_s29 }
 0x26a   :  { %v3856_v2 = vpop.permute.xlu1 %673  ;;  %v3858_v27 = vpop.permute.xlu0 %577 }
 0x26b   :  { %6035 = vst [vmem:[#allocation61_spill] sm:$0xff] %v3856_v2  ;;  %v3860_v49 = vpop.permute.xlu2 %769 }
 0x26c   :  { %6036 = vst [vmem:[#allocation62_spill] sm:$0xff] %v3858_v27 }
 0x26d   :  { %6037 = vst [vmem:[#allocation63_spill] sm:$0xff] %v3860_v49 }
 0x270   :  { %1089 = vrot.lane.b32.xlu1 %v3701_v59, %s3129_s28  ;;  %1081 = vrot.lane.b32.xlu0 %v3716_v3, %s3129_s28 }
 0x271   :  { %1163 = vrot.lane.b32.xlu2 %v3494_v47, %s3130_s29  ;;  %v796_v47 = vsel %vm137_vm5, %v3699_v58, %v3726_v62 }
 0x272   :  { %v3868_v20 = vpop.permute.xlu1 %761  ;;  %v3870_v46 = vpop.permute.xlu0 %665 }
 0x273   :  { %v3872_v57 = vpop.permute.xlu2 %873  ;;  %v798_v0 = vsel %vm137_vm5, %v3868_v20, %v3860_v49  ;;  %v700_v49 = vsel %vm112_vm4, %v3710_v63, %v3686_v52 }
 0x274   :  { %6038 = vst [vmem:[#allocation64_spill] sm:$0xff] %v3872_v57  ;;  %v832_v41 = vmul.f32 %v816_v12, %v798_v0  ;;  %v828_v57 = vmul.f32 %v812_v10, %v797_v22  ;;  %v795_v0 = vsel %vm137_vm5, %v3626_v40, %v3604_v4  ;;  %v824_v12 = vmul.f32 %v808_v8, %v796_v47  ;;  %v720_v22 = vld [vmem:[#allocation3 + $0x168] sm:$0xff] }
 0x275   :  { %v702_v10 = vsel %vm112_vm4, %v3870_v46, %v3856_v2  ;;  %v820_v4 = vmul.f32 %v795_v0, %v3391_v23  ;;  %v701_v47 = vsel %vm112_vm4, %v3776_v43, %v3786_v50  ;;  %v712_v2 = vld [vmem:[#allocation3 + $0x128] sm:$0xff]  ;;  %v699_v23 = vsel %vm112_vm4, %v3628_v28, %v3612_v5 }
 0x276   :  { %1531 = vmatpush.msrb.mxu3 %v832_v41  ;;  %v736_v8 = vmul.f32 %v720_v22, %v702_v10  ;;  %v606_v10 = vsel %vm87_vm6, %v3848_v44, %v3858_v27  ;;  %v624_v22 = vld [vmem:[#allocation3 + $0xe8] sm:$0xff] }
 0x278   :  { %1077 = vrot.lane.b32.xlu1 %v3558_v19, %s3129_s28  ;;  %1087 = vrot.lane.b32.xlu0 %v3618_v13, %s3129_s28 }
 0x279   :  { %1079 = vrot.lane.b32.xlu2 %v3632_v36, %s3129_s28  ;;  %1532 = vmatpush.msrb.mxu3 %v828_v57  ;;  %v716_v57 = vld [vmem:[#allocation3 + $0x148] sm:$0xff] }
 0x27a   :  { %v3896_v41 = vpop.permute.xlu1 %497  ;;  %v3898_v62 = vpop.permute.xlu0 %881 }
 0x27b   :  { %6039 = vst [vmem:[#allocation65_spill] sm:$0xff] %v3896_v41  ;;  %v3904_v37 = vpop.permute.xlu2 %593  ;;  %1533 = vmatpush.msrb.mxu3 %v824_v12 }
 0x27c   :  { %6040 = vst [vmem:[#allocation66_spill] sm:$0xff] %v3898_v62  ;;  %v732_v62 = vmul.f32 %v716_v57, %v701_v47  ;;  %v724_v57 = vmul.f32 %v699_v23, %v3408_v18  ;;  %v603_v18 = vsel %vm87_vm6, %v3594_v11, %v3614_v35  ;;  %v811_v35 = vld [vmem:[#allocation3 + $0x1c0] sm:$0xff] }
 0x27d   :  { %6041 = vst [vmem:[#allocation67_spill] sm:$0xff] %v3904_v37  ;;  %1534 = vmatpush.msrb.mxu3 %v820_v4  ;;  %v728_v4 = vmul.f32 %v712_v2, %v700_v49  ;;  %v605_v2 = vsel %vm87_vm6, %v3784_v1, %v3764_v54  ;;  %v620_v49 = vld [vmem:[#allocation3 + $0xc8] sm:$0xff] }
 0x27e   :  { %v636_v27 = vmul.f32 %v620_v49, %v605_v2  ;;  %v528_v2 = vld [vmem:[#allocation3 + $0x68] sm:$0xff] }
 0x27f   :  { %1535 = vmatpush.msrb.mxu3 %v736_v8  ;;  %v604_v8 = vsel %vm87_vm6, %v3712_v29, %v3695_v55 }
 0x280   :  { %1083 = vrot.lane.b32.xlu1 %v3508_v17, %s3129_s28  ;;  %1075 = vrot.lane.b32.xlu0 %v3516_v24, %s3129_s28 }
 0x281   :  { %1085 = vrot.lane.b32.xlu2 %v3566_v21, %s3129_s28  ;;  %1536 = vmatpush.msrb.mxu3 %v732_v62  ;;  %v640_v62 = vmul.f32 %v624_v22, %v606_v10 }
 0x282   :  { %v3925_v0 = vpop.permute.xlu1 %585  ;;  %v3927_v12 = vpop.permute.xlu0 %489 }
 0x283   :  { %6042 = vst [vmem:[#allocation68_spill] sm:$0xff] %v3925_v0  ;;  %v3933_v47 = vpop.permute.xlu2 %681  ;;  %1537 = vmatpush.msrb.mxu3 %v728_v4  ;;  %v815_v4 = vld [vmem:[#allocation3 + $0x1e0] sm:$0xff] }
 0x284   :  { %6043 = vst [vmem:[#allocation69_spill] sm:$0xff] %v3927_v12  ;;  %v616_v12 = vld [vmem:[#allocation3 + $0xa8] sm:$0xff] }
 0x285   :  { %1538 = vmatpush.msrb.mxu3 %v724_v57  ;;  %v632_v23 = vmul.f32 %v616_v12, %v604_v8  ;;  %v510_v57 = vsel %vm62_vm7, %v3844_v45, %v3836_v31  ;;  %v801_v8 = vsel %vm137_vm5, %v3834_v7, %v3798_v42  ;;  %v508_v42 = vsel %vm62_vm7, %v3672_v48, %v3697_v56 }
 0x286   :  { %v544_v31 = vmul.f32 %v528_v2, %v510_v57  ;;  %v520_v57 = vld [vmem:[#allocation3 + $0x28] sm:$0xff] }
 0x287   :  { %1539 = vmatpush.msrb.mxu3 %v640_v62  ;;  %v628_v62 = vmul.f32 %v603_v18, %v3426_v34  ;;  %v524_v34 = vld [vmem:[#allocation3 + $0x48] sm:$0xff]  ;;  %v807_v18 = vld [vmem:[#allocation3 + $0x1a0] sm:$0xff] }
 0x288   :  { %983 = vrot.lane.b32.xlu1 %v3632_v36, %s3128_s27  ;;  %993 = vrot.lane.b32.xlu0 %v3701_v59, %s3128_s27 }
 0x289   :  { %985 = vrot.lane.b32.xlu2 %v3716_v3, %s3128_s27  ;;  %1540 = vmatpush.msrb.mxu3 %v636_v27 }
 0x28a   :  { %v3954_v10 = vpop.permute.xlu1 %785  ;;  %v3956_v22 = vpop.permute.xlu0 %689 }
 0x28b   :  { %6044 = vst [vmem:[#allocation70_spill] sm:$0xff] %v3954_v10  ;;  %v3962_v49 = vpop.permute.xlu2 %897  ;;  %1541 = vmatpush.msrb.mxu3 %v632_v23  ;;  %v802_v27 = vsel %vm137_vm5, %v3954_v10, %v3868_v20  ;;  %v509_v23 = vsel %vm62_vm7, %v3774_v14, %v3772_v61  ;;  %v800_v20 = vsel %vm137_vm5, %v3740_v39, %v3699_v58  ;;  %v1121_v10 = vld [vmem:[#allocation3 + $0x3f0] sm:$0xff] }
 0x28c   :  { %6045 = vst [vmem:[#allocation71_spill] sm:$0xff] %v3956_v22  ;;  %v831_v12 = vmul.f32 %v815_v4, %v802_v27  ;;  %v827_v4 = vmul.f32 %v811_v35, %v801_v8  ;;  %v540_v2 = vmul.f32 %v524_v34, %v509_v23  ;;  %v799_v58 = vsel %vm137_vm5, %v3668_v25, %v3626_v40  ;;  %v719_v8 = vld [vmem:[#allocation3 + $0x160] sm:$0xff] }
 0x28d   :  { %1542 = vmatpush.msrb.mxu3 %v628_v62  ;;  %v823_v35 = vmul.f32 %v807_v18, %v800_v20  ;;  %v536_v27 = vmul.f32 %v520_v57, %v508_v42  ;;  %v706_v40 = vsel %vm112_vm4, %v3956_v22, %v3870_v46  ;;  %v819_v34 = vmul.f32 %v799_v58, %v3348_v60  ;;  %v4014_v18 = vld [vmem:[%s5841_s6] sm:$0xff]  ;;  %v715_v46 = vld [vmem:[#allocation3 + $0x140] sm:$0xff]  ;;  %v6057_v22 = vld [vmem:[#allocation51_spill] sm:$0xff] }
 0x28e   :  { %1444 = vmatpush.msrb.mxu0 %v831_v12  ;;  %v735_v42 = vmul.f32 %v719_v8, %v706_v40  ;;  %v704_v60 = vsel %vm112_vm4, %v3748_v6, %v3710_v63  ;;  %v4048_v8 = vld [vmem:[%s5841_s6 + $0x18] sm:$0xff] }
 0x28f   :  { %1543 = vmatpush.msrb.mxu3 %v544_v31  ;;  %v507_v31 = vsel %vm62_vm7, %v3602_v15, %v3582_v16 }
 0x290   :  { %989 = vrot.lane.b32.xlu1 %v3566_v21, %s3128_s27  ;;  %981 = vrot.lane.b32.xlu0 %v3558_v19, %s3128_s27  ;;  %v532_v20 = vmul.f32 %v507_v31, %v3442_v38  ;;  %v711_v38 = vld [vmem:[#allocation3 + $0x120] sm:$0xff]  ;;  %v610_v31 = vsel %vm87_vm6, %v3904_v37, %v3848_v44  ;;  %v608_v44 = vsel %vm87_vm6, %v3750_v9, %v3712_v29 }
 0x291   :  { %991 = vrot.lane.b32.xlu2 %v3618_v13, %s3128_s27  ;;  %1445 = vmatpush.msrb.mxu0 %v827_v4  ;;  %v705_v4 = vsel %vm112_vm4, %v3812_v51, %v3776_v43  ;;  %v703_v43 = vsel %vm112_vm4, %v3670_v26, %v3628_v28  ;;  %v727_v63 = vmul.f32 %v711_v38, %v704_v60  ;;  %v611_v60 = vld [vmem:[#allocation3 + $0x80] sm:$0xff] }
 0x292   :  { %1544 = vmatpush.msrb.mxu3 %v540_v2  ;;  %v3999_v62 = vpop.permute.xlu1 %889  ;;  %v4001_v12 = vpop.permute.xlu0 %777  ;;  %v731_v57 = vmul.f32 %v715_v46, %v705_v4  ;;  %v707_v2 = vld [vmem:[#allocation3 + $0x100] sm:$0xff] }
 0x293   :  { %6046 = vst [vmem:[#allocation72_spill] sm:$0xff] %v4001_v12  ;;  %v4007_v23 = vpop.permute.xlu2 %967  ;;  %1446 = vmatpush.msrb.mxu0 %v823_v35  ;;  %v723_v28 = vmul.f32 %v707_v2, %v703_v43  ;;  %v615_v46 = vld [vmem:[#allocation3 + $0xa0] sm:$0xff]  ;;  %v514_v43 = vsel %vm62_vm7, %v3896_v41, %v3844_v45  ;;  %v6048_v45 = vld [vmem:[#allocation35_spill] sm:$0xff] }
 0x294   :  { %1545 = vmatpush.msrb.mxu3 %v536_v27  ;;  %v623_v27 = vld [vmem:[#allocation3 + $0xe0] sm:$0xff]  ;;  %v631_v29 = vmul.f32 %v615_v46, %v608_v44 }
 0x295   :  { %1447 = vmatpush.msrb.mxu0 %v819_v34  ;;  %v609_v34 = vsel %vm87_vm6, %v3820_v33, %v3784_v1  ;;  %v639_v4 = vmul.f32 %v623_v27, %v610_v31  ;;  %v607_v1 = vsel %vm87_vm6, %v3630_v30, %v3594_v11  ;;  %v527_v2 = vld [vmem:[#allocation3 + $0x60] sm:$0xff]  ;;  %v4082_v31 = vld [vmem:[%s5841_s6 + $0x30] sm:$0xff]  ;;  %v513_v27 = vsel %vm62_vm7, %v3810_v53, %v3774_v14 }
 0x296   :  { %1546 = vmatpush.msrb.mxu3 %v532_v20  ;;  %v619_v20 = vld [vmem:[#allocation3 + $0xc0] sm:$0xff]  ;;  %v627_v11 = vmul.f32 %v611_v60, %v607_v1  ;;  %6047 = vst [vmem:[#allocation73_spill] sm:$0xff] %v4082_v31 }
 0x297   :  { %1547 = vmatmul.f32.vlgmr.msrb.gmra.mxu3 %v4014_v18  ;;  %1448 = vmatpush.msrb.mxu0 %v735_v42  ;;  %v635_v42 = vmul.f32 %v619_v20, %v609_v34  ;;  %v543_v34 = vmul.f32 %v527_v2, %v514_v43  ;;  %v512_v20 = vsel %vm62_vm7, %v6048_v45, %v3672_v48  ;;  %v6049_v14 = vld [vmem:[#allocation22_spill] sm:$0xff] }
 0x298   :  { %1177 = vrot.lane.b32.xlu1 %v3716_v3, %s3130_s29  ;;  %987 = vrot.lane.b32.xlu0 %v3508_v17, %s3128_s27  ;;  %v511_v46 = vsel %vm62_vm7, %v6049_v14, %v3602_v15  ;;  %v4112_v2 = vld [vmem:[%s5841_s6 + $0x48] sm:$0xff]  ;;  %v6064_v3 = vld [vmem:[#allocation28_spill] sm:$0xff] }
 0x299   :  { %979 = vrot.lane.b32.xlu2 %v3516_v24, %s3128_s27  ;;  %1449 = vmatpush.msrb.mxu0 %v731_v57  ;;  %6050 = vst [vmem:[#allocation74_spill] sm:$0xff] %v4112_v2  ;;  %v1408_v15 = vld [vmem:[%s5842_s7 + $0x8] sm:$0xff] }
 0x29a   :  { %v4035_v58 = vpop.permute.xlu1 %895  ;;  %v4037_v35 = vpop.permute.xlu0 %893  ;;  %v1019_v41 = vld [vmem:[#allocation3 + $0x340] sm:$0xff] }
 0x29b   :  { %v4043_v40 = vpop.permute.xlu2 %1065  ;;  %1450 = vmatpush.msrb.mxu0 %v727_v63  ;;  %v1015_v33 = vld [vmem:[#allocation3 + $0x320] sm:$0xff] }
 0x29c   :  { %v1215_v37 = vld [vmem:[#allocation3 + $0x460] sm:$0xff] }
 0x29d   :  { %1451 = vmatpush.msrb.mxu0 %v723_v28  ;;  %v523_v28 = vld [vmem:[#allocation3 + $0x40] sm:$0xff] }
 0x29e   :  { %v539_v44 = vmul.f32 %v523_v28, %v513_v27  ;;  %v1119_v27 = vld [vmem:[#allocation3 + $0x3e0] sm:$0xff] }
 0x29f   :  { %1550 = vmatmul.f32.gmra.mxu3 %v4048_v8  ;;  %1452 = vmatpush.msrb.mxu0 %v639_v4  ;;  %v519_v4 = vld [vmem:[#allocation3 + $0x20] sm:$0xff] }
 0x2a0   :  { %1171 = vrot.lane.b32.xlu1 %v3516_v24, %s3130_s29  ;;  %1173 = vrot.lane.b32.xlu0 %v3558_v19, %s3130_s29  ;;  %v535_v48 = vmul.f32 %v519_v4, %v512_v20  ;;  %v927_v51 = vld [vmem:[#allocation3 + $0x2e0] sm:$0xff] }
 0x2a1   :  { %1175 = vrot.lane.b32.xlu2 %v3632_v36, %s3130_s29  ;;  %1453 = vmatpush.msrb.mxu0 %v635_v42  ;;  %v515_v42 = vld [vmem:[#allocation3] sm:$0xff]  ;;  %v6058_v36 = vld [vmem:[#allocation37_spill] sm:$0xff] }
 0x2a2   :  { %v4069_v38 = vpop.permute.xlu1 %965  ;;  %v4071_v57 = vpop.permute.xlu0 %963  ;;  %v531_v43 = vmul.f32 %v515_v42, %v511_v46  ;;  %v1115_v46 = vld [vmem:[#allocation3 + $0x3c0] sm:$0xff] }
 0x2a3   :  { %v4077_v63 = vpop.permute.xlu2 %1071  ;;  %1454 = vmatpush.msrb.mxu0 %v631_v29 }
 0x2a5   :  { %1455 = vmatpush.msrb.mxu0 %v627_v11  ;;  %v1407_v11 = vld [vmem:[%s5842_s7] sm:$0xff] }
 0x2a7   :  { %1553 = vmatmul.f32.gmra.mxu3 %v4082_v31  ;;  %1456 = vmatpush.msrb.mxu0 %v543_v34 }
 0x2a8   :  { %1181 = vrot.lane.b32.xlu1 %v3566_v21, %s3130_s29  ;;  %1183 = vrot.lane.b32.xlu0 %v3618_v13, %s3130_s29  ;;  %v6056_v21 = vld [vmem:[#allocation48_spill] sm:$0xff]  ;;  %v923_v13 = vld [vmem:[#allocation3 + $0x2c0] sm:$0xff] }
 0x2a9   :  { %1185 = vrot.lane.b32.xlu2 %v3701_v59, %s3130_s29  ;;  %1457 = vmatpush.msrb.mxu0 %v539_v44  ;;  %v909_v19 = vsel %vm166_vm3, %v6057_v22, %v6056_v21 }
 0x2aa   :  { %v4103_v1 = vpop.permute.xlu1 %971  ;;  %v4105_v60 = vpop.permute.xlu0 %969 }
 0x2ab   :  { %v4107_v29 = vpop.permute.xlu2 %1059  ;;  %1458 = vmatpush.msrb.mxu0 %v535_v48  ;;  %v1410_v48 = vld [vmem:[%s5842_s7 + $0x18] sm:$0xff] }
 0x2ad   :  { %1459 = vmatpush.msrb.mxu0 %v531_v43  ;;  %v1409_v43 = vld [vmem:[%s5842_s7 + $0x10] sm:$0xff] }
 0x2ae   :  { %1460 = vmatmul.f32.vlgmr.msrb.gmra.mxu0 %v4014_v18 }
 0x2af   :  { %1556 = vmatmul.f32.gmra.mxu3 %v4112_v2 }
 0x2b0   :  { %1418 = vperm.xlu1 %3083, %v1408_v15   ;;  %1413 = vperm.xlu0 %3082, %v1407_v11   ;;  %v1111_v11 = vld [vmem:[#allocation3 + $0x3a0] sm:$0xff] }
 0x2b1   :  { %1179 = vrot.lane.b32.xlu2 %v3508_v17, %s3130_s29 }
 0x2b2   :  { %v4124_v28 = vpop.permute.xlu1 %1063  ;;  %v4126_v34 = vpop.permute.xlu0 %1073 }
 0x2b3   :  { %v4128_v20 = vpop.permute.xlu2 %975  ;;  %v1102_v4 = vsel %vm216_vm1, %v4043_v40, %v4126_v34  ;;  %v1101_v44 = vsel %vm216_vm1, %v4124_v28, %v4077_v63 }
 0x2b4   :  { %v1135_v42 = vmul.f32 %v1119_v27, %v1102_v4  ;;  %v1131_v15 = vmul.f32 %v1115_v46, %v1101_v44  ;;  %v1107_v44 = vld [vmem:[#allocation3 + $0x380] sm:$0xff] }
 0x2b6   :  { %1463 = vmatmul.f32.gmra.mxu0 %v4048_v8  ;;  %1473 = vmatpush.msrb.mxu1 %v1135_v42 }
 0x2b8   :  { %1428 = vperm.xlu0 %3082, %v1410_v48   ;;  %1474 = vmatpush.msrb.mxu1 %v1131_v15 }
 0x2b9   :  { %1423 = vperm.xlu2 %3081, %v1409_v43  }
 0x2ba   :  { %v4145_v14 = vpop.permute.xlu1 %1069  ;;  %v4147_v45 = vpop.permute.xlu0 %1061 }
 0x2bb   :  { %v4149_v27 = vpop.permute.xlu2 %1169  ;;  %v1100_v4 = vsel %vm216_vm1, %v4147_v45, %v4145_v14 }
 0x2bc   :  { %v1127_v42 = vmul.f32 %v1111_v11, %v1100_v4  ;;  %v1023_v4 = vld [vmem:[#allocation3 + $0x360] sm:$0xff] }
 0x2be   :  { %1466 = vmatmul.f32.gmra.mxu0 %v4082_v31  ;;  %1475 = vmatpush.msrb.mxu1 %v1127_v42  ;;  %v1005_v42 = vsel %vm191_vm2, %v4007_v23, %v4128_v20 }
 0x2bf   :  { %v1035_v9 = vmul.f32 %v1019_v41, %v1005_v42  ;;  %v6055_v42 = vld [vmem:[#allocation64_spill] sm:$0xff] }
 0x2c2   :  { %v4156_v46 = vpop.permute.xlu1 %977  ;;  %v4158_v48 = vpop.permute.xlu0 %1067 }
 0x2c3   :  { %v4160_v43 = vpop.permute.xlu2 %1157  ;;  %v1099_v15 = vsel %vm216_vm1, %v4107_v29, %v4158_v48  ;;  %v1006_v11 = vsel %vm191_vm2, %v4105_v60, %v4156_v46 }
 0x2c4   :  { %6051 = vst [vmem:[#allocation75_spill] sm:$0xff] %v4160_v43  ;;  %v1123_v53 = vmul.f32 %v1107_v44, %v1099_v15  ;;  %v1039_v30 = vmul.f32 %v1023_v4, %v1006_v11  ;;  %v6054_v4 = vld [vmem:[#allocation66_spill] sm:$0xff] }
 0x2c5   :  { %v910_v17 = vsel %vm166_vm3, %v6055_v42, %v6054_v4 }
 0x2c6   :  { %1469 = vmatmul.f32.gmra.mxu0 %v4112_v2  ;;  %1476 = vmatpush.msrb.mxu1 %v1123_v53  ;;  %v1003_v53 = vsel %vm191_vm2, %v4071_v57, %v4103_v1 }
 0x2c8   :  { %1477 = vmatpush.msrb.mxu1 %v1039_v30 }
 0x2ca   :  { %v4175_v26 = vpop.permute.xlu1 %1161  ;;  %1478 = vmatpush.msrb.mxu1 %v1035_v9  ;;  %v4177_v6 = vpop.permute.xlu0 %973  ;;  %v1011_v9 = vld [vmem:[#allocation3 + $0x300] sm:$0xff] }
 0x2cb   :  { %6052 = vst [vmem:[#allocation76_spill] sm:$0xff] %v4175_v26  ;;  %v4179_v44 = vpop.permute.xlu2 %1163  ;;  %v1004_v15 = vsel %vm191_vm2, %v4069_v38, %v4177_v6  ;;  %v1198_v30 = vsel %vm241_vm0, %v4175_v26, %v4149_v27  ;;  %v1027_v24 = vmul.f32 %v1011_v9, %v1003_v53  ;;  %v943_v26 = vmul.f32 %v927_v51, %v910_v17  ;;  %v6062_v17 = vld [vmem:[#allocation18_spill] sm:$0xff] }
 0x2cc   :  { %6053 = vst [vmem:[#allocation77_spill] sm:$0xff] %v4179_v44  ;;  %v1031_v41 = vmul.f32 %v1015_v33, %v1004_v15  ;;  %v1231_v11 = vmul.f32 %v1215_v37, %v1198_v30  ;;  %v6059_v33 = vld [vmem:[#allocation41_spill] sm:$0xff]  ;;  %v919_v15 = vld [vmem:[#allocation3 + $0x2a0] sm:$0xff]  ;;  %v939_v53 = vmul.f32 %v923_v13, %v909_v19 }
 0x2cd   :  { %v908_v37 = vsel %vm166_vm3, %v6059_v33, %v6058_v36  ;;  %v1211_v30 = vld [vmem:[#allocation3 + $0x440] sm:$0xff] }
 0x2ce   :  { %1479 = vmatpush.msrb.mxu1 %v1031_v41  ;;  %1514 = vmatpush.msrb.mxu2 %v1231_v11  ;;  %v915_v11 = vld [vmem:[#allocation3 + $0x280] sm:$0xff]  ;;  %v935_v2 = vmul.f32 %v919_v15, %v908_v37 }
 0x2cf   :  { %v1207_v19 = vld [vmem:[#allocation3 + $0x420] sm:$0xff] }
 0x2d0   :  { %1480 = vmatpush.msrb.mxu1 %v1027_v24  ;;  %v6061_v24 = vld [vmem:[#allocation23_spill] sm:$0xff]  ;;  %v6066_v37 = vld [vmem:[#allocation14_spill] sm:$0xff] }
 0x2d1   :  { %v907_v51 = vsel %vm166_vm3, %v6062_v17, %v6061_v24 }
 0x2d2   :  { %v4205_v25 = vpop.permute.xlu1 %1167  ;;  %1481 = vmatpush.msrb.mxu1 %v943_v26  ;;  %v4207_v41 = vpop.permute.xlu0 %1159  ;;  %v931_v26 = vmul.f32 %v915_v11, %v907_v51  ;;  %v6068_v51 = vld [vmem:[#allocation11_spill] sm:$0xff] }
 0x2d3   :  { %6060 = vst [vmem:[#allocation66_spill] sm:$0xff] %v4207_v41  ;;  %v1197_v9 = vsel %vm241_vm0, %v4207_v41, %v4205_v25  ;;  %v4217_v59 = vpop.permute.xlu2 %1079 }
 0x2d4   :  { %1482 = vmatpush.msrb.mxu1 %v939_v53  ;;  %v1227_v39 = vmul.f32 %v1211_v30, %v1197_v9  ;;  %v817_v30 = vld [vmem:[#allocation3 + $0x1f0] sm:$0xff]  ;;  %v6067_v9 = vld [vmem:[#allocation63_spill] sm:$0xff] }
 0x2d6   :  { %1483 = vmatpush.msrb.mxu1 %v935_v2  ;;  %1515 = vmatpush.msrb.mxu2 %v1227_v39  ;;  %v1203_v39 = vld [vmem:[#allocation3 + $0x400] sm:$0xff] }
 0x2d8   :  { %1484 = vmatpush.msrb.mxu1 %v931_v26  ;;  %v4241_v26 = vld [vmem:[%s5841_s6 + $0x8] sm:$0xff] }
 0x2d9   :  { %6069 = vst [vmem:[#allocation51_spill] sm:$0xff] %v4241_v26 }
 0x2da   :  { %v4219_v13 = vpop.permute.xlu1 %1155  ;;  %1485 = vmatpush.msrb.mxu1 %v6064_v3  ;;  %v4222_v41 = vpop.permute.xlu0 %1165  ;;  %v794_v3 = vsel %vm137_vm5, %v6067_v9, %v4001_v12  ;;  %v1120_v12 = vld [vmem:[#allocation3 + $0x3e8] sm:$0xff] }
 0x2db   :  { %6063 = vst [vmem:[#allocation64_spill] sm:$0xff] %v4219_v13  ;;  %v1196_v53 = vsel %vm241_vm0, %v4160_v43, %v4222_v41  ;;  %v1195_v2 = vsel %vm241_vm0, %v4219_v13, %v4179_v44  ;;  %v4252_v13 = vpop.permute.xlu2 %1085  ;;  %v6075_v43 = vld [vmem:[#allocation38_spill] sm:$0xff] }
 0x2dc   :  { %6065 = vst [vmem:[#allocation48_spill] sm:$0xff] %v4222_v41  ;;  %1486 = vmatpush.msrb.mxu1 %v6066_v37  ;;  %v1223_v15 = vmul.f32 %v1207_v19, %v1196_v53  ;;  %v1219_v11 = vmul.f32 %v1203_v39, %v1195_v2  ;;  %v4246_v37 = vld [vmem:[%s5841_s6 + $0x10] sm:$0xff]  ;;  %v6071_v19 = vld [vmem:[#allocation56_spill] sm:$0xff]  ;;  %v6072_v53 = vld [vmem:[#allocation49_spill] sm:$0xff]  ;;  %v833_v2 = vmul.f32 %v817_v30, %v794_v3 }
 0x2dd   :  { %6070 = vst [vmem:[#allocation37_spill] sm:$0xff] %v4246_v37  ;;  %v793_v9 = vsel %vm137_vm5, %v6072_v53, %v6071_v19  ;;  %v6073_v39 = vld [vmem:[#allocation6_spill] sm:$0xff]  ;;  %v809_v53 = vld [vmem:[#allocation3 + $0x1b0] sm:$0xff] }
 0x2de   :  { %1487 = vmatpush.msrb.mxu1 %v6068_v51  ;;  %1516 = vmatpush.msrb.mxu2 %v1223_v15  ;;  %v813_v15 = vld [vmem:[#allocation3 + $0x1d0] sm:$0xff]  ;;  %v6074_v51 = vld [vmem:[#allocation46_spill] sm:$0xff] }
 0x2df   :  { %v792_v7 = vsel %vm137_vm5, %v6075_v43, %v6074_v51  ;;  %v829_v3 = vmul.f32 %v813_v15, %v793_v9  ;;  %v1097_v43 = vsel %vm216_vm1, %v4077_v63, %v4217_v59  ;;  %v1116_v9 = vld [vmem:[#allocation3 + $0x3c8] sm:$0xff]  ;;  %v721_v63 = vld [vmem:[#allocation3 + $0x170] sm:$0xff] }
 0x2e0   :  { %1488 = vmatpush.msrb.mxu1 %v6073_v39  ;;  %1517 = vmatpush.msrb.mxu2 %v1219_v11  ;;  %v6076_v39 = vld [vmem:[#allocation33_spill] sm:$0xff]  ;;  %v6077_v11 = vld [vmem:[#allocation16_spill] sm:$0xff]  ;;  %v825_v41 = vmul.f32 %v809_v53, %v792_v7  ;;  %v1132_v17 = vmul.f32 %v1116_v9, %v1097_v43 }
 0x2e1   :  { %1489 = vmatmul.f32.vlgmr.msrb.gmra.mxu1 %v4241_v26  ;;  %3049 = vmatmul.msk.f32.vlgmr.msrb.gmra.mxu2 %vm1431_vm9, %v4246_v37  ;;  %v791_v44 = vsel %vm137_vm5, %v6077_v11, %v6076_v39  ;;  %v805_v37 = vld [vmem:[#allocation3 + $0x190] sm:$0xff]  ;;  %v6078_v11 = vld [vmem:[#allocation61_spill] sm:$0xff] }
 0x2e2   :  { %1618 = vmatpush.msra.mxu2 %v833_v2  ;;  %v4262_v19 = vpop.permute.xlu1 %1089  ;;  %v1082_v30 = vpop.permute.xlu0 %1081  ;;  %v698_v39 = vsel %vm112_vm4, %v6078_v11, %v3933_v47  ;;  %v821_v31 = vmul.f32 %v805_v37, %v791_v44  ;;  %v6079_v7 = vld [vmem:[#allocation57_spill] sm:$0xff]  ;;  %v6080_v37 = vld [vmem:[#allocation47_spill] sm:$0xff]  ;;  %v709_v9 = vld [vmem:[#allocation3 + $0x110] sm:$0xff] }
 0x2e3   :  { %v1094_v51 = vsel %vm216_vm1, %v1082_v30, %v4262_v19  ;;  %v1098_v2 = vsel %vm216_vm1, %v4126_v34, %v1082_v30  ;;  %v4285_v34 = vld [vmem:[%s5841_s6 + $0x20] sm:$0xff]  ;;  %v737_v44 = vmul.f32 %v721_v63, %v698_v39  ;;  %v4300_v53 = vpop.permute.xlu2 %985  ;;  %v713_v30 = vld [vmem:[#allocation3 + $0x130] sm:$0xff] }
 0x2e4   :  { %v1136_v15 = vmul.f32 %v1120_v12, %v1098_v2  ;;  %v1137_v26 = vmul.f32 %v1121_v10, %v1094_v51  ;;  %1619 = vmatpush.msra.mxu2 %v829_v3  ;;  %v4290_v10 = vld [vmem:[%s5841_s6 + $0x28] sm:$0xff]  ;;  %v697_v12 = vsel %vm112_vm4, %v3786_v50, %v6079_v7  ;;  %v696_v51 = vsel %vm112_vm4, %v3686_v52, %v6080_v37  ;;  %v1112_v3 = vld [vmem:[#allocation3 + $0x3a8] sm:$0xff]  ;;  %v1117_v50 = vld [vmem:[#allocation3 + $0x3d0] sm:$0xff] }
 0x2e5   :  { %v6081_v39 = vld [vmem:[#allocation24_spill] sm:$0xff]  ;;  %v729_v11 = vmul.f32 %v713_v30, %v696_v51  ;;  %v4333_v51 = vld [vmem:[%s5841_s6 + $0x40] sm:$0xff]  ;;  %v6085_v30 = vld [vmem:[#allocation55_spill] sm:$0xff] }
 0x2e6   :  { %1620 = vmatpush.msra.mxu2 %v825_v41  ;;  %1560 = vmatpush.msra.mxu0 %v1136_v15  ;;  %v717_v41 = vld [vmem:[#allocation3 + $0x150] sm:$0xff]  ;;  %v695_v52 = vsel %vm112_vm4, %v3612_v5, %v6081_v39  ;;  %v6082_v5 = vld [vmem:[#allocation62_spill] sm:$0xff]  ;;  %6084 = vst [vmem:[#allocation23_spill] sm:$0xff] %v4333_v51 }
 0x2e7   :  { %1647 = vmatpush.msra.mxu3 %v1137_v26  ;;  %v625_v39 = vld [vmem:[#allocation3 + $0xf0] sm:$0xff] }
 0x2e8   :  { %1621 = vmatpush.msra.mxu2 %v821_v31  ;;  %1561 = vmatpush.msra.mxu0 %v1132_v17  ;;  %v733_v17 = vmul.f32 %v717_v41, %v697_v12  ;;  %v1113_v41 = vld [vmem:[#allocation3 + $0x3b0] sm:$0xff] }
 0x2e9   :  { %1492 = vmatmul.f32.gmra.mxu1 %v4285_v34  ;;  %3050 = vmatmul.msk.f32.gmra.mxu2 %vm1431_vm9, %v4290_v10 }
 0x2ea   :  { %1622 = vmatpush.msra.mxu2 %v737_v44  ;;  %v1078_v26 = vpop.permute.xlu1 %1077  ;;  %v4305_v31 = vpop.permute.xlu0 %1087  ;;  %v725_v44 = vmul.f32 %v709_v9, %v695_v52  ;;  %v1108_v52 = vld [vmem:[#allocation3 + $0x388] sm:$0xff] }
 0x2eb   :  { %v1096_v43 = vsel %vm216_vm1, %v4145_v14, %v1078_v26  ;;  %v1093_v2 = vsel %vm216_vm1, %v4217_v59, %v4305_v31  ;;  %v1092_v15 = vsel %vm216_vm1, %v1078_v26, %v4252_v13  ;;  %v602_v14 = vsel %vm87_vm6, %v6082_v5, %v3925_v0  ;;  %v4328_v59 = vld [vmem:[%s5841_s6 + $0x38] sm:$0xff]  ;;  %v6087_v5 = vld [vmem:[#allocation25_spill] sm:$0xff] }
 0x2ec   :  { %1623 = vmatpush.msra.mxu2 %v733_v17  ;;  %v1128_v63 = vmul.f32 %v1112_v3, %v1096_v43  ;;  %v1133_v12 = vmul.f32 %v1117_v50, %v1093_v2  ;;  %6083 = vst [vmem:[#allocation41_spill] sm:$0xff] %v4328_v59  ;;  %v1129_v26 = vmul.f32 %v1113_v41, %v1092_v15  ;;  %v621_v50 = vld [vmem:[#allocation3 + $0xd0] sm:$0xff]  ;;  %v6086_v2 = vld [vmem:[#allocation39_spill] sm:$0xff] }
 0x2ed   :  { %v601_v3 = vsel %vm87_vm6, %v3764_v54, %v6085_v30  ;;  %v641_v17 = vmul.f32 %v625_v39, %v602_v14  ;;  %v1109_v43 = vld [vmem:[#allocation3 + $0x390] sm:$0xff]  ;;  %v600_v9 = vsel %vm87_vm6, %v3695_v55, %v6086_v2  ;;  %v1024_v41 = vld [vmem:[#allocation3 + $0x368] sm:$0xff]  ;;  %v6088_v14 = vld [vmem:[#allocation17_spill] sm:$0xff] }
 0x2ee   :  { %1624 = vmatpush.msra.mxu2 %v729_v11  ;;  %1562 = vmatpush.msra.mxu0 %v1128_v63  ;;  %v617_v54 = vld [vmem:[#allocation3 + $0xb0] sm:$0xff]  ;;  %v1002_v63 = vsel %vm191_vm2, %v4156_v46, %v4300_v53  ;;  %v6089_v2 = vld [vmem:[#allocation69_spill] sm:$0xff]  ;;  %v6090_v30 = vld [vmem:[#allocation59_spill] sm:$0xff] }
 0x2ef   :  { %1648 = vmatpush.msra.mxu3 %v1133_v12  ;;  %v637_v12 = vmul.f32 %v621_v50, %v601_v3  ;;  %v506_v0 = vsel %vm62_vm7, %v6090_v30, %v6089_v2  ;;  %v4371_v3 = vld [vmem:[%s5841_s6 + $0x50] sm:$0xff]  ;;  %v529_v50 = vld [vmem:[#allocation3 + $0x70] sm:$0xff] }
 0x2f0   :  { %1625 = vmatpush.msra.mxu2 %v725_v44  ;;  %v599_v44 = vsel %vm87_vm6, %v6088_v14, %v6087_v5  ;;  %6091 = vst [vmem:[#allocation28_spill] sm:$0xff] %v4371_v3  ;;  %v525_v30 = vld [vmem:[#allocation3 + $0x50] sm:$0xff] }
 0x2f1   :  { %1649 = vmatpush.msra.mxu3 %v1129_v26  ;;  %1495 = vmatmul.f32.gmra.mxu1 %v4328_v59  ;;  %v4362_v26 = vpop.permute.xlu2 %991 }
 0x2f2   :  { %3051 = vmatmul.msk.f32.gmra.mxu2 %vm1431_vm9, %v4333_v51  ;;  %v4346_v15 = vpop.permute.xlu1 %1083  ;;  %v1076_v11 = vpop.permute.xlu0 %1075  ;;  %v633_v51 = vmul.f32 %v617_v54, %v600_v9  ;;  %v6092_v9 = vld [vmem:[#allocation50_spill] sm:$0xff]  ;;  %v1020_v54 = vld [vmem:[#allocation3 + $0x348] sm:$0xff] }
 0x2f3   :  { %1626 = vmatpush.msra.mxu2 %v641_v17  ;;  %v1091_v39 = vsel %vm216_vm1, %v1076_v11, %v4346_v15  ;;  %v1095_v55 = vsel %vm216_vm1, %v4158_v48, %v1076_v11  ;;  %v613_v17 = vld [vmem:[#allocation3 + $0x90] sm:$0xff]  ;;  %v1040_v48 = vmul.f32 %v1024_v41, %v1002_v63  ;;  %v545_v11 = vmul.f32 %v529_v50, %v506_v0 }
 0x2f4   :  { %v1124_v59 = vmul.f32 %v1108_v52, %v1095_v55  ;;  %v1125_v46 = vmul.f32 %v1109_v43, %v1091_v39  ;;  %v629_v52 = vmul.f32 %v613_v17, %v599_v44  ;;  %v4376_v43 = vld [vmem:[%s5841_s6 + $0x58] sm:$0xff] }
 0x2f5   :  { %1627 = vmatpush.msra.mxu2 %v637_v12  ;;  %v1025_v63 = vld [vmem:[#allocation3 + $0x370] sm:$0xff] }
 0x2f6   :  { %1563 = vmatpush.msra.mxu0 %v1124_v59  ;;  %1650 = vmatpush.msra.mxu3 %v1125_v46  ;;  %v505_v59 = vsel %vm62_vm7, %v3772_v61, %v6092_v9  ;;  %v521_v41 = vld [vmem:[#allocation3 + $0x30] sm:$0xff]  ;;  %v6094_v46 = vld [vmem:[#allocation26_spill] sm:$0xff] }
 0x2f7   :  { %1628 = vmatpush.msra.mxu2 %v633_v51  ;;  %v6093_v51 = vld [vmem:[#allocation40_spill] sm:$0xff]  ;;  %v541_v44 = vmul.f32 %v525_v30, %v505_v59  ;;  %v503_v17 = vsel %vm62_vm7, %v3582_v16, %v6094_v46  ;;  %v1105_v16 = vsel %vm216_vm1, %v4305_v31, %v4124_v28  ;;  %v1118_v30 = vld [vmem:[#allocation3 + $0x3d8] sm:$0xff]  ;;  %v1103_v28 = vsel %vm216_vm1, %v4346_v15, %v4107_v29  ;;  %v1012_v31 = vld [vmem:[#allocation3 + $0x308] sm:$0xff] }
 0x2f8   :  { %1564 = vmatpush.msra.mxu0 %v1040_v48  ;;  %v504_v39 = vsel %vm62_vm7, %v3697_v56, %v6093_v51  ;;  %v1021_v61 = vld [vmem:[#allocation3 + $0x350] sm:$0xff]  ;;  %v906_v15 = vsel %vm166_vm3, %v6054_v4, %v3999_v62  ;;  %v1009_v4 = vsel %vm191_vm2, %v4362_v26, %v4007_v23 }
 0x2f9   :  { %1629 = vmatpush.msra.mxu2 %v629_v52  ;;  %1498 = vmatmul.f32.gmra.mxu1 %v4371_v3  ;;  %v517_v52 = vld [vmem:[#allocation3 + $0x10] sm:$0xff]  ;;  %v1106_v3 = vsel %vm216_vm1, %v4262_v19, %v4043_v40  ;;  %v1104_v40 = vsel %vm216_vm1, %v4252_v13, %v4147_v45  ;;  %v1016_v19 = vld [vmem:[#allocation3 + $0x328] sm:$0xff] }
 0x2fa   :  { %3052 = vmatmul.msk.f32.gmra.mxu2 %vm1431_vm9, %v4376_v43  ;;  %v984_v55 = vpop.permute.xlu1 %983  ;;  %v994_v12 = vpop.permute.xlu0 %993  ;;  %v533_v59 = vmul.f32 %v517_v52, %v503_v17  ;;  %v928_v17 = vld [vmem:[#allocation3 + $0x2e8] sm:$0xff]  ;;  %v1013_v23 = vld [vmem:[#allocation3 + $0x310] sm:$0xff] }
 0x2fb   :  { %1630 = vmatpush.msra.mxu2 %v545_v11  ;;  %v997_v14 = vsel %vm191_vm2, %v984_v55, %v4362_v26  ;;  %v1001_v0 = vsel %vm191_vm2, %v4128_v20, %v984_v55  ;;  %v998_v56 = vsel %vm191_vm2, %v4300_v53, %v994_v12  ;;  %v1122_v11 = vld [vmem:[#allocation3 + $0x3f8] sm:$0xff]  ;;  %v537_v20 = vmul.f32 %v521_v41, %v504_v39  ;;  %v4406_v55 = vpop.permute.xlu2 %979 }
 0x2fc   :  { %v1036_v48 = vmul.f32 %v1020_v54, %v1001_v0  ;;  %v1041_v50 = vmul.f32 %v1025_v63, %v998_v56  ;;  %v1037_v53 = vmul.f32 %v1021_v61, %v997_v14  ;;  %v1138_v54 = vmul.f32 %v1122_v11, %v1106_v3  ;;  %v1017_v63 = vld [vmem:[#allocation3 + $0x330] sm:$0xff]  ;;  %v1114_v39 = vld [vmem:[#allocation3 + $0x3b8] sm:$0xff] }
 0x2fd   :  { %1631 = vmatpush.msra.mxu2 %v541_v44  ;;  %v1134_v61 = vmul.f32 %v1118_v30, %v1105_v16  ;;  %v999_v3 = vsel %vm191_vm2, %v4103_v1, %v4406_v55  ;;  %v1110_v0 = vld [vmem:[#allocation3 + $0x398] sm:$0xff]  ;;  %v1130_v29 = vmul.f32 %v1114_v39, %v1104_v40  ;;  %v6096_v16 = vld [vmem:[#allocation32_spill] sm:$0xff] }
 0x2fe   :  { %1565 = vmatpush.msra.mxu0 %v1036_v48  ;;  %1651 = vmatpush.msra.mxu3 %v1041_v50  ;;  %v1026_v1 = vld [vmem:[#allocation3 + $0x378] sm:$0xff]  ;;  %v1028_v48 = vmul.f32 %v1012_v31, %v999_v3  ;;  %v6095_v50 = vld [vmem:[#allocation60_spill] sm:$0xff]  ;;  %v916_v3 = vld [vmem:[#allocation3 + $0x288] sm:$0xff] }
 0x2ff   :  { %1632 = vmatpush.msra.mxu2 %v537_v20  ;;  %v905_v52 = vsel %vm166_vm3, %v6056_v21, %v6095_v50  ;;  %v1022_v11 = vld [vmem:[#allocation3 + $0x358] sm:$0xff]  ;;  %v924_v20 = vld [vmem:[#allocation3 + $0x2c8] sm:$0xff] }
 0x300   :  { %1652 = vmatpush.msra.mxu3 %v1037_v53  ;;  %v1018_v21 = vld [vmem:[#allocation3 + $0x338] sm:$0xff] }
 0x301   :  { %1633 = vmatpush.msra.mxu2 %v533_v59  ;;  %v903_v59 = vsel %vm166_vm3, %v6061_v24, %v6096_v16  ;;  %v6097_v26 = vld [vmem:[#allocation45_spill] sm:$0xff]  ;;  %v940_v24 = vmul.f32 %v924_v20, %v905_v52  ;;  %v6099_v52 = vld [vmem:[#allocation27_spill] sm:$0xff] }
 0x302   :  { %v990_v41 = vpop.permute.xlu1 %989  ;;  %v982_v14 = vpop.permute.xlu0 %981  ;;  %1634 = vmatmul.f32.vlgmr.msra.gmra.mxu2 %v4014_v18  ;;  %v1010_v18 = vsel %vm191_vm2, %v994_v12, %v4105_v60  ;;  %v944_v12 = vmul.f32 %v928_v17, %v906_v15  ;;  %v904_v40 = vsel %vm166_vm3, %v6058_v36, %v6097_v26  ;;  %v1014_v39 = vld [vmem:[#allocation3 + $0x318] sm:$0xff]  ;;  %v913_v15 = vsel %vm166_vm3, %v4035_v58, %v6057_v22  ;;  %v1208_v22 = vld [vmem:[#allocation3 + $0x428] sm:$0xff] }
 0x303   :  { %1734 = vmatpush.msrb.mxu2 %v1138_v54  ;;  %v996_v45 = vsel %vm191_vm2, %v982_v14, %v990_v41  ;;  %v1000_v13 = vsel %vm191_vm2, %v4177_v6, %v982_v14  ;;  %v1126_v6 = vmul.f32 %v1110_v0, %v1103_v28  ;;  %v4445_v53 = vpop.permute.xlu2 %1175  ;;  %v1042_v60 = vmul.f32 %v1026_v1, %v1010_v18  ;;  %v1216_v54 = vld [vmem:[#allocation3 + $0x468] sm:$0xff]  ;;  %v929_v0 = vld [vmem:[#allocation3 + $0x2f0] sm:$0xff]  ;;  %v926_v1 = vld [vmem:[#allocation3 + $0x2d8] sm:$0xff] }
 0x304   :  { %v1032_v56 = vmul.f32 %v1016_v19, %v1000_v13  ;;  %v1033_v44 = vmul.f32 %v1017_v63, %v996_v45  ;;  %v1008_v30 = vsel %vm191_vm2, %v990_v41, %v4069_v38  ;;  %v1038_v19 = vmul.f32 %v1022_v11, %v1009_v4  ;;  %v920_v14 = vld [vmem:[#allocation3 + $0x2a8] sm:$0xff] }
 0x305   :  { %1735 = vmatpush.msrb.mxu2 %v1134_v61  ;;  %v1212_v28 = vld [vmem:[#allocation3 + $0x448] sm:$0xff]  ;;  %v1193_v38 = vsel %vm241_vm0, %v4205_v25, %v4445_v53  ;;  %v902_v25 = vsel %vm166_vm3, %v3999_v62, %v3962_v49  ;;  %v901_v62 = vsel %vm166_vm3, %v6095_v50, %v4035_v58  ;;  %v900_v18 = vsel %vm166_vm3, %v6097_v26, %v4037_v35  ;;  %v922_v58 = vld [vmem:[#allocation3 + $0x2b8] sm:$0xff]  ;;  %v6098_v50 = vld [vmem:[#allocation18_spill] sm:$0xff] }
 0x306   :  { %1566 = vmatpush.msra.mxu0 %v1032_v56  ;;  %1653 = vmatpush.msra.mxu3 %v1033_v44  ;;  %v936_v56 = vmul.f32 %v920_v14, %v904_v40  ;;  %v1228_v44 = vmul.f32 %v1212_v28, %v1193_v38  ;;  %v911_v11 = vsel %vm166_vm3, %v6099_v52, %v6098_v50  ;;  %v918_v26 = vld [vmem:[#allocation3 + $0x298] sm:$0xff]  ;;  %v1204_v40 = vld [vmem:[#allocation3 + $0x408] sm:$0xff] }
 0x307   :  { %1736 = vmatpush.msrb.mxu2 %v1130_v29  ;;  %v932_v29 = vmul.f32 %v916_v3, %v903_v59  ;;  %v6101_v59 = vld [vmem:[#allocation31_spill] sm:$0xff]  ;;  %v934_v38 = vmul.f32 %v918_v26, %v911_v11  ;;  %v6105_v3 = vld [vmem:[#allocation10_spill] sm:$0xff]  ;;  %v810_v50 = vld [vmem:[#allocation3 + $0x1b8] sm:$0xff] }
 0x308   :  { %1567 = vmatpush.msra.mxu0 %v1028_v48  ;;  %v921_v48 = vld [vmem:[#allocation3 + $0x2b0] sm:$0xff]  ;;  %v6119_v11 = vld [vmem:[#allocation33_spill] sm:$0xff] }
 0x309   :  { %1737 = vmatpush.msrb.mxu2 %v1126_v6  ;;  %v912_v6 = vsel %vm166_vm3, %v4037_v35, %v6059_v33  ;;  %v899_v35 = vsel %vm166_vm3, %v6096_v16, %v6099_v52  ;;  %v6100_v33 = vld [vmem:[#allocation73_spill] sm:$0xff] }
 0x30a   :  { %v4458_v63 = vpop.permute.xlu1 %1177  ;;  %1568 = vmatpush.msra.mxu0 %v944_v12  ;;  %v988_v61 = vpop.permute.xlu0 %987  ;;  %1637 = vmatmul.f32.gmra.mxu2 %v4048_v8  ;;  %v1034_v8 = vmul.f32 %v1018_v21, %v1008_v30  ;;  %v6102_v21 = vld [vmem:[#allocation48_spill] sm:$0xff]  ;;  %v6118_v52 = vld [vmem:[#allocation29_spill] sm:$0xff] }
 0x30b   :  { %1738 = vmatpush.msrb.mxu2 %v1042_v60  ;;  %v1194_v36 = vsel %vm241_vm0, %v4149_v27, %v4458_v63  ;;  %v995_v41 = vsel %vm191_vm2, %v4406_v55, %v988_v61  ;;  %v1007_v31 = vsel %vm191_vm2, %v988_v61, %v4071_v57  ;;  %v914_v27 = vsel %vm166_vm3, %v3962_v49, %v6055_v42  ;;  %v930_v57 = vld [vmem:[#allocation3 + $0x2f8] sm:$0xff]  ;;  %v925_v42 = vld [vmem:[#allocation3 + $0x2d0] sm:$0xff]  ;;  %v1186_v14 = vpop.permute.xlu2 %1185 }
 0x30c   :  { %v1232_v45 = vmul.f32 %v1216_v54, %v1194_v36  ;;  %v1029_v13 = vmul.f32 %v1013_v23, %v995_v41  ;;  %v1030_v55 = vmul.f32 %v1014_v39, %v1007_v31  ;;  %1569 = vmatpush.msra.mxu0 %v940_v24  ;;  %v945_v49 = vmul.f32 %v929_v0, %v902_v25  ;;  %v917_v23 = vld [vmem:[#allocation3 + $0x290] sm:$0xff]  ;;  %v6104_v24 = vld [vmem:[#allocation15_spill] sm:$0xff]  ;;  %v818_v25 = vld [vmem:[#allocation3 + $0x1f8] sm:$0xff] }
 0x30d   :  { %1739 = vmatpush.msrb.mxu2 %v1038_v19  ;;  %v946_v17 = vmul.f32 %v930_v57, %v914_v27  ;;  %v941_v20 = vmul.f32 %v925_v42, %v901_v62  ;;  %v942_v60 = vmul.f32 %v926_v1, %v913_v15  ;;  %v937_v54 = vmul.f32 %v921_v48, %v900_v18  ;;  %v6103_v19 = vld [vmem:[#allocation77_spill] sm:$0xff]  ;;  %v1217_v36 = vld [vmem:[#allocation3 + $0x470] sm:$0xff]  ;;  %v6108_v0 = vld [vmem:[#allocation7_spill] sm:$0xff] }
 0x30e   :  { %1601 = vmatpush.msra.mxu1 %v1232_v45  ;;  %1570 = vmatpush.msra.mxu0 %v936_v56  ;;  %v938_v61 = vmul.f32 %v922_v58, %v912_v6  ;;  %v933_v28 = vmul.f32 %v917_v23, %v899_v35  ;;  %v1190_v41 = vsel %vm241_vm0, %v4458_v63, %v1186_v14  ;;  %v6107_v45 = vld [vmem:[#allocation72_spill] sm:$0xff]  ;;  %v6109_v27 = vld [vmem:[#allocation58_spill] sm:$0xff]  ;;  %v814_v62 = vld [vmem:[#allocation3 + $0x1d8] sm:$0xff] }
 0x30f   :  { %1740 = vmatpush.msrb.mxu2 %v1034_v8  ;;  %1654 = vmatpush.msra.mxu3 %v1029_v13  ;;  %v6106_v8 = vld [vmem:[#allocation70_spill] sm:$0xff]  ;;  %v1233_v56 = vmul.f32 %v1217_v36, %v1190_v41  ;;  %v6111_v57 = vld [vmem:[#allocation36_spill] sm:$0xff]  ;;  %v6114_v42 = vld [vmem:[#allocation37_spill] sm:$0xff] }
 0x310   :  { %1602 = vmatpush.msra.mxu1 %v1228_v44  ;;  %1571 = vmatpush.msra.mxu0 %v932_v29  ;;  %v790_v13 = vsel %vm137_vm5, %v6107_v45, %v6106_v8  ;;  %v6112_v44 = vld [vmem:[#allocation34_spill] sm:$0xff]  ;;  %v1213_v29 = vld [vmem:[#allocation3 + $0x450] sm:$0xff]  ;;  %v6122_v23 = vld [vmem:[#allocation19_spill] sm:$0xff] }
 0x311   :  { %1741 = vmatpush.msrb.mxu2 %v1030_v55  ;;  %1655 = vmatpush.msra.mxu3 %v945_v49  ;;  %v6110_v55 = vld [vmem:[#allocation56_spill] sm:$0xff]  ;;  %v834_v15 = vmul.f32 %v818_v25, %v790_v13  ;;  %v6113_v49 = vld [vmem:[#allocation51_spill] sm:$0xff]  ;;  %v6115_v18 = vld [vmem:[#allocation42_spill] sm:$0xff] }
 0x312   :  { %v4503_v4 = vpop.permute.xlu1 %1171  ;;  %v1174_v12 = vpop.permute.xlu0 %1173  ;;  %1640 = vmatmul.f32.gmra.mxu2 %v6100_v33  ;;  %1572 = vmatpush.msra.mxu0 %v6101_v59  ;;  %v789_v63 = vsel %vm137_vm5, %v6110_v55, %v6109_v27  ;;  %v6117_v6 = vld [vmem:[#allocation74_spill] sm:$0xff]  ;;  %v806_v59 = vld [vmem:[#allocation3 + $0x198] sm:$0xff]  ;;  %v1205_v36 = vld [vmem:[#allocation3 + $0x410] sm:$0xff] }
 0x313   :  { %1742 = vmatpush.msrb.mxu2 %v946_v17  ;;  %v1192_v30 = vsel %vm241_vm0, %v6102_v21, %v1174_v12  ;;  %v1191_v39 = vsel %vm241_vm0, %v6103_v19, %v4503_v4  ;;  %1656 = vmatpush.msra.mxu3 %v941_v20  ;;  %v6116_v17 = vld [vmem:[#allocation46_spill] sm:$0xff]  ;;  %v787_v20 = vsel %vm137_vm5, %v6119_v11, %v6118_v52  ;;  %v1218_v21 = vld [vmem:[#allocation3 + $0x478] sm:$0xff]  ;;  %v6129_v13 = vld [vmem:[#allocation8_spill] sm:$0xff] }
 0x314   :  { %v1224_v16 = vmul.f32 %v1208_v22, %v1192_v30  ;;  %1573 = vmatpush.msra.mxu0 %v6104_v24  ;;  %v1220_v31 = vmul.f32 %v1204_v40, %v1191_v39  ;;  %v788_v48 = vsel %vm137_vm5, %v6116_v17, %v6115_v18  ;;  %v830_v33 = vmul.f32 %v814_v62, %v789_v63  ;;  %v6121_v30 = vld [vmem:[#allocation76_spill] sm:$0xff]  ;;  %v6124_v39 = vld [vmem:[#allocation71_spill] sm:$0xff]  ;;  %v6125_v24 = vld [vmem:[#allocation13_spill] sm:$0xff] }
 0x315   :  { %1743 = vmatpush.msrb.mxu2 %v942_v60  ;;  %1657 = vmatpush.msra.mxu3 %v937_v54  ;;  %v6120_v60 = vld [vmem:[#allocation21_spill] sm:$0xff]  ;;  %v1202_v54 = vsel %vm241_vm0, %v1186_v14, %v6121_v30  ;;  %v6123_v40 = vld [vmem:[#allocation12_spill] sm:$0xff]  ;;  %v826_v19 = vmul.f32 %v810_v50, %v788_v48  ;;  %v822_v14 = vmul.f32 %v806_v59, %v787_v20  ;;  %v6130_v27 = vld [vmem:[#allocation75_spill] sm:$0xff] }
 0x316   :  { %1574 = vmatpush.msra.mxu0 %v6105_v3  ;;  %1603 = vmatpush.msra.mxu1 %v1224_v16  ;;  %v694_v16 = vsel %vm112_vm4, %v3933_v47, %v6124_v39  ;;  %v1214_v41 = vld [vmem:[#allocation3 + $0x458] sm:$0xff]  ;;  %v6133_v17 = vld [vmem:[#allocation30_spill] sm:$0xff]  ;;  %v6134_v48 = vld [vmem:[#allocation24_spill] sm:$0xff] }
 0x317   :  { %1744 = vmatpush.msrb.mxu2 %v938_v61  ;;  %1658 = vmatpush.msra.mxu3 %v933_v28  ;;  %v1180_v61 = vpop.permute.xlu2 %1179  ;;  %v722_v28 = vld [vmem:[#allocation3 + $0x178] sm:$0xff]  ;;  %v6135_v52 = vld [vmem:[#allocation67_spill] sm:$0xff]  ;;  %v6136_v11 = vld [vmem:[#allocation68_spill] sm:$0xff] }
 0x318   :  { %1575 = vmatpush.msra.mxu0 %v6108_v0  ;;  %1604 = vmatpush.msra.mxu1 %v1220_v31  ;;  %v6126_v31 = vld [vmem:[#allocation66_spill] sm:$0xff]  ;;  %v6127_v25 = vld [vmem:[#allocation9_spill] sm:$0xff]  ;;  %v738_v63 = vmul.f32 %v722_v28, %v694_v16  ;;  %v598_v20 = vsel %vm87_vm6, %v6136_v11, %v6135_v52 }
 0x319   :  { %1745 = vmatpush.msrb.mxu2 %v934_v38  ;;  %1659 = vmatpush.msra.mxu3 %v6111_v57  ;;  %v1234_v38 = vmul.f32 %v1218_v21, %v1202_v54  ;;  %v6128_v47 = vld [vmem:[#allocation53_spill] sm:$0xff]  ;;  %v6137_v59 = vld [vmem:[#allocation54_spill] sm:$0xff]  ;;  %v6138_v21 = vld [vmem:[#allocation55_spill] sm:$0xff] }
 0x31a   :  { %1576 = vmatmul.f32.vlgmr.msra.gmra.mxu0 %v6113_v49  ;;  %3053 = vmatmul.msk.f32.vlgmr.msra.gmra.mxu1 %vm1431_vm9, %v6114_v42  ;;  %v1184_v1 = vpop.permute.xlu0 %1183  ;;  %v1182_v22 = vpop.permute.xlu1 %1181  ;;  %v693_v8 = vsel %vm112_vm4, %v6079_v7, %v6128_v47  ;;  %v718_v0 = vld [vmem:[#allocation3 + $0x158] sm:$0xff]  ;;  %v597_v30 = vsel %vm87_vm6, %v6138_v21, %v6137_v59  ;;  %v6146_v47 = vld [vmem:[#allocation35_spill] sm:$0xff] }
 0x31b   :  { %1746 = vmatpush.msrb.mxu2 %v6112_v44  ;;  %1688 = vmatpush.msrb.mxu0 %v1233_v56  ;;  %v1189_v58 = vsel %vm241_vm0, %v4445_v53, %v1184_v1  ;;  %v1209_v53 = vld [vmem:[#allocation3 + $0x430] sm:$0xff]  ;;  %v1188_v26 = vsel %vm241_vm0, %v1174_v12, %v1182_v22  ;;  %v1187_v12 = vsel %vm241_vm0, %v4503_v4, %v1180_v61  ;;  %v1210_v4 = vld [vmem:[#allocation3 + $0x438] sm:$0xff]  ;;  %v6131_v56 = vld [vmem:[#allocation43_spill] sm:$0xff] }
 0x31c   :  { %1643 = vmatmul.f32.gmra.mxu2 %v6117_v6  ;;  %1705 = vmatpush.msrb.mxu1 %v834_v15  ;;  %v1229_v35 = vmul.f32 %v1213_v29, %v1189_v58  ;;  %v1201_v3 = vsel %vm241_vm0, %v1184_v1, %v6126_v31  ;;  %v1225_v45 = vmul.f32 %v1209_v53, %v1188_v26  ;;  %v714_v29 = vld [vmem:[#allocation3 + $0x138] sm:$0xff]  ;;  %v6132_v15 = vld [vmem:[#allocation64_spill] sm:$0xff]  ;;  %v6140_v53 = vld [vmem:[#allocation39_spill] sm:$0xff] }
 0x31d   :  { %1660 = vmatpush.msra.mxu3 %v6120_v60  ;;  %1747 = vmatpush.msrb.mxu2 %v6122_v23  ;;  %v1200_v55 = vsel %vm241_vm0, %v1182_v22, %v6130_v27  ;;  %v692_v57 = vsel %vm112_vm4, %v6080_v37, %v6131_v56  ;;  %v1221_v7 = vmul.f32 %v1205_v36, %v1187_v12  ;;  %v1206_v62 = vld [vmem:[#allocation3 + $0x418] sm:$0xff]  ;;  %v6139_v23 = vld [vmem:[#allocation44_spill] sm:$0xff] }
 0x31e   :  { %1706 = vmatpush.msrb.mxu1 %v830_v33  ;;  %1689 = vmatpush.msrb.mxu0 %v1229_v35  ;;  %v1230_v44 = vmul.f32 %v1214_v41, %v1201_v3  ;;  %v1199_v1 = vsel %vm241_vm0, %v1180_v61, %v6132_v15  ;;  %v734_v18 = vmul.f32 %v718_v0, %v693_v8  ;;  %v710_v58 = vld [vmem:[#allocation3 + $0x118] sm:$0xff]  ;;  %v6143_v61 = vld [vmem:[#allocation20_spill] sm:$0xff] }
 0x31f   :  { %1661 = vmatpush.msra.mxu3 %v6123_v40  ;;  %1748 = vmatpush.msrb.mxu2 %v6125_v24  ;;  %v691_v37 = vsel %vm112_vm4, %v6134_v48, %v6133_v17  ;;  %v1226_v22 = vmul.f32 %v1210_v4, %v1200_v55  ;;  %v730_v50 = vmul.f32 %v714_v29, %v692_v57  ;;  %v626_v35 = vld [vmem:[#allocation3 + $0xf8] sm:$0xff]  ;;  %v6141_v40 = vld [vmem:[#allocation23_spill] sm:$0xff]  ;;  %v6145_v31 = vld [vmem:[#allocation52_spill] sm:$0xff] }
 0x320   :  { %1707 = vmatpush.msrb.mxu1 %v826_v19  ;;  %1690 = vmatpush.msrb.mxu0 %v1225_v45  ;;  %v1222_v60 = vmul.f32 %v1206_v62, %v1199_v1  ;;  %v726_v33 = vmul.f32 %v710_v58, %v691_v37  ;;  %v622_v54 = vld [vmem:[#allocation3 + $0xd8] sm:$0xff]  ;;  %v596_v26 = vsel %vm87_vm6, %v6140_v53, %v6139_v23  ;;  %v6147_v8 = vld [vmem:[#allocation28_spill] sm:$0xff]  ;;  %v3086_v55 = vld [vmem:[%s5841_s6 + $0x30] sm:$0xff]  ;;  %v4683_v37 = vpop.permute.xlu2 %1423 }
 0x321   :  { %1662 = vmatpush.msra.mxu3 %v6127_v25  ;;  %1749 = vmatpush.msrb.mxu2 %v6129_v13  ;;  %v618_v19 = vld [vmem:[#allocation3 + $0xb8] sm:$0xff]  ;;  %v638_v16 = vmul.f32 %v622_v54, %v597_v30  ;;  %v595_v24 = vsel %vm87_vm6, %v6087_v5, %v6143_v61  ;;  %v501_v3 = vsel %vm62_vm7, %v6092_v9, %v6145_v31  ;;  %v6148_v13 = vld [vmem:[#allocation22_spill] sm:$0xff] }
 0x322   :  { %1663 = vmatmul.f32.vlgmr.msra.gmra.mxu3 %v6113_v49  ;;  %1708 = vmatpush.msrb.mxu1 %v822_v14  ;;  %v6142_v39 = vld [vmem:[#allocation41_spill] sm:$0xff]  ;;  %v634_v28 = vmul.f32 %v618_v19, %v596_v26  ;;  %v499_v9 = vsel %vm62_vm7, %v6094_v46, %v6148_v13  ;;  %v3085_v46 = vld [vmem:[%s5841_s6 + $0x18] sm:$0xff]  ;;  %v4674_v62 = vpop.permute.xlu1 %1418 }
 0x323   :  { %1775 = vmatpush.msrb.mxu3 %v1234_v38  ;;  %3054 = vmatmul.msk.f32.gmra.mxu1 %vm1431_vm9, %v4290_v10  ;;  %v614_v14 = vld [vmem:[#allocation3 + $0x98] sm:$0xff] }
 0x324   :  { %1579 = vmatmul.f32.gmra.mxu0 %v4285_v34  ;;  %1709 = vmatpush.msrb.mxu1 %v738_v63  ;;  %v6144_v38 = vld [vmem:[#allocation65_spill] sm:$0xff]  ;;  %v630_v41 = vmul.f32 %v614_v14, %v595_v24 }
 0x325   :  { %1776 = vmatpush.msrb.mxu3 %v1230_v44  ;;  %1691 = vmatpush.msrb.mxu0 %v1221_v7  ;;  %v502_v36 = vsel %vm62_vm7, %v6089_v2, %v6144_v38  ;;  %v530_v12 = vld [vmem:[#allocation3 + $0x78] sm:$0xff] }
 0x326   :  { %1710 = vmatpush.msrb.mxu1 %v734_v18  ;;  %1750 = vmatmul.f32.vlgmr.msrb.gmra.mxu2 %v6113_v49  ;;  %v642_v49 = vmul.f32 %v626_v35, %v598_v20  ;;  %v526_v25 = vld [vmem:[#allocation3 + $0x58] sm:$0xff]  ;;  %v546_v5 = vmul.f32 %v530_v12, %v502_v36 }
 0x327   :  { %1777 = vmatpush.msrb.mxu3 %v1226_v22  ;;  %v522_v2 = vld [vmem:[#allocation3 + $0x38] sm:$0xff]  ;;  %v542_v45 = vmul.f32 %v526_v25, %v501_v3 }
 0x328   :  { %1711 = vmatpush.msrb.mxu1 %v730_v50  ;;  %v518_v0 = vld [vmem:[#allocation3 + $0x18] sm:$0xff] }
 0x329   :  { %1778 = vmatpush.msrb.mxu3 %v1222_v60  ;;  %v3084_v27 = vld [vmem:[%s5841_s6] sm:$0xff]  ;;  %v1548_v60 = vpop.f32.mrf.mxu3 }
 0x32a   :  { %1666 = vmatmul.f32.gmra.mxu3 %v4285_v34  ;;  %1712 = vmatpush.msrb.mxu1 %v726_v33 }
 0x32b   :  { %3055 = vmatmul.msk.f32.gmra.mxu1 %vm1431_vm9, %v6141_v40 }
 0x32c   :  { %1582 = vmatmul.f32.gmra.mxu0 %v6142_v39  ;;  %1713 = vmatpush.msrb.mxu1 %v642_v49 }
 0x32e   :  { %1714 = vmatpush.msrb.mxu1 %v638_v16  ;;  %1753 = vmatmul.f32.gmra.mxu2 %v4285_v34  ;;  %v500_v34 = vsel %vm62_vm7, %v6093_v51, %v6146_v47  ;;  %v534_v51 = vmul.f32 %v518_v0, %v499_v9 }
 0x32f   :  { %v538_v4 = vmul.f32 %v522_v2, %v500_v34 }
 0x330   :  { %1715 = vmatpush.msrb.mxu1 %v634_v28 }
 0x331   :  { %v1551_v33 = vpop.f32.mrf.mxu3 }
 0x332   :  { %1669 = vmatmul.f32.gmra.mxu3 %v6142_v39  ;;  %1716 = vmatpush.msrb.mxu1 %v630_v41  ;;  %v1552_v31 = vadd.f32 %v1551_v33, %v4674_v62 }
 0x333   :  { %3056 = vmatmul.msk.f32.gmra.mxu1 %vm1431_vm9, %v4376_v43 }
 0x334   :  { %1585 = vmatmul.f32.gmra.mxu0 %v6147_v8  ;;  %1717 = vmatpush.msrb.mxu1 %v546_v5 }
 0x336   :  { %1718 = vmatpush.msrb.mxu1 %v542_v45  ;;  %1756 = vmatmul.f32.gmra.mxu2 %v6142_v39 }
 0x338   :  { %1719 = vmatpush.msrb.mxu1 %v538_v4 }
 0x339   :  { %v1554_v53 = vpop.f32.mrf.mxu3 }
 0x33a   :  { %1672 = vmatmul.f32.gmra.mxu3 %v6147_v8  ;;  %1720 = vmatpush.msrb.mxu1 %v534_v51 }
 0x33b   :  { %1721 = vmatmul.f32.vlgmr.msrb.gmra.mxu1 %v3084_v27 }
 0x33c   :  { %3057 = vmatmul.msk.f32.vlgmr.msrb.gmra.mxu0 %vm1431_vm9, %v6114_v42 }
 0x33e   :  { %1759 = vmatmul.f32.gmra.mxu2 %v6147_v8  ;;  %v1555_v8 = vadd.f32 %v1554_v53, %v4683_v37 }
 0x341   :  { %v1557_v16 = vpop.f32.mrf.mxu3 }
 0x342   :  { %3061 = vmatmul.msk.f32.vlgmr.msrb.gmra.mxu3 %vm1431_vm9, %v6114_v42  ;;  %v4663_v42 = vpop.permute.xlu0 %1413 }
 0x343   :  { %1724 = vmatmul.f32.gmra.mxu1 %v3085_v46  ;;  %v1549_v61 = vadd.f32 %v1548_v60, %v4663_v42 }
 0x344   :  { %3058 = vmatmul.msk.f32.gmra.mxu0 %vm1431_vm9, %v4290_v10 }
 0x34a   :  { %3062 = vmatmul.msk.f32.gmra.mxu3 %vm1431_vm9, %v4290_v10  ;;  %v1461_v10 = vpop.f32.mrf.mxu0  ;;  %v4708_v21 = vpop.permute.xlu0 %1428 }
 0x34b   :  { %1727 = vmatmul.f32.gmra.mxu1 %v3086_v55  ;;  %v1462_v56 = vadd.f32 %v1461_v10, %v4663_v42 }
 0x34c   :  { %3059 = vmatmul.msk.f32.gmra.mxu0 %vm1431_vm9, %v6141_v40 }
 0x352   :  { %3063 = vmatmul.msk.f32.gmra.mxu3 %vm1431_vm9, %v6141_v40 }
 0x353   :  { %1730 = vmatmul.f32.gmra.mxu1 %v6117_v6  ;;  %v1464_v6 = vpop.f32.mrf.mxu0 }
 0x354   :  { %3060 = vmatmul.msk.f32.gmra.mxu0 %vm1431_vm9, %v4376_v43  ;;  %v1465_v1 = vadd.f32 %v1464_v6, %v4674_v62 }
 0x35a   :  { %3064 = vmatmul.msk.f32.gmra.mxu3 %vm1431_vm9, %v4376_v43 }
 0x35b   :  { %v1467_v48 = vpop.f32.mrf.mxu0 }
 0x35c   :  { %v1468_v58 = vadd.f32 %v1467_v48, %v4683_v37 }
 0x35e   :  { %v1490_v63 = vpop.f32.mrf.mxu1 }
 0x35f   :  { %v1491_v57 = vadd.f32 %v1490_v63, %v1462_v56 }
 0x363   :  { %v1470_v59 = vpop.f32.mrf.mxu0 }
 0x364   :  { %v1519_v7 = vpop.f32.mrf.mxu2  ;;  %v1471_v54 = vadd.f32 %v1470_v59, %v4708_v21 }
 0x365   :  { %v1520_v44 = vadd.f32 %v1519_v7, %v1491_v57 }
 0x366   :  { %v1493_v43 = vpop.f32.mrf.mxu1 }
 0x367   :  { %v4666_v29 = vmax.f32 %v1520_v44, 0.0  ;;  %v1494_v18 = vadd.f32 %v1493_v43, %v1465_v1  ;;  %v1558_v44 = vadd.f32 %v1557_v16, %v4708_v21 }
 0x369   :  { %2000 = vrot.lane.b32.xlu0 %v4666_v29, %s3125_s25  ;;  %1904 = vrot.lane.b32.xlu2 %v4666_v29, %s3124_s20 }
 0x36a   :  { %1808 = vrot.lane.b32.xlu1 %v4666_v29, %s3123_s3 }
 0x36c   :  { %v1522_v15 = vpop.f32.mrf.mxu2 }
 0x36d   :  { %v1523_v17 = vadd.f32 %v1522_v15, %v1494_v18 }
 0x36e   :  { %v1496_v22 = vpop.f32.mrf.mxu1 }
 0x36f   :  { %v4686_v50 = vmax.f32 %v1523_v17, 0.0  ;;  %v1497_v11 = vadd.f32 %v1496_v22, %v1468_v58 }
 0x371   :  { %2096 = vrot.lane.b32.xlu0 %v4666_v29, %s3126_s1  ;;  %2304 = vrot.lane.b32.xlu2 %v4666_v29, %s3128_s27 }
 0x372   :  { %2400 = vrot.lane.b32.xlu1 %v4666_v29, %s3129_s28 }
 0x375   :  { %v1525_v52 = vpop.f32.mrf.mxu2 }
 0x376   :  { %v1526_v20 = vadd.f32 %v1525_v52, %v1497_v11  ;;  %v1499_v30 = vpop.f32.mrf.mxu1 }
 0x377   :  { %v1500_v23 = vadd.f32 %v1499_v30, %v1471_v54 }
 0x378   :  { %v4694_v35 = vmax.f32 %v1526_v20, 0.0 }
 0x379   :  { %1906 = vrot.lane.b32.xlu0 %v4686_v50, %s3124_s20  ;;  %1810 = vrot.lane.b32.xlu2 %v4686_v50, %s3123_s3 }
 0x37a   :  { %2208 = vrot.lane.b32.xlu1 %v4666_v29, %s3127_s26 }
 0x37d   :  { %v1528_v49 = vpop.f32.mrf.mxu2 }
 0x37e   :  { %v1529_v26 = vadd.f32 %v1528_v49, %v1500_v23 }
 0x380   :  { %v4717_v40 = vmax.f32 %v1529_v26, 0.0 }
 0x381   :  { %1812 = vrot.lane.b32.xlu0 %v4694_v35, %s3123_s3  ;;  %2402 = vrot.lane.b32.xlu2 %v4686_v50, %s3129_s28 }
 0x382   :  { %2002 = vrot.lane.b32.xlu1 %v4686_v50, %s3125_s25 }
 0x385   :  { %v4725_v19 = vpop.f32.mrf.mxu2 }
 0x386   :  { %v1636_v33 = vadd.f32 %v4725_v19, %v4663_v42 }
 0x389   :  { %2404 = vrot.lane.b32.xlu0 %v4694_v35, %s3129_s28  ;;  %2098 = vrot.lane.b32.xlu2 %v4686_v50, %s3126_s1 }
 0x38a   :  { %2306 = vrot.lane.b32.xlu1 %v4686_v50, %s3128_s27 }
 0x38d   :  { %v4736_v36 = vpop.f32.mrf.mxu2 }
 0x391   :  { %2308 = vrot.lane.b32.xlu0 %v4694_v35, %s3128_s27  ;;  %2210 = vrot.lane.b32.xlu2 %v4686_v50, %s3127_s26 }
 0x392   :  { %1908 = vrot.lane.b32.xlu1 %v4694_v35, %s3124_s20 }
 0x395   :  { %v4749_v5 = vpop.f32.mrf.mxu2 }
 0x397   :  { %v1577_v39 = vpop.f32.mrf.mxu0  ;;  %v1606_v14 = vpop.f32.mrf.mxu1 }
 0x398   :  { %v1578_v24 = vadd.f32 %v1577_v39, %v1549_v61  ;;  %v1639_v61 = vadd.f32 %v4736_v36, %v4674_v62 }
 0x399   :  { %2004 = vrot.lane.b32.xlu2 %v4694_v35, %s3125_s25  ;;  %2006 = vrot.lane.b32.xlu0 %v4717_v40, %s3125_s25 }
 0x39a   :  { %2100 = vrot.lane.b32.xlu1 %v4694_v35, %s3126_s1  ;;  %v1607_v28 = vadd.f32 %v1606_v14, %v1578_v24 }
 0x39c   :  { %v4738_v12 = vmax.f32 %v1607_v28, 0.0 }
 0x39e   :  { %6149 = vst [vmem:[#allocation14_spill] sm:$0xff] %v4738_v12 }
 0x39f   :  { %v1644_v0 = vpop.f32.mrf.mxu2 }
 0x3a0   :  { %v1609_v47 = vpop.f32.mrf.mxu1  ;;  %v1645_v27 = vadd.f32 %v1644_v0, %v4708_v21 }
 0x3a1   :  { %2212 = vrot.lane.b32.xlu2 %v4694_v35, %s3127_s26  ;;  %2102 = vrot.lane.b32.xlu0 %v4717_v40, %s3126_s1  ;;  %v1580_v41 = vpop.f32.mrf.mxu0 }
 0x3a2   :  { %1814 = vrot.lane.b32.xlu1 %v4717_v40, %s3123_s3  ;;  %v1581_v25 = vadd.f32 %v1580_v41, %v1552_v31 }
 0x3a4   :  { %v1610_v34 = vadd.f32 %v1609_v47, %v1581_v25 }
 0x3a5   :  { %v4734_v38 = vpop.f32.mrf.mxu3 }
 0x3a6   :  { %v4760_v13 = vmax.f32 %v1610_v34, 0.0  ;;  %v1665_v54 = vadd.f32 %v4734_v38, %v1636_v33 }
 0x3a8   :  { %6150 = vst [vmem:[#allocation63_spill] sm:$0xff] %v4760_v13  ;;  %v1612_v4 = vpop.f32.mrf.mxu1 }
 0x3a9   :  { %1912 = vrot.lane.b32.xlu0 %v4738_v12, %s3124_s20  ;;  %1910 = vrot.lane.b32.xlu2 %v4717_v40, %s3124_s20  ;;  %v1583_v2 = vpop.f32.mrf.mxu0  ;;  %v1751_v17 = vpop.f32.mrf.mxu2 }
 0x3aa   :  { %2406 = vrot.lane.b32.xlu1 %v4717_v40, %s3129_s28  ;;  %v1584_v9 = vadd.f32 %v1583_v2, %v1555_v8 }
 0x3ac   :  { %v1613_v51 = vadd.f32 %v1612_v4, %v1584_v9 }
 0x3ad   :  { %v4747_v3 = vpop.f32.mrf.mxu3 }
 0x3ae   :  { %v4771_v10 = vmax.f32 %v1613_v51, 0.0  ;;  %v1668_v28 = vadd.f32 %v4747_v3, %v1639_v61 }
 0x3b0   :  { %6151 = vst [vmem:[#allocation11_spill] sm:$0xff] %v4771_v10  ;;  %v1615_v56 = vpop.f32.mrf.mxu1 }
 0x3b1   :  { %2312 = vrot.lane.b32.xlu0 %v4738_v12, %s3128_s27  ;;  %2310 = vrot.lane.b32.xlu2 %v4717_v40, %s3128_s27  ;;  %v1586_v7 = vpop.f32.mrf.mxu0  ;;  %v1754_v36 = vpop.f32.mrf.mxu2 }
 0x3b2   :  { %2008 = vrot.lane.b32.xlu1 %v4738_v12, %s3125_s25  ;;  %v1587_v6 = vadd.f32 %v1586_v7, %v1558_v44 }
 0x3b4   :  { %v1616_v1 = vadd.f32 %v1615_v56, %v1587_v6 }
 0x3b5   :  { %v4758_v45 = vpop.f32.mrf.mxu3 }
 0x3b6   :  { %v4799_v48 = vmax.f32 %v1616_v1, 0.0 }
 0x3b8   :  { %v1722_v43 = vpop.f32.mrf.mxu1  ;;  %6154 = vst [vmem:[#allocation38_spill] sm:$0xff] %v4799_v48 }
 0x3b9   :  { %1818 = vrot.lane.b32.xlu0 %v4760_v13, %s3123_s3  ;;  %2214 = vrot.lane.b32.xlu2 %v4717_v40, %s3127_s26  ;;  %v1723_v18 = vadd.f32 %v1722_v43, %v4663_v42  ;;  %v1693_v30 = vpop.f32.mrf.mxu0 }
 0x3ba   :  { %1914 = vrot.lane.b32.xlu1 %v4760_v13, %s3124_s20  ;;  %v1694_v53 = vadd.f32 %v1693_v30, %v1665_v54 }
 0x3bb   :  { %v1752_v58 = vadd.f32 %v1751_v17, %v1723_v18  ;;  %v1642_v18 = vadd.f32 %v4749_v5, %v4683_v37 }
 0x3bc   :  { %v4830_v26 = vmax.f32 %v1694_v53, 0.0 }
 0x3bd   :  { %v1673_v46 = vpop.f32.mrf.mxu3 }
 0x3be   :  { %v4769_v55 = vadd.f32 %v1673_v46, %v1645_v27  ;;  %v1757_v27 = vpop.f32.mrf.mxu2 }
 0x3c0   :  { %v1725_v24 = vpop.f32.mrf.mxu1 }
 0x3c1   :  { %2410 = vrot.lane.b32.xlu0 %v4760_v13, %s3129_s28  ;;  %1816 = vrot.lane.b32.xlu2 %v4738_v12, %s3123_s3  ;;  %v1696_v14 = vpop.f32.mrf.mxu0  ;;  %v1726_v47 = vadd.f32 %v1725_v24, %v4674_v62 }
 0x3c2   :  { %1820 = vrot.lane.b32.xlu1 %v4771_v10, %s3123_s3  ;;  %v1697_v31 = vadd.f32 %v1696_v14, %v1668_v28 }
 0x3c3   :  { %v4779_v63 = vpop.permute.xlu2 %1904  ;;  %v1755_v3 = vadd.f32 %v1754_v36, %v1726_v47 }
 0x3c4   :  { %v4860_v2 = vmax.f32 %v1697_v31, 0.0 }
 0x3c5   :  { %v1780_v22 = vpop.f32.mrf.mxu3 }
 0x3c6   :  { %v1781_v20 = vadd.f32 %v1780_v22, %v1752_v58  ;;  %6161 = vst [vmem:[#allocation17_spill] sm:$0xff] %v4860_v2  ;;  %v1671_v58 = vadd.f32 %v4758_v45, %v1642_v18  ;;  %v1760_v14 = vpop.f32.mrf.mxu2 }
 0x3c8   :  { %v4815_v59 = vmax.f32 %v1781_v20, 0.0  ;;  %v1728_v8 = vpop.f32.mrf.mxu1 }
 0x3c9   :  { %2218 = vrot.lane.b32.xlu0 %v4760_v13, %s3127_s26  ;;  %2408 = vrot.lane.b32.xlu2 %v4738_v12, %s3129_s28  ;;  %v1729_v51 = vadd.f32 %v1728_v8, %v4683_v37  ;;  %v1699_v22 = vpop.f32.mrf.mxu0 }
 0x3ca   :  { %2412 = vrot.lane.b32.xlu1 %v4771_v10, %s3129_s28  ;;  %6157 = vst [vmem:[#allocation57_spill] sm:$0xff] %v4815_v59  ;;  %v1700_v30 = vadd.f32 %v1699_v22, %v1671_v58 }
 0x3cb   :  { %v4787_v57 = vpop.permute.xlu2 %2304  ;;  %v1758_v7 = vadd.f32 %v1757_v27, %v1729_v51 }
 0x3cc   :  { %6152 = vst [vmem:[#allocation49_spill] sm:$0xff] %v4787_v57  ;;  %v4906_v5 = vmax.f32 %v1700_v30, 0.0 }
 0x3cd   :  { %v1783_v34 = vpop.f32.mrf.mxu3 }
 0x3ce   :  { %v1784_v4 = vadd.f32 %v1783_v34, %v1755_v3  ;;  %6169 = vst [vmem:[#allocation45_spill] sm:$0xff] %v4906_v5 }
 0x3d0   :  { %v4875_v46 = vmax.f32 %v1784_v4, 0.0  ;;  %v1731_v54 = vpop.f32.mrf.mxu1 }
 0x3d1   :  { %2012 = vrot.lane.b32.xlu0 %v4771_v10, %s3125_s25  ;;  %2216 = vrot.lane.b32.xlu2 %v4738_v12, %s3127_s26  ;;  %v1732_v24 = vadd.f32 %v1731_v54, %v4708_v21  ;;  %v1702_v8 = vpop.f32.mrf.mxu0 }
 0x3d2   :  { %2316 = vrot.lane.b32.xlu1 %v4771_v10, %s3128_s27  ;;  %6165 = vst [vmem:[#allocation40_spill] sm:$0xff] %v4875_v46  ;;  %v1703_v27 = vadd.f32 %v1702_v8, %v4769_v55 }
 0x3d3   :  { %v4796_v15 = vpop.permute.xlu2 %1810  ;;  %v1761_v31 = vadd.f32 %v1760_v14, %v1732_v24 }
 0x3d4   :  { %6153 = vst [vmem:[#allocation6_spill] sm:$0xff] %v4796_v15  ;;  %v2448_v15 = vld [vmem:[#allocation3 + $0x380] sm:$0xff] }
 0x3d5   :  { %v1786_v56 = vpop.f32.mrf.mxu3 }
 0x3d6   :  { %v1787_v43 = vadd.f32 %v1786_v56, %v1758_v7  ;;  %v4948_v7 = vmax.f32 %v1703_v27, 0.0 }
 0x3d8   :  { %v4891_v17 = vmax.f32 %v1787_v43, 0.0 }
 0x3d9   :  { %2220 = vrot.lane.b32.xlu0 %v4771_v10, %s3127_s26  ;;  %2010 = vrot.lane.b32.xlu2 %v4760_v13, %s3125_s25 }
 0x3da   :  { %2014 = vrot.lane.b32.xlu1 %v4799_v48, %s3125_s25  ;;  %6167 = vst [vmem:[#allocation60_spill] sm:$0xff] %v4891_v17 }
 0x3db   :  { %v4807_v52 = vpop.permute.xlu2 %2402  ;;  %v4809_v11 = vpop.permute.xlu0 %2000 }
 0x3dc   :  { %6155 = vst [vmem:[#allocation16_spill] sm:$0xff] %v4807_v52  ;;  %v4811_v60 = vpop.permute.xlu1 %1808 }
 0x3dd   :  { %6156 = vst [vmem:[#allocation61_spill] sm:$0xff] %v4811_v60  ;;  %v1789_v28 = vpop.f32.mrf.mxu3 }
 0x3de   :  { %v1790_v34 = vadd.f32 %v1789_v28, %v1761_v31 }
 0x3e0   :  { %v4933_v21 = vmax.f32 %v1790_v34, 0.0 }
 0x3e1   :  { %1918 = vrot.lane.b32.xlu0 %v4799_v48, %s3124_s20  ;;  %2314 = vrot.lane.b32.xlu2 %v4760_v13, %s3128_s27 }
 0x3e2   :  { %1832 = vrot.lane.b32.xlu1 %v4815_v59, %s3123_s3  ;;  %6174 = vst [vmem:[#allocation48_spill] sm:$0xff] %v4933_v21 }
 0x3e3   :  { %v4824_v49 = vpop.permute.xlu2 %2098  ;;  %v4826_v23 = vpop.permute.xlu0 %2096 }
 0x3e4   :  { %v4828_v42 = vpop.permute.xlu1 %2400 }
 0x3e5   :  { %6158 = vst [vmem:[#allocation47_spill] sm:$0xff] %v4828_v42 }
 0x3e9   :  { %2318 = vrot.lane.b32.xlu0 %v4799_v48, %s3128_s27  ;;  %1916 = vrot.lane.b32.xlu2 %v4771_v10, %s3124_s20 }
 0x3ea   :  { %1920 = vrot.lane.b32.xlu1 %v4830_v26, %s3124_s20 }
 0x3eb   :  { %v4838_v19 = vpop.permute.xlu2 %2210  ;;  %v4840_v39 = vpop.permute.xlu0 %1906 }
 0x3ec   :  { %6159 = vst [vmem:[#allocation62_spill] sm:$0xff] %v4838_v19  ;;  %v4842_v16 = vpop.permute.xlu1 %2208 }
 0x3ed   :  { %6160 = vst [vmem:[#allocation25_spill] sm:$0xff] %v4842_v16 }
 0x3f1   :  { %2222 = vrot.lane.b32.xlu0 %v4799_v48, %s3127_s26  ;;  %2108 = vrot.lane.b32.xlu2 %v4771_v10, %s3126_s1 }
 0x3f2   :  { %2120 = vrot.lane.b32.xlu1 %v4815_v59, %s3126_s1 }
 0x3f3   :  { %v4853_v38 = vpop.permute.xlu2 %2004  ;;  %v4855_v41 = vpop.permute.xlu0 %1812 }
 0x3f4   :  { %v4857_v25 = vpop.permute.xlu1 %2002 }
 0x3f9   :  { %2110 = vrot.lane.b32.xlu0 %v4799_v48, %s3126_s1  ;;  %1822 = vrot.lane.b32.xlu2 %v4799_v48, %s3123_s3 }
 0x3fa   :  { %1826 = vrot.lane.b32.xlu1 %v4860_v2, %s3123_s3 }
 0x3fb   :  { %v4868_v9 = vpop.permute.xlu2 %2212  ;;  %v4870_v0 = vpop.permute.xlu0 %2404 }
 0x3fc   :  { %6162 = vst [vmem:[#allocation69_spill] sm:$0xff] %v4868_v9  ;;  %v4872_v62 = vpop.permute.xlu1 %2306 }
 0x3fd   :  { %6163 = vst [vmem:[#allocation59_spill] sm:$0xff] %v4870_v0 }
 0x3fe   :  { %6164 = vst [vmem:[#allocation50_spill] sm:$0xff] %v4872_v62 }
 0x401   :  { %1824 = vrot.lane.b32.xlu0 %v4830_v26, %s3123_s3  ;;  %2414 = vrot.lane.b32.xlu2 %v4799_v48, %s3129_s28 }
 0x402   :  { %2026 = vrot.lane.b32.xlu1 %v4875_v46, %s3125_s25 }
 0x403   :  { %v4883_v44 = vpop.permute.xlu2 %1910  ;;  %v4885_v6 = vpop.permute.xlu0 %2308 }
 0x404   :  { %6166 = vst [vmem:[#allocation26_spill] sm:$0xff] %v4885_v6  ;;  %v4887_v1 = vpop.permute.xlu1 %1908 }
 0x409   :  { %2024 = vrot.lane.b32.xlu0 %v4815_v59, %s3125_s25  ;;  %1928 = vrot.lane.b32.xlu2 %v4815_v59, %s3124_s20 }
 0x40a   :  { %1932 = vrot.lane.b32.xlu1 %v4891_v17, %s3124_s20 }
 0x40b   :  { %v4900_v20 = vpop.permute.xlu2 %2310  ;;  %v4902_v33 = vpop.permute.xlu0 %2006 }
 0x40c   :  { %6168 = vst [vmem:[#allocation32_spill] sm:$0xff] %v4900_v20  ;;  %v4904_v37 = vpop.permute.xlu1 %2100 }
 0x411   :  { %1930 = vrot.lane.b32.xlu0 %v4875_v46, %s3124_s20  ;;  %2016 = vrot.lane.b32.xlu2 %v4830_v26, %s3125_s25 }
 0x412   :  { %2020 = vrot.lane.b32.xlu1 %v4906_v5, %s3125_s25 }
 0x413   :  { %v4914_v45 = vpop.permute.xlu2 %2214  ;;  %v4916_v53 = vpop.permute.xlu0 %2102 }
 0x414   :  { %6170 = vst [vmem:[#allocation18_spill] sm:$0xff] %v4914_v45  ;;  %v4918_v61 = vpop.permute.xlu1 %1814 }
 0x419   :  { %2018 = vrot.lane.b32.xlu0 %v4860_v2, %s3125_s25  ;;  %1834 = vrot.lane.b32.xlu2 %v4875_v46, %s3123_s3 }
 0x41a   :  { %2028 = vrot.lane.b32.xlu1 %v4891_v17, %s3125_s25 }
 0x41b   :  { %v4927_v36 = vpop.permute.xlu2 %1816  ;;  %v4929_v47 = vpop.permute.xlu0 %1912 }
 0x41c   :  { %6171 = vst [vmem:[#allocation27_spill] sm:$0xff] %v4927_v36  ;;  %v4931_v3 = vpop.permute.xlu1 %2406 }
 0x41d   :  { %6172 = vst [vmem:[#allocation73_spill] sm:$0xff] %v4929_v47 }
 0x41e   :  { %6173 = vst [vmem:[#allocation31_spill] sm:$0xff] %v4931_v3 }
 0x421   :  { %2122 = vrot.lane.b32.xlu0 %v4875_v46, %s3126_s1  ;;  %1922 = vrot.lane.b32.xlu2 %v4860_v2, %s3124_s20 }
 0x422   :  { %1838 = vrot.lane.b32.xlu1 %v4933_v21, %s3123_s3 }
 0x423   :  { %v4941_v4 = vpop.permute.xlu2 %2408  ;;  %v4943_v51 = vpop.permute.xlu0 %2312 }
 0x424   :  { %v4946_v56 = vpop.permute.xlu1 %2008 }
 0x425   :  { %6175 = vst [vmem:[#allocation77_spill] sm:$0xff] %v4946_v56 }
 0x429   :  { %1836 = vrot.lane.b32.xlu0 %v4891_v17, %s3123_s3  ;;  %1828 = vrot.lane.b32.xlu2 %v4906_v5, %s3123_s3 }
 0x42a   :  { %1926 = vrot.lane.b32.xlu1 %v4948_v7, %s3124_s20 }
 0x42b   :  { %v4956_v43 = vpop.permute.xlu2 %2216  ;;  %v4958_v18 = vpop.permute.xlu0 %1818 }
 0x42c   :  { %6176 = vst [vmem:[#allocation15_spill] sm:$0xff] %v4958_v18  ;;  %v4960_v22 = vpop.permute.xlu1 %1914 }
 0x42d   :  { %6177 = vst [vmem:[#allocation10_spill] sm:$0xff] %v4960_v22  ;;  %v2460_v22 = vld [vmem:[#allocation3 + $0x3e0] sm:$0xff] }
 0x431   :  { %1924 = vrot.lane.b32.xlu0 %v4906_v5, %s3124_s20  ;;  %2124 = vrot.lane.b32.xlu2 %v4891_v17, %s3126_s1 }
 0x432   :  { %2126 = vrot.lane.b32.xlu1 %v4933_v21, %s3126_s1 }
 0x433   :  { %v4968_v55 = vpop.permute.xlu2 %2010  ;;  %v4970_v58 = vpop.permute.xlu0 %2410 }
 0x434   :  { %6178 = vst [vmem:[#allocation70_spill] sm:$0xff] %v4968_v55  ;;  %v4972_v30 = vpop.permute.xlu1 %1820 }
 0x435   :  { %6179 = vst [vmem:[#allocation72_spill] sm:$0xff] %v4972_v30 }
 0x439   :  { %1830 = vrot.lane.b32.xlu0 %v4948_v7, %s3123_s3  ;;  %1934 = vrot.lane.b32.xlu2 %v4933_v21, %s3124_s20 }
 0x43a   :  { %2030 = vrot.lane.b32.xlu1 %v4933_v21, %s3125_s25 }
 0x43b   :  { %v4980_v54 = vpop.permute.xlu2 %2314  ;;  %v4982_v24 = vpop.permute.xlu0 %2218 }
 0x43c   :  { %v4984_v14 = vpop.permute.xlu1 %2412 }
 0x441   :  { %2116 = vrot.lane.b32.xlu0 %v4906_v5, %s3126_s1  ;;  %2022 = vrot.lane.b32.xlu2 %v4948_v7, %s3125_s25 }
 0x442   :  { %2118 = vrot.lane.b32.xlu1 %v4948_v7, %s3126_s1 }
 0x443   :  { %v4992_v28 = vpop.permute.xlu2 %1916  ;;  %v4994_v31 = vpop.permute.xlu0 %2012 }
 0x444   :  { %6180 = vst [vmem:[#allocation7_spill] sm:$0xff] %v4992_v28  ;;  %v4996_v34 = vpop.permute.xlu1 %2316 }
 0x445   :  { %6181 = vst [vmem:[#allocation58_spill] sm:$0xff] %v4994_v31  ;;  %v2452_v31 = vld [vmem:[#allocation3 + $0x3a0] sm:$0xff] }
 0x449   :  { %2422 = vrot.lane.b32.xlu0 %v4948_v7, %s3129_s28  ;;  %2114 = vrot.lane.b32.xlu2 %v4860_v2, %s3126_s1 }
 0x44a   :  { %2106 = vrot.lane.b32.xlu1 %v4760_v13, %s3126_s1 }
 0x44b   :  { %v5004_v8 = vpop.permute.xlu2 %2108  ;;  %v5006_v27 = vpop.permute.xlu0 %2220 }
 0x44c   :  { %v5008_v36 = vpop.permute.xlu1 %2014 }
 0x44d   :  { %6182 = vst [vmem:[#allocation56_spill] sm:$0xff] %v5008_v36  ;;  %v2441_v36 = vsel %vm216_vm1, %v4807_v52, %v4970_v58 }
 0x451   :  { %2104 = vrot.lane.b32.xlu0 %v4738_v12, %s3126_s1  ;;  %2518 = vrot.lane.b32.xlu2 %v4948_v7, %s3130_s29 }
 0x452   :  { %2510 = vrot.lane.b32.xlu1 %v4799_v48, %s3130_s29 }
 0x453   :  { %v5016_v18 = vpop.permute.xlu2 %1822  ;;  %v5018_v30 = vpop.permute.xlu0 %1918 }
 0x454   :  { %6183 = vst [vmem:[#allocation36_spill] sm:$0xff] %v5016_v18  ;;  %v5020_v47 = vpop.permute.xlu1 %1832 }
 0x455   :  { %6184 = vst [vmem:[#allocation34_spill] sm:$0xff] %v5018_v30  ;;  %v2456_v30 = vld [vmem:[#allocation3 + $0x3c0] sm:$0xff] }
 0x459   :  { %2508 = vrot.lane.b32.xlu0 %v4771_v10, %s3130_s29  ;;  %2420 = vrot.lane.b32.xlu2 %v4906_v5, %s3129_s28  ;;  %v2442_v10 = vsel %vm216_vm1, %v4870_v0, %v4984_v14  ;;  %v2356_v0 = vld [vmem:[#allocation3 + $0x320] sm:$0xff] }
 0x45a   :  { %2112 = vrot.lane.b32.xlu1 %v4830_v26, %s3126_s1  ;;  %v2472_v60 = vmul.f32 %v2456_v30, %v2442_v10 }
 0x45b   :  { %v5028_v28 = vpop.permute.xlu2 %2414  ;;  %v5030_v56 = vpop.permute.xlu0 %2318 }
 0x45c   :  { %v2443_v48 = vsel %vm216_vm1, %v4931_v3, %v5028_v28  ;;  %v5036_v18 = vpop.permute.xlu1 %1920  ;;  %v2440_v3 = vsel %vm216_vm1, %v4828_v42, %v4941_v4  ;;  %v2347_v10 = vsel %vm191_vm2, %v4900_v20, %v5030_v56  ;;  %v2346_v20 = vsel %vm191_vm2, %v4885_v6, %v4996_v34  ;;  %v2153_v6 = vld [vmem:[#allocation3 + $0x1c8] sm:$0xff] }
 0x45d   :  { %6185 = vst [vmem:[#allocation51_spill] sm:$0xff] %v5036_v18  ;;  %v2476_v55 = vmul.f32 %v2460_v22, %v2443_v48  ;;  %v2468_v48 = vmul.f32 %v2452_v31, %v2441_v36  ;;  %v2364_v22 = vld [vmem:[#allocation3 + $0x360] sm:$0xff]  ;;  %v2464_v42 = vmul.f32 %v2448_v15, %v2440_v3  ;;  %v2345_v15 = vsel %vm191_vm2, %v4872_v62, %v4980_v54 }
 0x45e   :  { %v2380_v52 = vmul.f32 %v2364_v22, %v2347_v10  ;;  %v2157_v22 = vld [vmem:[#allocation3 + $0x1e8] sm:$0xff] }
 0x45f   :  { %2770 = vmatpush.msra.mxu1 %v2476_v55 }
 0x461   :  { %2430 = vrot.lane.b32.xlu0 %v4933_v21, %s3129_s28  ;;  %2418 = vrot.lane.b32.xlu2 %v4860_v2, %s3129_s28 }
 0x462   :  { %2516 = vrot.lane.b32.xlu1 %v4906_v5, %s3130_s29  ;;  %2771 = vmatpush.msra.mxu1 %v2472_v60  ;;  %v2360_v60 = vld [vmem:[#allocation3 + $0x340] sm:$0xff] }
 0x463   :  { %v5060_v55 = vpop.permute.xlu2 %1928  ;;  %v5062_v30 = vpop.permute.xlu0 %2222  ;;  %v2376_v3 = vmul.f32 %v2360_v60, %v2346_v20  ;;  %v2268_v20 = vld [vmem:[#allocation3 + $0x2e0] sm:$0xff] }
 0x464   :  { %v5068_v36 = vsel %vm87_vm6, %v5036_v18, %v5060_v55  ;;  %v5070_v31 = vpop.permute.xlu1 %2120  ;;  %2772 = vmatpush.msra.mxu1 %v2468_v48  ;;  %v2344_v48 = vsel %vm191_vm2, %v4787_v57, %v4943_v51  ;;  %v2249_v18 = vsel %vm166_vm3, %v4838_v19, %v4982_v24 }
 0x465   :  { %6186 = vst [vmem:[#allocation37_spill] sm:$0xff] %v5068_v36  ;;  %v2352_v36 = vld [vmem:[#allocation3 + $0x300] sm:$0xff] }
 0x466   :  { %6187 = vst [vmem:[#allocation42_spill] sm:$0xff] %v5070_v31  ;;  %2773 = vmatpush.msra.mxu1 %v2464_v42  ;;  %v2372_v42 = vmul.f32 %v2356_v0, %v2345_v15  ;;  %v2368_v57 = vmul.f32 %v2352_v36, %v2344_v48  ;;  %v2264_v15 = vld [vmem:[#allocation3 + $0x2c0] sm:$0xff]  ;;  %v2138_v36 = vsel %vm137_vm5, %v4904_v37, %v5004_v8 }
 0x468   :  { %2774 = vmatpush.msra.mxu1 %v2380_v52  ;;  %v2251_v52 = vsel %vm166_vm3, %v4914_v45, %v5062_v30 }
 0x469   :  { %2416 = vrot.lane.b32.xlu0 %v4830_v26, %s3129_s28  ;;  %2514 = vrot.lane.b32.xlu2 %v4860_v2, %s3130_s29  ;;  %v2284_v48 = vmul.f32 %v2268_v20, %v2251_v52 }
 0x46a   :  { %2506 = vrot.lane.b32.xlu1 %v4760_v13, %s3130_s29  ;;  %2775 = vmatpush.msra.mxu1 %v2376_v3  ;;  %v2250_v3 = vsel %vm166_vm3, %v4868_v9, %v5006_v27 }
 0x46b   :  { %v5094_v10 = vpop.permute.xlu2 %2016  ;;  %v5096_v60 = vpop.permute.xlu0 %2110  ;;  %v2280_v13 = vmul.f32 %v2264_v15, %v2250_v3 }
 0x46c   :  { %6188 = vst [vmem:[#allocation46_spill] sm:$0xff] %v5096_v60  ;;  %v5098_v62 = vpop.permute.xlu1 %1826  ;;  %2776 = vmatpush.msra.mxu1 %v2372_v42  ;;  %v2139_v0 = vsel %vm137_vm5, %v4916_v53, %v5096_v60  ;;  %v2260_v42 = vld [vmem:[#allocation3 + $0x2a0] sm:$0xff] }
 0x46d   :  { %6189 = vst [vmem:[#allocation74_spill] sm:$0xff] %v5098_v62  ;;  %v2173_v45 = vmul.f32 %v2157_v22, %v2139_v0  ;;  %v2256_v60 = vld [vmem:[#allocation3 + $0x280] sm:$0xff]  ;;  %v2248_v22 = vsel %vm166_vm3, %v4842_v16, %v4956_v43  ;;  %v2169_v0 = vmul.f32 %v2153_v6, %v2138_v36 }
 0x46e   :  { %2777 = vmatpush.msra.mxu1 %v2368_v57  ;;  %v2276_v57 = vmul.f32 %v2260_v42, %v2249_v18  ;;  %v2272_v52 = vmul.f32 %v2256_v60, %v2248_v22 }
 0x46f   :  { %2810 = vmatpush.msra.mxu3 %v2173_v45 }
 0x470   :  { %2778 = vmatpush.msra.mxu1 %v2284_v48 }
 0x471   :  { %2512 = vrot.lane.b32.xlu0 %v4830_v26, %s3130_s29  ;;  %2504 = vrot.lane.b32.xlu2 %v4738_v12, %s3130_s29 }
 0x472   :  { %2428 = vrot.lane.b32.xlu1 %v4891_v17, %s3129_s28  ;;  %2779 = vmatpush.msra.mxu1 %v2280_v13 }
 0x473   :  { %2811 = vmatpush.msra.mxu3 %v2169_v0  ;;  %v5126_v45 = vpop.permute.xlu2 %1834  ;;  %v5128_v20 = vpop.permute.xlu0 %1824 }
 0x474   :  { %6190 = vst [vmem:[#allocation29_spill] sm:$0xff] %v5128_v20  ;;  %v5134_v6 = vsel %vm62_vm7, %v5098_v62, %v5126_v45  ;;  %v5136_v15 = vpop.permute.xlu1 %2026  ;;  %2780 = vmatpush.msra.mxu1 %v2276_v57  ;;  %v5142_v13 = vsel %vm62_vm7, %v5128_v20, %v5020_v47  ;;  %v2156_v20 = vld [vmem:[#allocation3 + $0x1e0] sm:$0xff] }
 0x475   :  { %6191 = vst [vmem:[#allocation33_spill] sm:$0xff] %v5134_v6 }
 0x476   :  { %6192 = vst [vmem:[#allocation21_spill] sm:$0xff] %v5142_v13  ;;  %2781 = vmatpush.msra.mxu1 %v2272_v52 }
 0x478   :  { %2782 = vmatpush.msra.mxu1 %v4717_v40 }
 0x479   :  { %2324 = vrot.lane.b32.xlu0 %v4906_v5, %s3128_s27  ;;  %2426 = vrot.lane.b32.xlu2 %v4875_v46, %s3129_s28 }
 0x47a   :  { %2326 = vrot.lane.b32.xlu1 %v4948_v7, %s3128_s27  ;;  %2783 = vmatpush.msra.mxu1 %v4694_v35 }
 0x47b   :  { %v5152_v18 = vpop.permute.xlu2 %1922  ;;  %v5154_v60 = vpop.permute.xlu0 %2024 }
 0x47c   :  { %6193 = vst [vmem:[#allocation76_spill] sm:$0xff] %v5152_v18  ;;  %v5156_v3 = vpop.permute.xlu1 %1932  ;;  %2784 = vmatpush.msra.mxu1 %v4686_v50  ;;  %v5163_v36 = vsel %vm112_vm4, %v5094_v10, %v5154_v60 }
 0x47d   :  { %6194 = vst [vmem:[#allocation19_spill] sm:$0xff] %v5163_v36 }
 0x47e   :  { %2785 = vmatpush.msra.mxu1 %v4666_v29 }
 0x481   :  { %2334 = vrot.lane.b32.xlu0 %v4933_v21, %s3128_s27  ;;  %2322 = vrot.lane.b32.xlu2 %v4860_v2, %s3128_s27 }
 0x482   :  { %2424 = vrot.lane.b32.xlu1 %v4815_v59, %s3129_s28 }
 0x483   :  { %v5172_v48 = vpop.permute.xlu2 %1828  ;;  %v5174_v42 = vpop.permute.xlu0 %1930 }
 0x484   :  { %6195 = vst [vmem:[#allocation12_spill] sm:$0xff] %v5172_v48  ;;  %v5176_v22 = vpop.permute.xlu1 %2020  ;;  %v5182_v0 = vsel %vm87_vm6, %v5152_v18, %v5174_v42  ;;  %v2152_v18 = vld [vmem:[#allocation3 + $0x1c0] sm:$0xff] }
 0x485   :  { %6196 = vst [vmem:[#allocation71_spill] sm:$0xff] %v5182_v0 }
 0x489   :  { %2332 = vrot.lane.b32.xlu0 %v4891_v17, %s3128_s27  ;;  %2320 = vrot.lane.b32.xlu2 %v4830_v26, %s3128_s27 }
 0x48a   :  { %2502 = vrot.lane.b32.xlu1 %v4717_v40, %s3130_s29 }
 0x48b   :  { %v5190_v57 = vpop.permute.xlu2 %2124  ;;  %v5192_v52 = vpop.permute.xlu0 %2018 }
 0x48c   :  { %v2029_v13 = vpop.permute.xlu1 %2028  ;;  %v5198_v6 = vsel %vm112_vm4, %v5192_v52, %v5136_v15 }
 0x48d   :  { %6197 = vst [vmem:[#allocation13_spill] sm:$0xff] %v5198_v6  ;;  %v5203_v0 = vsel %vm112_vm4, %v5176_v22, %v2029_v13 }
 0x48e   :  { %6198 = vst [vmem:[#allocation66_spill] sm:$0xff] %v5203_v0 }
 0x491   :  { %2330 = vrot.lane.b32.xlu0 %v4875_v46, %s3128_s27  ;;  %2230 = vrot.lane.b32.xlu2 %v4948_v7, %s3127_s26 }
 0x492   :  { %2500 = vrot.lane.b32.xlu1 %v4694_v35, %s3130_s29 }
 0x493   :  { %v1935_v40 = vpop.permute.xlu2 %1934  ;;  %v2123_v36 = vpop.permute.xlu0 %2122 }
 0x494   :  { %v5211_v16 = vpop.permute.xlu1 %1838 }
 0x499   :  { %2328 = vrot.lane.b32.xlu0 %v4815_v59, %s3128_s27  ;;  %2228 = vrot.lane.b32.xlu2 %v4906_v5, %s3127_s26  ;;  %v2148_v5 = vld [vmem:[#allocation3 + $0x1a0] sm:$0xff] }
 0x49a   :  { %2498 = vrot.lane.b32.xlu1 %v4686_v50, %s3130_s29 }
 0x49b   :  { %v5219_v6 = vpop.permute.xlu2 %2022  ;;  %v5221_v0 = vpop.permute.xlu0 %1836 }
 0x49c   :  { %v5223_v19 = vpop.permute.xlu1 %1926  ;;  %v5229_v35 = vsel %vm62_vm7, %v5172_v48, %v5221_v0 }
 0x49d   :  { %6199 = vst [vmem:[#allocation9_spill] sm:$0xff] %v5223_v19  ;;  %v5234_v9 = vsel %vm87_vm6, %v5223_v19, %v1935_v40 }
 0x49e   :  { %6200 = vst [vmem:[#allocation53_spill] sm:$0xff] %v5229_v35 }
 0x49f   :  { %6201 = vst [vmem:[#allocation8_spill] sm:$0xff] %v5234_v9 }
 0x4a1   :  { %2238 = vrot.lane.b32.xlu0 %v4933_v21, %s3127_s26  ;;  %2226 = vrot.lane.b32.xlu2 %v4860_v2, %s3127_s26 }
 0x4a2   :  { %2496 = vrot.lane.b32.xlu1 %v4666_v29, %s3130_s29  ;;  %v2142_v29 = vsel %vm137_vm5, %v5190_v57, %v4904_v37 }
 0x4a3   :  { %v5242_v50 = vpop.permute.xlu2 %2114  ;;  %v5244_v62 = vpop.permute.xlu0 %1924  ;;  %v2168_v19 = vmul.f32 %v2152_v18, %v2142_v29  ;;  %v2056_v29 = vld [vmem:[#allocation3 + $0x140] sm:$0xff] }
 0x4a4   :  { %6202 = vst [vmem:[#allocation75_spill] sm:$0xff] %v5244_v62  ;;  %v5249_v35 = vsel %vm137_vm5, %v5242_v50, %v2123_v36  ;;  %v2127_v9 = vpop.permute.xlu1 %2126  ;;  %v5255_v48 = vsel %vm87_vm6, %v5244_v62, %v5156_v3  ;;  %v2144_v62 = vld [vmem:[#allocation3 + $0x180] sm:$0xff] }
 0x4a5   :  { %6203 = vst [vmem:[#allocation43_spill] sm:$0xff] %v5249_v35  ;;  %v2143_v2 = vsel %vm137_vm5, %v2127_v9, %v4916_v53  ;;  %v2141_v35 = vsel %vm137_vm5, %v2123_v36, %v4824_v49 }
 0x4a6   :  { %6204 = vst [vmem:[#allocation64_spill] sm:$0xff] %v5255_v48  ;;  %v2172_v12 = vmul.f32 %v2156_v20, %v2143_v2  ;;  %v2140_v48 = vsel %vm137_vm5, %v5070_v31, %v4826_v23  ;;  %v2164_v2 = vmul.f32 %v2148_v5, %v2141_v35  ;;  %v2046_v5 = vsel %vm112_vm4, %v2029_v13, %v4853_v38  ;;  %v2052_v35 = vld [vmem:[#allocation3 + $0x120] sm:$0xff]  ;;  %v6263_v32 = vld [vmem:[#allocation8_spill] sm:$0xff] }
 0x4a7   :  { %v2160_v20 = vmul.f32 %v2144_v62, %v2140_v48  ;;  %v2048_v13 = vld [vmem:[#allocation3 + $0x100] sm:$0xff] }
 0x4a8   :  { %2750 = vmatpush.msra.mxu0 %v2172_v12  ;;  %v2060_v12 = vld [vmem:[#allocation3 + $0x160] sm:$0xff] }
 0x4a9   :  { %2234 = vrot.lane.b32.xlu0 %v4875_v46, %s3127_s26  ;;  %2236 = vrot.lane.b32.xlu2 %v4891_v17, %s3127_s26 }
 0x4aa   :  { %2224 = vrot.lane.b32.xlu1 %v4830_v26, %s3127_s26  ;;  %2751 = vmatpush.msra.mxu0 %v2168_v19 }
 0x4ab   :  { %v5277_v37 = vpop.permute.xlu2 %2518  ;;  %v5279_v53 = vpop.permute.xlu0 %1830 }
 0x4ac   :  { %v2031_v18 = vpop.permute.xlu1 %2030  ;;  %2752 = vmatpush.msra.mxu0 %v2164_v2  ;;  %v5285_v36 = vsel %vm62_vm7, %v5279_v53, %v5211_v16  ;;  %v2045_v2 = vsel %vm112_vm4, %v5136_v15, %v4857_v25  ;;  %v1964_v15 = vld [vmem:[#allocation3 + $0xe0] sm:$0xff] }
 0x4ad   :  { %6205 = vst [vmem:[#allocation30_spill] sm:$0xff] %v5285_v36  ;;  %v5293_v19 = vsel %vm112_vm4, %v5219_v6, %v2031_v18  ;;  %v2047_v62 = vsel %vm112_vm4, %v2031_v18, %v4902_v33  ;;  %v2072_v36 = vmul.f32 %v2056_v29, %v2046_v5 }
 0x4ae   :  { %6206 = vst [vmem:[#allocation24_spill] sm:$0xff] %v5293_v19  ;;  %v2076_v48 = vmul.f32 %v2060_v12, %v2047_v62  ;;  %2753 = vmatpush.msra.mxu0 %v2160_v20  ;;  %v2044_v19 = vsel %vm112_vm4, %v5154_v60, %v4809_v11  ;;  %v2068_v12 = vmul.f32 %v2052_v35, %v2045_v2  ;;  %v1956_v35 = vld [vmem:[#allocation3 + $0xa0] sm:$0xff] }
 0x4af   :  { %v1951_v20 = vsel %vm87_vm6, %v1935_v40, %v4883_v44  ;;  %v2064_v60 = vmul.f32 %v2048_v13, %v2044_v19  ;;  %v1950_v40 = vsel %vm87_vm6, %v5156_v3, %v4887_v1  ;;  %v1952_v13 = vld [vmem:[#allocation3 + $0x80] sm:$0xff]  ;;  %v1948_v3 = vsel %vm87_vm6, %v5060_v55, %v4779_v63 }
 0x4b0   :  { %2754 = vmatpush.msra.mxu0 %v2076_v48  ;;  %v1980_v19 = vmul.f32 %v1964_v15, %v1951_v20  ;;  %v2149_v20 = vld [vmem:[#allocation3 + $0x1a8] sm:$0xff]  ;;  %v1968_v55 = vmul.f32 %v1952_v13, %v1948_v3  ;;  %v1860_v13 = vld [vmem:[#allocation3 + $0x20] sm:$0xff] }
 0x4b1   :  { %2524 = vrot.lane.b32.xlu0 %v4891_v17, %s3130_s29  ;;  %2232 = vrot.lane.b32.xlu2 %v4815_v59, %s3127_s26  ;;  %v6209_v3 = vld [vmem:[#allocation6_spill] sm:$0xff] }
 0x4b2   :  { %2526 = vrot.lane.b32.xlu1 %v4933_v21, %s3130_s29  ;;  %2755 = vmatpush.msra.mxu0 %v2072_v36  ;;  %v1960_v36 = vld [vmem:[#allocation3 + $0xc0] sm:$0xff]  ;;  %v2053_v21 = vld [vmem:[#allocation3 + $0x128] sm:$0xff] }
 0x4b3   :  { %v5315_v18 = vpop.permute.xlu2 %2420  ;;  %v5317_v29 = vpop.permute.xlu0 %2116  ;;  %v1976_v2 = vmul.f32 %v1960_v36, %v1950_v40  ;;  %v1864_v40 = vld [vmem:[#allocation3 + $0x40] sm:$0xff] }
 0x4b4   :  { %v5319_v5 = vpop.permute.xlu1 %2118  ;;  %2756 = vmatpush.msra.mxu0 %v2068_v12  ;;  %v5325_v62 = vsel %vm137_vm5, %v5317_v29, %v5190_v57  ;;  %v1949_v57 = vsel %vm87_vm6, %v5174_v42, %v4840_v39  ;;  %v1868_v12 = vld [vmem:[#allocation3 + $0x60] sm:$0xff]  ;;  %v1855_v42 = vsel %vm62_vm7, %v5211_v16, %v4918_v61 }
 0x4b5   :  { %6207 = vst [vmem:[#allocation67_spill] sm:$0xff] %v5325_v62  ;;  %v5334_v48 = vsel %vm137_vm5, %v5319_v5, %v2127_v9  ;;  %v1972_v9 = vmul.f32 %v1956_v35, %v1949_v57  ;;  %v1884_v57 = vmul.f32 %v1868_v12, %v1855_v42  ;;  %v2145_v42 = vld [vmem:[#allocation3 + $0x188] sm:$0xff] }
 0x4b6   :  { %6208 = vst [vmem:[#allocation68_spill] sm:$0xff] %v5334_v48  ;;  %2757 = vmatpush.msra.mxu0 %v2064_v60  ;;  %v2049_v62 = vld [vmem:[#allocation3 + $0x108] sm:$0xff]  ;;  %v6214_v48 = vld [vmem:[#allocation77_spill] sm:$0xff] }
 0x4b8   :  { %2758 = vmatpush.msra.mxu0 %v1980_v19  ;;  %v1854_v19 = vsel %vm62_vm7, %v5221_v0, %v4855_v41  ;;  %v1856_v0 = vld [vmem:[#allocation3] sm:$0xff] }
 0x4b9   :  { %2520 = vrot.lane.b32.xlu2 %v4815_v59, %s3130_s29  ;;  %v1880_v59 = vmul.f32 %v1864_v40, %v1854_v19  ;;  %v6211_v40 = vld [vmem:[#allocation56_spill] sm:$0xff] }
 0x4ba   :  { %2522 = vrot.lane.b32.xlu1 %v4875_v46, %s3130_s29  ;;  %2759 = vmatpush.msra.mxu0 %v1976_v2  ;;  %v6210_v46 = vld [vmem:[#allocation61_spill] sm:$0xff]  ;;  %v2043_v19 = vsel %vm112_vm4, %v4902_v33, %v6211_v40 }
 0x4bb   :  { %v5352_v15 = vpop.permute.xlu2 %2418  ;;  %v5354_v60 = vpop.permute.xlu0 %2422 }
 0x4bc   :  { %v2107_v36 = vpop.permute.xlu1 %2106  ;;  %2760 = vmatpush.msra.mxu0 %v1972_v9  ;;  %v1853_v9 = vsel %vm62_vm7, %v5126_v45, %v6209_v3  ;;  %v2439_v12 = vsel %vm216_vm1, %v5028_v28, %v5354_v60  ;;  %v2557_v45 = vld [vmem:[#allocation3 + $0x468] sm:$0xff] }
 0x4bd   :  { %v5363_v35 = vsel %vm137_vm5, %v2107_v36, %v5242_v50  ;;  %v2137_v16 = vsel %vm137_vm5, %v4824_v49, %v2107_v36  ;;  %v1852_v50 = vsel %vm62_vm7, %v5020_v47, %v6210_v46  ;;  %v1876_v17 = vmul.f32 %v1860_v13, %v1853_v9  ;;  %v2461_v49 = vld [vmem:[#allocation3 + $0x3e8] sm:$0xff] }
 0x4be   :  { %v2165_v2 = vmul.f32 %v2149_v20, %v2137_v16  ;;  %2761 = vmatpush.msra.mxu0 %v1968_v55  ;;  %v2061_v36 = vld [vmem:[#allocation3 + $0x168] sm:$0xff]  ;;  %v1872_v47 = vmul.f32 %v1856_v0, %v1852_v50  ;;  %v6212_v0 = vld [vmem:[#allocation58_spill] sm:$0xff] }
 0x4bf   :  { %v2457_v16 = vld [vmem:[#allocation3 + $0x3c8] sm:$0xff] }
 0x4c0   :  { %2762 = vmatpush.msra.mxu0 %v1884_v57  ;;  %2812 = vmatpush.msra.mxu3 %v2165_v2  ;;  %v2438_v57 = vsel %vm216_vm1, %v4984_v14, %v5315_v18  ;;  %v2477_v2 = vmul.f32 %v2461_v49, %v2439_v12  ;;  %v2057_v9 = vld [vmem:[#allocation3 + $0x148] sm:$0xff]  ;;  %v2042_v14 = vsel %vm112_vm4, %v4853_v38, %v6212_v0 }
 0x4c1   :  { %v2453_v50 = vld [vmem:[#allocation3 + $0x3a8] sm:$0xff]  ;;  %v2077_v49 = vmul.f32 %v2061_v36, %v2043_v19  ;;  %v2473_v12 = vmul.f32 %v2457_v16, %v2438_v57  ;;  %v2073_v38 = vmul.f32 %v2057_v9, %v2042_v14  ;;  %v6218_v14 = vld [vmem:[#allocation10_spill] sm:$0xff] }
 0x4c2   :  { %2763 = vmatpush.msra.mxu0 %v1880_v59  ;;  %v1957_v9 = vld [vmem:[#allocation3 + $0xa8] sm:$0xff] }
 0x4c3   :  { %v5380_v20 = vpop.permute.xlu2 %2514  ;;  %v2105_v55 = vpop.permute.xlu0 %2104 }
 0x4c4   :  { %v5390_v28 = vpop.permute.xlu1 %2510  ;;  %2764 = vmatpush.msra.mxu0 %v1876_v17  ;;  %v2136_v59 = vsel %vm137_vm5, %v4826_v23, %v2105_v55  ;;  %v2437_v17 = vsel %vm216_vm1, %v4970_v58, %v5352_v15  ;;  %v2040_v58 = vsel %vm112_vm4, %v4809_v11, %v6214_v48 }
 0x4c5   :  { %v2535_v33 = vsel %vm241_vm0, %v5390_v28, %v5277_v37  ;;  %v2161_v13 = vmul.f32 %v2145_v42, %v2136_v59  ;;  %v6213_v42 = vld [vmem:[#allocation70_spill] sm:$0xff]  ;;  %v2469_v31 = vmul.f32 %v2453_v50, %v2437_v17  ;;  %v1953_v50 = vld [vmem:[#allocation3 + $0x88] sm:$0xff] }
 0x4c6   :  { %v2573_v23 = vmul.f32 %v2557_v45, %v2535_v33  ;;  %2765 = vmatpush.msra.mxu0 %v1872_v47  ;;  %v2041_v59 = vsel %vm112_vm4, %v4857_v25, %v6213_v42  ;;  %v1965_v47 = vld [vmem:[#allocation3 + $0xe8] sm:$0xff]  ;;  %v6215_v25 = vld [vmem:[#allocation34_spill] sm:$0xff] }
 0x4c7   :  { %2813 = vmatpush.msra.mxu3 %v2161_v13  ;;  %v2069_v45 = vmul.f32 %v2053_v21, %v2041_v59  ;;  %v1947_v16 = vsel %vm87_vm6, %v4883_v44, %v6215_v25  ;;  %v1961_v21 = vld [vmem:[#allocation3 + $0xc8] sm:$0xff]  ;;  %v1945_v44 = vsel %vm87_vm6, %v4840_v39, %v6218_v14 }
 0x4c8   :  { %2830 = vmatpush.msrb.mxu0 %v2477_v2  ;;  %2862 = vmatpush.msrb.mxu1 %v2573_v23  ;;  %v2065_v2 = vmul.f32 %v2049_v62, %v2040_v58  ;;  %v1981_v13 = vmul.f32 %v1965_v47, %v1947_v16  ;;  %v1973_v23 = vmul.f32 %v1957_v9, %v1945_v44  ;;  %v1869_v59 = vld [vmem:[#allocation3 + $0x68] sm:$0xff]  ;;  %v6221_v16 = vld [vmem:[#allocation72_spill] sm:$0xff] }
 0x4c9   :  { %2814 = vmatpush.msra.mxu3 %v2077_v49  ;;  %v1865_v47 = vld [vmem:[#allocation3 + $0x48] sm:$0xff] }
 0x4ca   :  { %2831 = vmatpush.msrb.mxu0 %v2473_v12 }
 0x4cb   :  { %v5415_v36 = vpop.permute.xlu2 %2504  ;;  %2815 = vmatpush.msra.mxu3 %v2073_v38  ;;  %v5417_v19 = vpop.permute.xlu0 %2508  ;;  %v6220_v38 = vld [vmem:[#allocation36_spill] sm:$0xff] }
 0x4cc   :  { %2832 = vmatpush.msrb.mxu0 %v2469_v31  ;;  %v5423_v57 = vpop.permute.xlu1 %2112  ;;  %v6217_v31 = vld [vmem:[#allocation7_spill] sm:$0xff]  ;;  %v1851_v39 = vsel %vm62_vm7, %v4918_v61, %v6220_v38 }
 0x4cd   :  { %6216 = vst [vmem:[#allocation54_spill] sm:$0xff] %v5423_v57  ;;  %v5428_v11 = vsel %vm137_vm5, %v2105_v55, %v5423_v57  ;;  %2816 = vmatpush.msra.mxu3 %v2069_v45  ;;  %v1946_v33 = vsel %vm87_vm6, %v4887_v1, %v6217_v31  ;;  %v6219_v55 = vld [vmem:[#allocation73_spill] sm:$0xff]  ;;  %v2553_v1 = vld [vmem:[#allocation3 + $0x448] sm:$0xff] }
 0x4ce   :  { %v1977_v62 = vmul.f32 %v1961_v21, %v1946_v33  ;;  %v1944_v17 = vsel %vm87_vm6, %v4779_v63, %v6219_v55  ;;  %v1885_v33 = vmul.f32 %v1869_v59, %v1851_v39  ;;  %v6222_v61 = vld [vmem:[#allocation15_spill] sm:$0xff] }
 0x4cf   :  { %2817 = vmatpush.msra.mxu3 %v2065_v2  ;;  %v1969_v45 = vmul.f32 %v1953_v50, %v1944_v17  ;;  %v1850_v2 = vsel %vm62_vm7, %v4855_v41, %v6221_v16  ;;  %v1849_v9 = vsel %vm62_vm7, %v6209_v3, %v6222_v61  ;;  %v6223_v50 = vld [vmem:[#allocation27_spill] sm:$0xff] }
 0x4d0   :  { %v1881_v44 = vmul.f32 %v1865_v47, %v1850_v2  ;;  %v1848_v17 = vsel %vm62_vm7, %v6210_v46, %v6223_v50  ;;  %v2549_v3 = vld [vmem:[#allocation3 + $0x428] sm:$0xff] }
 0x4d1   :  { %2818 = vmatpush.msra.mxu3 %v1981_v13  ;;  %v1861_v13 = vld [vmem:[#allocation3 + $0x28] sm:$0xff] }
 0x4d2   :  { %v1877_v41 = vmul.f32 %v1861_v13, %v1849_v9  ;;  %v2545_v13 = vld [vmem:[#allocation3 + $0x408] sm:$0xff] }
 0x4d3   :  { %v5442_v49 = vpop.permute.xlu2 %2426  ;;  %2819 = vmatpush.msra.mxu3 %v1977_v62  ;;  %v5444_v12 = vpop.permute.xlu0 %2430  ;;  %v1857_v62 = vld [vmem:[#allocation3 + $0x8] sm:$0xff] }
 0x4d4   :  { %v5450_v58 = vpop.permute.xlu1 %2516  ;;  %v2435_v59 = vsel %vm216_vm1, %v5354_v60, %v5444_v12  ;;  %v1873_v46 = vmul.f32 %v1857_v62, %v1848_v17  ;;  %v2454_v17 = vld [vmem:[#allocation3 + $0x3b0] sm:$0xff] }
 0x4d5   :  { %v2534_v63 = vsel %vm241_vm0, %v5417_v19, %v5450_v58  ;;  %2820 = vmatpush.msra.mxu3 %v1973_v23  ;;  %v2449_v23 = vld [vmem:[#allocation3 + $0x388] sm:$0xff] }
 0x4d6   :  { %v2569_v21 = vmul.f32 %v2553_v1, %v2534_v63  ;;  %v2462_v1 = vld [vmem:[#allocation3 + $0x3f0] sm:$0xff] }
 0x4d7   :  { %2821 = vmatpush.msra.mxu3 %v1969_v45  ;;  %v2478_v60 = vmul.f32 %v2462_v1, %v2435_v59 }
 0x4d8   :  { %2863 = vmatpush.msrb.mxu1 %v2569_v21 }
 0x4d9   :  { %2822 = vmatpush.msra.mxu3 %v1885_v33 }
 0x4db   :  { %v5472_v39 = vpop.permute.xlu2 %2322  ;;  %2823 = vmatpush.msra.mxu3 %v1881_v44  ;;  %v2417_v45 = vpop.permute.xlu0 %2416  ;;  %v2458_v44 = vld [vmem:[#allocation3 + $0x3d0] sm:$0xff] }
 0x4dc   :  { %v5474_v63 = vpop.permute.xlu1 %2506  ;;  %v2436_v47 = vsel %vm216_vm1, %v4941_v4, %v2417_v45 }
 0x4dd   :  { %v2533_v2 = vsel %vm241_vm0, %v5474_v63, %v5380_v20  ;;  %v2465_v21 = vmul.f32 %v2449_v23, %v2436_v47  ;;  %2824 = vmatpush.msra.mxu3 %v1877_v41  ;;  %v2433_v23 = vsel %vm216_vm1, %v5352_v15, %v5442_v49 }
 0x4de   :  { %v2565_v33 = vmul.f32 %v2549_v3, %v2533_v2  ;;  %v2470_v3 = vmul.f32 %v2454_v17, %v2433_v23  ;;  %v2353_v17 = vld [vmem:[#allocation3 + $0x308] sm:$0xff] }
 0x4df   :  { %2825 = vmatpush.msra.mxu3 %v1873_v46  ;;  %2833 = vmatpush.msrb.mxu0 %v2465_v21  ;;  %v2365_v46 = vld [vmem:[#allocation3 + $0x368] sm:$0xff] }
 0x4e0   :  { %2864 = vmatpush.msrb.mxu1 %v2565_v33 }
 0x4e1   :  { %2890 = vmatpush.msrb.mxu3 %v2478_v60  ;;  %v2361_v60 = vld [vmem:[#allocation3 + $0x348] sm:$0xff] }
 0x4e3   :  { %v5483_v9 = vpop.permute.xlu2 %2320  ;;  %v5485_v57 = vpop.permute.xlu0 %2512 }
 0x4e4   :  { %v5487_v4 = vpop.permute.xlu1 %2428  ;;  %v2532_v62 = vsel %vm241_vm0, %v5415_v36, %v5485_v57 }
 0x4e5   :  { %v2434_v41 = vsel %vm216_vm1, %v5315_v18, %v5487_v4  ;;  %v2561_v1 = vmul.f32 %v2545_v13, %v2532_v62  ;;  %v2357_v13 = vld [vmem:[#allocation3 + $0x328] sm:$0xff] }
 0x4e6   :  { %v2474_v59 = vmul.f32 %v2458_v44, %v2434_v41  ;;  %v2341_v44 = vsel %vm191_vm2, %v4980_v54, %v5472_v39  ;;  %v2269_v41 = vld [vmem:[#allocation3 + $0x2e8] sm:$0xff] }
 0x4e7   :  { %2865 = vmatpush.msrb.mxu1 %v2561_v1  ;;  %v2373_v23 = vmul.f32 %v2357_v13, %v2341_v44 }
 0x4e8   :  { %2891 = vmatpush.msrb.mxu3 %v2474_v59  ;;  %v2450_v59 = vld [vmem:[#allocation3 + $0x390] sm:$0xff] }
 0x4ea   :  { %2892 = vmatpush.msrb.mxu3 %v2470_v3 }
 0x4eb   :  { %v5501_v47 = vpop.permute.xlu2 %2230  ;;  %v2325_v2 = vpop.permute.xlu0 %2324 }
 0x4ec   :  { %v2327_v21 = vpop.permute.xlu1 %2326  ;;  %v2342_v18 = vsel %vm191_vm2, %v4996_v34, %v2325_v2  ;;  %v2247_v34 = vsel %vm166_vm3, %v5062_v30, %v5501_v47  ;;  %v2366_v30 = vld [vmem:[#allocation3 + $0x370] sm:$0xff] }
 0x4ed   :  { %v2343_v15 = vsel %vm191_vm2, %v5030_v56, %v2327_v21  ;;  %v2377_v62 = vmul.f32 %v2361_v60, %v2342_v18  ;;  %v2340_v56 = vsel %vm191_vm2, %v4943_v51, %v5483_v9 }
 0x4ee   :  { %v2381_v33 = vmul.f32 %v2365_v46, %v2343_v15  ;;  %v2369_v3 = vmul.f32 %v2353_v17, %v2340_v56  ;;  %v2265_v15 = vld [vmem:[#allocation3 + $0x2c8] sm:$0xff] }
 0x4ef   :  { %v2261_v17 = vld [vmem:[#allocation3 + $0x2a8] sm:$0xff] }
 0x4f0   :  { %2834 = vmatpush.msrb.mxu0 %v2381_v33  ;;  %v2285_v33 = vmul.f32 %v2269_v41, %v2247_v34 }
 0x4f2   :  { %2835 = vmatpush.msrb.mxu0 %v2377_v62 }
 0x4f3   :  { %v5521_v1 = vpop.permute.xlu2 %2228  ;;  %v5523_v54 = vpop.permute.xlu0 %2334 }
 0x4f4   :  { %v5525_v46 = vpop.permute.xlu1 %2424  ;;  %2836 = vmatpush.msrb.mxu0 %v2373_v23  ;;  %v2246_v51 = vsel %vm166_vm3, %v5006_v27, %v5521_v1  ;;  %v2339_v18 = vsel %vm191_vm2, %v2327_v21, %v5523_v54  ;;  %v2362_v27 = vld [vmem:[#allocation3 + $0x350] sm:$0xff]  ;;  %v2556_v23 = vld [vmem:[#allocation3 + $0x460] sm:$0xff] }
 0x4f5   :  { %v2432_v60 = vsel %vm216_vm1, %v2417_v45, %v5525_v46  ;;  %v2281_v44 = vmul.f32 %v2265_v15, %v2246_v51  ;;  %v2382_v62 = vmul.f32 %v2366_v30, %v2339_v18  ;;  %v2593_v30 = vld [vmem:[%s5843_s8 + $0x8] sm:$0xf] }
 0x4f6   :  { %v2466_v13 = vmul.f32 %v2450_v59, %v2432_v60  ;;  %2837 = vmatpush.msrb.mxu0 %v2369_v3  ;;  %v2592_v59 = vld [vmem:[%s5843_s8] sm:$0xff]  ;;  %v2552_v18 = vld [vmem:[#allocation3 + $0x440] sm:$0xff]  ;;  %2742 = vst [vmem:[#allocation1 + $0x10] ss:$2 sm:$0xff] %v2593_v30 }
 0x4f7   :  { %2740 = vst [vmem:[#allocation1] ss:$2 sm:$0xff] %v2592_v59  ;;  %v2354_v59 = vld [vmem:[#allocation3 + $0x310] sm:$0xff] }
 0x4f8   :  { %2838 = vmatpush.msrb.mxu0 %v2285_v33  ;;  %2893 = vmatpush.msrb.mxu3 %v2466_v13 }
 0x4fa   :  { %2839 = vmatpush.msrb.mxu0 %v2281_v44  ;;  %2894 = vmatpush.msrb.mxu3 %v2382_v62 }
 0x4fb   :  { %v5537_v56 = vpop.permute.xlu2 %2226  ;;  %v5539_v45 = vpop.permute.xlu0 %2332 }
 0x4fc   :  { %v2245_v21 = vsel %vm166_vm3, %v4982_v24, %v5537_v56  ;;  %v5545_v41 = vpop.permute.xlu1 %2502  ;;  %v2338_v34 = vsel %vm191_vm2, %v2325_v2, %v5539_v45  ;;  %v2358_v24 = vld [vmem:[#allocation3 + $0x330] sm:$0xff]  ;;  %v2992_v2 = vld [vmem:[%s5837_s2] sm:$0xff] }
 0x4fd   :  { %v2277_v3 = vmul.f32 %v2261_v17, %v2245_v21  ;;  %v2539_v15 = vsel %vm241_vm0, %v5545_v41, %v5390_v28  ;;  %v2378_v51 = vmul.f32 %v2362_v27, %v2338_v34  ;;  %v2994_v13 = vsub.f32 1.0, %v2992_v2 }
 0x4fe   :  { %v2572_v60 = vmul.f32 %v2556_v23, %v2539_v15  ;;  %v5571_v62 = vld.sshfl [vmem:[#allocation1] sm:$0xff pattern:$0x75316420]  ;;  %v5573_v17 = vld.sshfl [vmem:[#allocation1 + $0x8] sm:$0xff pattern:$0x75316420] }
 0x4ff   :  { %2840 = vmatpush.msrb.mxu0 %v2277_v3  ;;  %2895 = vmatpush.msrb.mxu3 %v2378_v51  ;;  %6224 = vst [vmem:[#allocation55_spill] sm:$0xff] %v5571_v62  ;;  %v5585_v3 = vld.sshfl [vmem:[#allocation1 + $0x10] sm:$0xff pattern:$0x75316420] }
 0x500   :  { %2802 = vmatpush.msra.mxu2 %v2572_v60  ;;  %2766 = vmatmul.f32.vlgmr.msra.gmra.mxu0 %v5571_v62  ;;  %2998 = vst [vmem:[#allocation1] ss:$2 sm:$0xff] %v2994_v13  ;;  %v2270_v13 = vld [vmem:[#allocation3 + $0x2f0] sm:$0xff] }
 0x501   :  { %2786 = vmatmul.f32.vlgmr.msra.gmra.mxu1 %v5573_v17  ;;  %2826 = vmatmul.f32.vlgmr.msra.gmra.mxu3 %v5571_v62 }
 0x503   :  { %v5563_v33 = vpop.permute.xlu0 %2330 }
 0x504   :  { %v5565_v28 = vpop.permute.xlu1 %2500  ;;  %v2337_v44 = vsel %vm191_vm2, %v5472_v39, %v5563_v33  ;;  %v2993_v39 = vld [vmem:[%s5837_s2 + $0x8] sm:$0xff] }
 0x505   :  { %v2538_v27 = vsel %vm241_vm0, %v5565_v28, %v5417_v19  ;;  %v2374_v23 = vmul.f32 %v2358_v24, %v2337_v44  ;;  %v2995_v34 = vsub.f32 1.0, %v2993_v39  ;;  %v2548_v19 = vld [vmem:[#allocation3 + $0x420] sm:$0xff] }
 0x506   :  { %v2568_v21 = vmul.f32 %v2552_v18, %v2538_v27  ;;  %v5601_v18 = vpop.permute.xlu2 %2236  ;;  %v2544_v44 = vld [vmem:[#allocation3 + $0x400] sm:$0xff] }
 0x507   :  { %2896 = vmatpush.msrb.mxu3 %v2374_v23  ;;  %3000 = vst [vmem:[#allocation1 + $0x10] ss:$2 sm:$0xff] %v2995_v34  ;;  %v2158_v23 = vld [vmem:[#allocation3 + $0x1f0] sm:$0xff]  ;;  %v2242_v39 = vsel %vm166_vm3, %v5521_v1, %v5601_v18 }
 0x508   :  { %2803 = vmatpush.msra.mxu2 %v2568_v21 }
 0x509   :  { %3066 = vmatmul.msk.f32.vlgmr.msrb.gmra.mxu1 %vm1431_vm9, %v5585_v3 }
 0x50b   :  { %v5587_v15 = vpop.permute.xlu0 %2328 }
 0x50c   :  { %v5589_v51 = vpop.permute.xlu1 %2498  ;;  %v2336_v60 = vsel %vm191_vm2, %v5483_v9, %v5587_v15  ;;  %v6226_v9 = vld [vmem:[#allocation46_spill] sm:$0xff] }
 0x50d   :  { %6225 = vst [vmem:[#allocation44_spill] sm:$0xff] %v5589_v51  ;;  %v2537_v24 = vsel %vm241_vm0, %v5589_v51, %v5474_v63  ;;  %v2370_v2 = vmul.f32 %v2354_v59, %v2336_v60  ;;  %v2135_v21 = vsel %vm137_vm5, %v6226_v9, %v5319_v5  ;;  %v2266_v63 = vld [vmem:[#allocation3 + $0x2d0] sm:$0xff] }
 0x50e   :  { %v2564_v30 = vmul.f32 %v2548_v19, %v2537_v24  ;;  %v2154_v5 = vld [vmem:[#allocation3 + $0x1d0] sm:$0xff]  ;;  %v2134_v24 = vsel %vm137_vm5, %v5004_v8, %v5317_v29  ;;  %v2039_v29 = vsel %vm112_vm4, %v6211_v40, %v5219_v6 }
 0x50f   :  { %2897 = vmatpush.msrb.mxu3 %v2370_v2  ;;  %v2174_v2 = vmul.f32 %v2158_v23, %v2135_v21  ;;  %v2150_v9 = vld [vmem:[#allocation3 + $0x1b0] sm:$0xff]  ;;  %v2170_v62 = vmul.f32 %v2154_v5, %v2134_v24  ;;  %v2037_v24 = vsel %vm112_vm4, %v6213_v42, %v5192_v52  ;;  %v6228_v42 = vld [vmem:[#allocation11_spill] sm:$0xff] }
 0x510   :  { %2804 = vmatpush.msra.mxu2 %v2564_v30  ;;  %v2282_v30 = vmul.f32 %v2266_v63, %v2242_v39  ;;  %v2262_v51 = vld [vmem:[#allocation3 + $0x2b0] sm:$0xff] }
 0x511   :  { %v2062_v8 = vld [vmem:[#allocation3 + $0x170] sm:$0xff] }
 0x512   :  { %v2258_v23 = vld [vmem:[#allocation3 + $0x290] sm:$0xff] }
 0x513   :  { %v5603_v27 = vpop.permute.xlu0 %2238  ;;  %v2058_v40 = vld [vmem:[#allocation3 + $0x150] sm:$0xff] }
 0x514   :  { %v5613_v34 = vpop.permute.xlu1 %2496  ;;  %v2243_v59 = vsel %vm166_vm3, %v5501_v47, %v5603_v27  ;;  %v2146_v47 = vld [vmem:[#allocation3 + $0x190] sm:$0xff] }
 0x515   :  { %v2536_v19 = vsel %vm241_vm0, %v5613_v34, %v5415_v36  ;;  %v2286_v60 = vmul.f32 %v2270_v13, %v2243_v59  ;;  %v2166_v36 = vmul.f32 %v2150_v9, %v5363_v35  ;;  %v2257_v13 = vld [vmem:[#allocation3 + $0x288] sm:$0xff]  ;;  %v2162_v35 = vmul.f32 %v2146_v47, %v5428_v11  ;;  %v2054_v11 = vld [vmem:[#allocation3 + $0x130] sm:$0xff] }
 0x516   :  { %v2560_v1 = vmul.f32 %v2544_v44, %v2536_v19  ;;  %v5636_v44 = vpop.permute.xlu2 %2232  ;;  %v2038_v19 = vsel %vm112_vm4, %v6212_v0, %v5176_v22  ;;  %v2036_v22 = vsel %vm112_vm4, %v6214_v48, %v5094_v10  ;;  %v6227_v0 = vld [vmem:[#allocation38_spill] sm:$0xff]  ;;  %v1966_v47 = vld [vmem:[#allocation3 + $0xf0] sm:$0xff]  ;;  %v2463_v48 = vld [vmem:[#allocation3 + $0x3f8] sm:$0xff] }
 0x517   :  { %2898 = vmatpush.msrb.mxu3 %v2286_v60 }
 0x518   :  { %2805 = vmatpush.msra.mxu2 %v2560_v1  ;;  %v2070_v1 = vmul.f32 %v2054_v11, %v2037_v24  ;;  %v6238_v24 = vld [vmem:[#allocation16_spill] sm:$0xff] }
 0x519   :  { %2899 = vmatpush.msrb.mxu3 %v2282_v30  ;;  %3065 = vmatmul.msk.f32.vlgmr.msra.gmra.mxu2 %vm1431_vm9, %v5585_v3 }
 0x51a   :  { %2870 = vmatpush.msrb.mxu2 %v2174_v2  ;;  %v2558_v2 = vld [vmem:[#allocation3 + $0x470] sm:$0xff] }
 0x51b   :  { %v5630_v59 = vpop.permute.xlu0 %2234 }
 0x51c   :  { %2871 = vmatpush.msrb.mxu2 %v2170_v62  ;;  %v2225_v21 = vpop.permute.xlu1 %2224  ;;  %v2241_v63 = vsel %vm166_vm3, %v5537_v56, %v5630_v59  ;;  %v2078_v56 = vmul.f32 %v2062_v8, %v2039_v29 }
 0x51d   :  { %v2240_v62 = vsel %vm166_vm3, %v2225_v21, %v5636_v44  ;;  %v2244_v39 = vsel %vm166_vm3, %v4956_v43, %v2225_v21  ;;  %v2278_v6 = vmul.f32 %v2262_v51, %v2241_v63  ;;  %v2074_v43 = vmul.f32 %v2058_v40, %v2038_v19  ;;  %v2050_v51 = vld [vmem:[#allocation3 + $0x110] sm:$0xff]  ;;  %v6232_v63 = vld [vmem:[#allocation45_spill] sm:$0xff] }
 0x51e   :  { %2872 = vmatpush.msrb.mxu2 %v2166_v36  ;;  %v2273_v60 = vmul.f32 %v2257_v13, %v2244_v39  ;;  %v2274_v5 = vmul.f32 %v2258_v23, %v2240_v62  ;;  %v2066_v9 = vmul.f32 %v2050_v51, %v2036_v22  ;;  %v6229_v36 = vld [vmem:[#allocation9_spill] sm:$0xff]  ;;  %v6230_v13 = vld [vmem:[#allocation31_spill] sm:$0xff]  ;;  %v2554_v23 = vld [vmem:[#allocation3 + $0x450] sm:$0xff] }
 0x51f   :  { %2900 = vmatpush.msrb.mxu3 %v2278_v6  ;;  %v1943_v10 = vsel %vm87_vm6, %v6215_v25, %v6229_v36  ;;  %v2447_v8 = vsel %vm216_vm1, %v5444_v12, %v6230_v13  ;;  %v6231_v25 = vld [vmem:[#allocation63_spill] sm:$0xff]  ;;  %v2459_v39 = vld [vmem:[#allocation3 + $0x3d8] sm:$0xff]  ;;  %v1954_v51 = vld [vmem:[#allocation3 + $0x90] sm:$0xff] }
 0x520   :  { %2873 = vmatpush.msrb.mxu2 %v2162_v35  ;;  %2841 = vmatpush.msrb.mxu0 %v2273_v60  ;;  %v1962_v35 = vld [vmem:[#allocation3 + $0xd0] sm:$0xff]  ;;  %v6233_v62 = vld [vmem:[#allocation75_spill] sm:$0xff]  ;;  %v1982_v40 = vmul.f32 %v1966_v47, %v1943_v10  ;;  %v2479_v19 = vmul.f32 %v2463_v48, %v2447_v8  ;;  %v6236_v60 = vld [vmem:[#allocation17_spill] sm:$0xff]  ;;  %v1847_v8 = vsel %vm62_vm7, %v6220_v38, %v5279_v53 }
 0x521   :  { %2901 = vmatpush.msrb.mxu3 %v2274_v5  ;;  %v1942_v12 = vsel %vm87_vm6, %v6217_v31, %v6233_v62  ;;  %v6237_v5 = vld [vmem:[#allocation76_spill] sm:$0xff]  ;;  %v2455_v31 = vld [vmem:[#allocation3 + $0x3b8] sm:$0xff]  ;;  %v6239_v22 = vld [vmem:[#allocation51_spill] sm:$0xff] }
 0x522   :  { %2874 = vmatpush.msrb.mxu2 %v2078_v56  ;;  %2842 = vmatpush.msrb.mxu0 %v6227_v0  ;;  %v1958_v56 = vld [vmem:[#allocation3 + $0xb0] sm:$0xff]  ;;  %v1941_v11 = vsel %vm87_vm6, %v6218_v14, %v6237_v5  ;;  %v1940_v0 = vsel %vm87_vm6, %v6219_v55, %v6239_v22  ;;  %v2451_v14 = vld [vmem:[#allocation3 + $0x398] sm:$0xff] }
 0x523   :  { %2902 = vmatpush.msrb.mxu3 %v4948_v7  ;;  %v5663_v30 = vpop.permute.xlu0 %2524  ;;  %v2550_v47 = vld [vmem:[#allocation3 + $0x430] sm:$0xff]  ;;  %v1974_v36 = vmul.f32 %v1958_v56, %v1941_v11  ;;  %v1970_v48 = vmul.f32 %v1954_v51, %v1940_v0  ;;  %v2159_v62 = vld [vmem:[#allocation3 + $0x1f8] sm:$0xff] }
 0x524   :  { %2875 = vmatpush.msrb.mxu2 %v2074_v43  ;;  %v5665_v52 = vpop.permute.xlu1 %2526  ;;  %2843 = vmatpush.msrb.mxu0 %v6228_v42  ;;  %v2530_v21 = vsel %vm241_vm0, %v5450_v58, %v5663_v30  ;;  %v6235_v58 = vld [vmem:[#allocation14_spill] sm:$0xff]  ;;  %v2445_v43 = vsel %vm216_vm1, %v5442_v49, %v6238_v24  ;;  %v6240_v42 = vld [vmem:[#allocation47_spill] sm:$0xff]  ;;  %v1870_v13 = vld [vmem:[#allocation3 + $0x70] sm:$0xff] }
 0x525   :  { %v2531_v7 = vsel %vm241_vm0, %v5277_v37, %v5665_v52  ;;  %2903 = vmatpush.msrb.mxu3 %v6232_v63  ;;  %v6234_v37 = vld [vmem:[#allocation59_spill] sm:$0xff]  ;;  %v2444_v49 = vsel %vm216_vm1, %v5525_v46, %v6240_v42  ;;  %v2471_v10 = vmul.f32 %v2455_v31, %v2445_v43  ;;  %v2367_v46 = vld [vmem:[#allocation3 + $0x378] sm:$0xff]  ;;  %v1866_v63 = vld [vmem:[#allocation3 + $0x50] sm:$0xff] }
 0x526   :  { %2876 = vmatpush.msrb.mxu2 %v2070_v1  ;;  %v2574_v29 = vmul.f32 %v2558_v2, %v2531_v7  ;;  %2844 = vmatpush.msrb.mxu0 %v6231_v25  ;;  %v2446_v6 = vsel %vm216_vm1, %v5487_v4, %v6234_v37  ;;  %v2570_v4 = vmul.f32 %v2554_v23, %v2530_v21  ;;  %v6241_v7 = vld [vmem:[#allocation32_spill] sm:$0xff]  ;;  %v6242_v25 = vld [vmem:[#allocation74_spill] sm:$0xff]  ;;  %v2359_v31 = vld [vmem:[#allocation3 + $0x338] sm:$0xff] }
 0x527   :  { %2904 = vmatpush.msrb.mxu3 %v6236_v60  ;;  %v1978_v1 = vmul.f32 %v1962_v35, %v1942_v12  ;;  %v2475_v2 = vmul.f32 %v2459_v39, %v2446_v6  ;;  %v2467_v23 = vmul.f32 %v2451_v14, %v2444_v49  ;;  %v2546_v21 = vld [vmem:[#allocation3 + $0x410] sm:$0xff]  ;;  %v1886_v39 = vmul.f32 %v1870_v13, %v1847_v8  ;;  %v2363_v6 = vld [vmem:[#allocation3 + $0x358] sm:$0xff]  ;;  %v6247_v24 = vld [vmem:[#allocation50_spill] sm:$0xff] }
 0x528   :  { %2877 = vmatpush.msrb.mxu2 %v2066_v9  ;;  %2845 = vmatpush.msrb.mxu0 %v6235_v58  ;;  %v5713_v9 = vpop.permute.xlu2 %2520  ;;  %v6243_v35 = vld [vmem:[#allocation12_spill] sm:$0xff]  ;;  %v2155_v58 = vld [vmem:[#allocation3 + $0x1d8] sm:$0xff] }
 0x529   :  { %2922 = vmatpush.msra.mxu1 %v2574_v29  ;;  %2846 = vmatmul.f32.vlgmr.msrb.gmra.mxu0 %v5573_v17  ;;  %v2528_v53 = vsel %vm241_vm0, %v5485_v57, %v5713_v9  ;;  %v1862_v12 = vld [vmem:[#allocation3 + $0x30] sm:$0xff]  ;;  %v6244_v57 = vld [vmem:[#allocation26_spill] sm:$0xff]  ;;  %v2355_v0 = vld [vmem:[#allocation3 + $0x318] sm:$0xff] }
 0x52a   :  { %2878 = vmatpush.msrb.mxu2 %v1982_v40  ;;  %2950 = vmatpush.msra.mxu0 %v2479_v19  ;;  %v2350_v40 = vsel %vm191_vm2, %v5539_v45, %v6244_v57  ;;  %v6245_v19 = vld [vmem:[#allocation29_spill] sm:$0xff]  ;;  %v2562_v60 = vmul.f32 %v2546_v21, %v2528_v53  ;;  %v6246_v5 = vld [vmem:[#allocation68_spill] sm:$0xff]  ;;  %v2349_v45 = vsel %vm191_vm2, %v5563_v33, %v6247_v24 }
 0x52b   :  { %2905 = vmatpush.msrb.mxu3 %v4830_v26  ;;  %2923 = vmatpush.msra.mxu1 %v2570_v4  ;;  %v2351_v26 = vsel %vm191_vm2, %v5523_v54, %v6241_v7  ;;  %v1845_v54 = vsel %vm62_vm7, %v6222_v61, %v6242_v25  ;;  %v1844_v61 = vsel %vm62_vm7, %v6223_v50, %v6245_v19  ;;  %v2151_v4 = vld [vmem:[#allocation3 + $0x1b8] sm:$0xff]  ;;  %v6248_v50 = vld [vmem:[#allocation67_spill] sm:$0xff] }
 0x52c   :  { %2879 = vmatpush.msrb.mxu2 %v1978_v1  ;;  %2951 = vmatpush.msra.mxu0 %v2475_v2  ;;  %v5716_v55 = vpop.permute.xlu1 %2522  ;;  %v2383_v37 = vmul.f32 %v2367_v46, %v2351_v26  ;;  %v2175_v11 = vmul.f32 %v2159_v62, %v6246_v5  ;;  %v1878_v43 = vmul.f32 %v1862_v12, %v1845_v54  ;;  %v6249_v1 = vld [vmem:[#allocation49_spill] sm:$0xff]  ;;  %v6253_v46 = vld [vmem:[#allocation18_spill] sm:$0xff]  ;;  %v6255_v54 = vld [vmem:[#allocation44_spill] sm:$0xff] }
 0x52d   :  { %v2529_v29 = vsel %vm241_vm0, %v5380_v20, %v5716_v55  ;;  %2906 = vmatmul.f32.vlgmr.msrb.gmra.mxu3 %v5573_v17  ;;  %v1846_v20 = vsel %vm62_vm7, %v6221_v16, %v6243_v35  ;;  %v1858_v16 = vld [vmem:[#allocation3 + $0x10] sm:$0xff]  ;;  %v2379_v51 = vmul.f32 %v2363_v6, %v2350_v40  ;;  %v2171_v22 = vmul.f32 %v2155_v58, %v6248_v50  ;;  %v2559_v14 = vld [vmem:[#allocation3 + $0x478] sm:$0xff] }
 0x52e   :  { %v2566_v38 = vmul.f32 %v2550_v47, %v2529_v29  ;;  %2880 = vmatpush.msrb.mxu2 %v1974_v36  ;;  %2952 = vmatpush.msra.mxu0 %v2471_v10  ;;  %v1882_v56 = vmul.f32 %v1866_v63, %v1846_v20  ;;  %v2348_v2 = vsel %vm191_vm2, %v5587_v15, %v6249_v1  ;;  %v2147_v49 = vld [vmem:[#allocation3 + $0x198] sm:$0xff]  ;;  %v6250_v47 = vld [vmem:[#allocation42_spill] sm:$0xff]  ;;  %v6252_v15 = vld [vmem:[#allocation43_spill] sm:$0xff] }
 0x52f   :  { %v2543_v33 = vsel %vm241_vm0, %v5665_v52, %v5545_v41  ;;  %v1874_v42 = vmul.f32 %v1858_v16, %v1844_v61  ;;  %v6251_v36 = vld [vmem:[#allocation54_spill] sm:$0xff]  ;;  %v2167_v13 = vmul.f32 %v2151_v4, %v6252_v15  ;;  %v2271_v8 = vld [vmem:[#allocation3 + $0x2f8] sm:$0xff]  ;;  %v2255_v41 = vsel %vm166_vm3, %v5603_v27, %v6253_v46  ;;  %v6256_v35 = vld [vmem:[#allocation24_spill] sm:$0xff] }
 0x530   :  { %2881 = vmatpush.msrb.mxu2 %v1970_v48  ;;  %2953 = vmatpush.msra.mxu0 %v2467_v23  ;;  %v2128_v10 = vsel %vm137_vm5, %v6251_v36, %v6250_v47  ;;  %v2375_v48 = vmul.f32 %v2359_v31, %v2349_v45  ;;  %v2555_v52 = vld [vmem:[#allocation3 + $0x458] sm:$0xff]  ;;  %v2542_v7 = vsel %vm241_vm0, %v5663_v30, %v5565_v28  ;;  %v6259_v61 = vld [vmem:[#allocation66_spill] sm:$0xff]  ;;  %v6262_v45 = vld [vmem:[#allocation19_spill] sm:$0xff] }
 0x531   :  { %2924 = vmatpush.msra.mxu1 %v2566_v38  ;;  %v2063_v26 = vld [vmem:[#allocation3 + $0x178] sm:$0xff]  ;;  %v2371_v29 = vmul.f32 %v2355_v0, %v2348_v2  ;;  %v2575_v23 = vmul.f32 %v2559_v14, %v2543_v33  ;;  %v2163_v21 = vmul.f32 %v2147_v49, %v2128_v10  ;;  %v2541_v63 = vsel %vm241_vm0, %v5716_v55, %v6255_v54  ;;  %v6265_v50 = vld [vmem:[#allocation64_spill] sm:$0xff]  ;;  %v6267_v2 = vld [vmem:[#allocation71_spill] sm:$0xff] }
 0x532   :  { %2882 = vmatpush.msrb.mxu2 %v1886_v39  ;;  %2954 = vmatpush.msra.mxu0 %v2383_v37  ;;  %v2267_v53 = vld [vmem:[#allocation3 + $0x2d8] sm:$0xff]  ;;  %v2287_v28 = vmul.f32 %v2271_v8, %v2255_v41  ;;  %v2571_v30 = vmul.f32 %v2555_v52, %v2542_v7  ;;  %v2079_v20 = vmul.f32 %v2063_v26, %v6256_v35  ;;  %v6257_v39 = vld [vmem:[#allocation62_spill] sm:$0xff]  ;;  %v6258_v37 = vld [vmem:[#allocation55_spill] sm:$0xff] }
 0x533   :  { %2925 = vmatpush.msra.mxu1 %v2562_v60  ;;  %v6254_v38 = vld [vmem:[#allocation69_spill] sm:$0xff]  ;;  %v2253_v55 = vsel %vm166_vm3, %v5630_v59, %v6257_v39  ;;  %v6266_v0 = vld [vmem:[#allocation60_spill] sm:$0xff] }
 0x534   :  { %2883 = vmatpush.msrb.mxu2 %v1882_v56  ;;  %2955 = vmatpush.msra.mxu0 %v2379_v51  ;;  %v2254_v25 = vsel %vm166_vm3, %v5601_v18, %v6254_v38  ;;  %v2551_v27 = vld [vmem:[#allocation3 + $0x438] sm:$0xff]  ;;  %v2540_v18 = vsel %vm241_vm0, %v5713_v9, %v5613_v34  ;;  %v6264_v51 = vld [vmem:[#allocation48_spill] sm:$0xff] }
 0x535   :  { %2930 = vmatpush.msrb.mxu1 %v2175_v11  ;;  %v2547_v62 = vld [vmem:[#allocation3 + $0x418] sm:$0xff]  ;;  %v2283_v57 = vmul.f32 %v2267_v53, %v2254_v25  ;;  %v2567_v40 = vmul.f32 %v2551_v27, %v2541_v63 }
 0x536   :  { %3067 = vmatmul.msk.f32.vlgmr.msra.gmra.mxu1 %vm1431_vm9, %v5585_v3  ;;  %2884 = vmatpush.msrb.mxu2 %v1878_v43  ;;  %v2263_v12 = vld [vmem:[#allocation3 + $0x2b8] sm:$0xff]  ;;  %v2563_v9 = vmul.f32 %v2547_v62, %v2540_v18 }
 0x537   :  { %2931 = vmatpush.msrb.mxu1 %v2171_v22  ;;  %2956 = vmatpush.msra.mxu0 %v2375_v48  ;;  %v2055_v6 = vld [vmem:[#allocation3 + $0x138] sm:$0xff]  ;;  %v2279_v59 = vmul.f32 %v2263_v12, %v2253_v55 }
 0x538   :  { %2885 = vmatpush.msrb.mxu2 %v1874_v42  ;;  %v3087_v19 = vld [vmem:[#allocation3 + $0x158] sm:$0xff]  ;;  %v6268_v42 = vld [vmem:[#allocation40_spill] sm:$0xff] }
 0x539   :  { %2932 = vmatpush.msrb.mxu1 %v2167_v13  ;;  %2957 = vmatpush.msra.mxu0 %v2371_v29  ;;  %v2075_v58 = vmul.f32 %v3087_v19, %v6259_v61  ;;  %v2259_v60 = vld [vmem:[#allocation3 + $0x298] sm:$0xff] }
 0x53a   :  { %2982 = vmatpush.msra.mxu2 %v2575_v23  ;;  %v6260_v16 = vld [vmem:[#allocation25_spill] sm:$0xff] }
 0x53b   :  { %2933 = vmatpush.msrb.mxu1 %v2163_v21  ;;  %2886 = vmatmul.f32.vlgmr.msrb.gmra.mxu2 %v6258_v37  ;;  %v2252_v34 = vsel %vm166_vm3, %v5636_v44, %v6260_v16  ;;  %v6261_v56 = vld [vmem:[#allocation13_spill] sm:$0xff]  ;;  %v3004_v16 = vld.sshfl [vmem:[#allocation1 + $0x18] sm:$0xff pattern:$0x75316420] }
 0x53c   :  { %2958 = vmatpush.msra.mxu0 %v2287_v28  ;;  %2983 = vmatpush.msra.mxu2 %v2571_v30  ;;  %v2071_v5 = vmul.f32 %v2055_v6, %v6261_v56  ;;  %v1967_v11 = vld [vmem:[#allocation3 + $0xf8] sm:$0xff]  ;;  %v2275_v31 = vmul.f32 %v2259_v60, %v2252_v34  ;;  %v3002_v28 = vld.sshfl [vmem:[#allocation1 + $0x8] sm:$0xff pattern:$0x75316420] }
 0x53d   :  { %2934 = vmatpush.msrb.mxu1 %v2079_v20  ;;  %v3088_v24 = vld [vmem:[#allocation3 + $0x118] sm:$0xff]  ;;  %v1983_v44 = vmul.f32 %v1967_v11, %v6263_v32  ;;  %v2991_v11 = vld [vmem:[%s5835_s0 + $0x8] sm:$0xff] }
 0x53e   :  { %2959 = vmatpush.msra.mxu0 %v2283_v57  ;;  %2984 = vmatpush.msra.mxu2 %v2567_v40  ;;  %v2067_v43 = vmul.f32 %v3088_v24, %v6262_v45  ;;  %v1963_v4 = vld [vmem:[#allocation3 + $0xd8] sm:$0xff] }
 0x53f   :  { %2935 = vmatpush.msrb.mxu1 %v2075_v58  ;;  %v1979_v22 = vmul.f32 %v1963_v4, %v6265_v50  ;;  %v3089_v1 = vld [vmem:[#allocation3 + $0xb8] sm:$0xff] }
 0x540   :  { %2960 = vmatpush.msra.mxu0 %v2279_v59  ;;  %2985 = vmatpush.msra.mxu2 %v2563_v9  ;;  %v1975_v14 = vmul.f32 %v3089_v1, %v6267_v2  ;;  %v1871_v33 = vld [vmem:[#allocation3 + $0x78] sm:$0xff]  ;;  %v3003_v59 = vld.sshfl [vmem:[#allocation1 + $0x10] sm:$0xff pattern:$0x75316420] }
 0x541   :  { %2936 = vmatpush.msrb.mxu1 %v2071_v5  ;;  %v3090_v49 = vld [vmem:[#allocation3 + $0x98] sm:$0xff] }
 0x542   :  { %2961 = vmatpush.msra.mxu0 %v2275_v31  ;;  %v6269_v47 = vld [vmem:[#allocation37_spill] sm:$0xff] }
 0x543   :  { %2937 = vmatpush.msrb.mxu1 %v2067_v43  ;;  %3068 = vmatmul.msk.f32.vlgmr.msra.gmra.mxu2 %vm1431_vm9, %v5585_v3  ;;  %v1971_v36 = vmul.f32 %v3090_v49, %v6269_v47  ;;  %v6270_v10 = vld [vmem:[#allocation57_spill] sm:$0xff]  ;;  %v6271_v3 = vld [vmem:[#allocation30_spill] sm:$0xff] }
 0x544   :  { %2962 = vmatpush.msra.mxu0 %v6264_v51  ;;  %v1887_v48 = vmul.f32 %v1871_v33, %v6271_v3  ;;  %v3091_v15 = vld [vmem:[#allocation3 + $0x58] sm:$0xff] }
 0x545   :  { %2938 = vmatpush.msrb.mxu1 %v1983_v44  ;;  %v6272_v13 = vld [vmem:[#allocation53_spill] sm:$0xff] }
 0x546   :  { %2963 = vmatpush.msra.mxu0 %v6266_v0  ;;  %v1883_v8 = vmul.f32 %v3091_v15, %v6272_v13  ;;  %v3092_v46 = vld [vmem:[#allocation3 + $0x38] sm:$0xff] }
 0x547   :  { %2939 = vmatpush.msrb.mxu1 %v1979_v22  ;;  %v6273_v41 = vld [vmem:[#allocation33_spill] sm:$0xff] }
 0x548   :  { %2964 = vmatpush.msra.mxu0 %v6268_v42  ;;  %v1879_v52 = vmul.f32 %v3092_v46, %v6273_v41  ;;  %v3093_v7 = vld [vmem:[#allocation3 + $0x18] sm:$0xff] }
 0x549   :  { %2940 = vmatpush.msrb.mxu1 %v1975_v14  ;;  %v6274_v26 = vld [vmem:[#allocation21_spill] sm:$0xff] }
 0x54a   :  { %2965 = vmatpush.msra.mxu0 %v6270_v10  ;;  %v1875_v29 = vmul.f32 %v3093_v7, %v6274_v26  ;;  %v3001_v30 = vld.sshfl [vmem:[#allocation1] sm:$0xff pattern:$0x75316420] }
 0x54b   :  { %2941 = vmatpush.msrb.mxu1 %v1971_v36  ;;  %2966 = vmatmul.f32.vlgmr.msra.gmra.mxu0 %v5573_v17  ;;  %v2990_v12 = vld [vmem:[%s5835_s0] sm:$0xff] }
 0x54d   :  { %2942 = vmatpush.msrb.mxu1 %v1887_v48 }
 0x54f   :  { %2943 = vmatpush.msrb.mxu1 %v1883_v8 }
 0x551   :  { %2944 = vmatpush.msrb.mxu1 %v1879_v52 }
 0x553   :  { %2945 = vmatpush.msrb.mxu1 %v1875_v29 }
 0x554   :  { %2946 = vmatmul.f32.vlgmr.msrb.gmra.mxu1 %v6258_v37 }
 0x57d   :  { %v2767_v23 = vpop.f32.mrf.mxu0 }
 0x57e   :  { %v2787_v21 = vpop.f32.mrf.mxu1 }
 0x57f   :  { %v2788_v53 = vadd.f32 %v2787_v21, %v2767_v23 }
 0x584   :  { %v2827_v38 = vpop.f32.mrf.mxu3 }
 0x586   :  { %v2867_v27 = vpop.f32.mrf.mxu1 }
 0x59c   :  { %v2807_v17 = vpop.f32.mrf.mxu2 }
 0x59d   :  { %v2808_v63 = vadd.f32 %v2807_v17, %v2788_v53 }
 0x59f   :  { %v3009_v62 = vmul.f32 %v3001_v30, %v2808_v63 }
 0x5a6   :  { %v2847_v25 = vpop.f32.mrf.mxu0 }
 0x5a7   :  { %v2848_v54 = vadd.f32 %v2847_v25, %v2827_v38 }
 0x5a9   :  { %v2868_v35 = vadd.f32 %v2867_v27, %v2848_v54 }
 0x5ab   :  { %v3010_v20 = vmul.f32 %v3002_v28, %v2868_v35 }
 0x5ad   :  { %v3017_v18 = vrot.slane %v3010_v20, 4 }
 0x5af   :  { %v3020_v39 = vsel %vm3019_vm10, %v3009_v62, %v3017_v18 }
 0x5b0   :  { %v3024_v55 = vadd.f32 %v3020_v39, %v2990_v12  ;;  %v2907_v57 = vpop.f32.mrf.mxu3 }
 0x5b2   :  { %3026 = vst [vmem:[%s5844_s9] sm:$0xff] %v3024_v55 }
 0x5b3   :  { %v2927_v37 = vpop.f32.mrf.mxu1 }
 0x5be   :  { %v2887_v6 = vpop.f32.mrf.mxu2 }
 0x5bf   :  { %v2908_v19 = vadd.f32 %v2907_v57, %v2887_v6 }
 0x5c1   :  { %v2928_v34 = vadd.f32 %v2927_v37, %v2908_v19 }
 0x5c3   :  { %v3011_v5 = vmul.f32 %v3003_v59, %v2928_v34 }
 0x5c6   :  { %v2987_v58 = vpop.f32.mrf.mxu2 }
 0x5c8   :  { %v2967_v40 = vpop.f32.mrf.mxu0 }
 0x5d1   :  { %v2947_v61 = vpop.f32.mrf.mxu1 }
 0x5d2   :  { %v2968_v60 = vadd.f32 %v2967_v40, %v2947_v61 }
 0x5d4   :  { %v2988_v9 = vadd.f32 %v2987_v58, %v2968_v60 }
 0x5d6   :  { %v3012_v56 = vmul.f32 %v3004_v16, %v2988_v9 }
 0x5d8   :  { %v3018_v31 = vrot.slane %v3012_v56, 4 }
 0x5da   :  { %v3021_v24 = vsel %vm3019_vm10, %v3011_v5, %v3018_v31 }
 0x5db   :  { %v3025_v45 = vadd.f32 %v3021_v24, %v2991_v11 }
 0x5dd   :  { %3027 = vst [vmem:[%s5844_s9 + $0x8] sm:$0xff] %v3025_v45 }
 0x5de   :  { %3032 = vsyncpa [#allocation4], 1 }

</bundles_post_ra>
